<compile_context>
chip_gen: v7x
topology: tpu7x:2x2x1
jax: 0.10.0
libtpu: 0.0.40
codegen_flags: <defaults>
</compile_context>

<pallas_src>
import math
import numpy as np
import jax
import jax.numpy as jnp
from jax.experimental import pallas as pl

# ----------------------------- config (small shapes) -----------------------------
B = 2          # batch
L = 8          # window / sequence length
D = 32         # d_model
H = 4          # n_heads
E = D // H     # head dim
DFF = 64       # d_ff
NUM_LAYERS = 2
EPS = 1e-5     # PyTorch LayerNorm default
LOG3 = math.log(3.0)
INV_SQRT_2PI = 1.0 / math.sqrt(2.0 * math.pi)

PROJ_W = 128                 # fused q|k|v|sigma projection width (3*D + H = 100 -> 128)
SLAB_W = 2 * B * H * L       # 128 : series | prior lane-dense output slab width


# ----------------------------- PositionalEmbedding (spec module) -----------------
def positional_embedding(seq_len, d_model, max_len=5000):
    """Replicates PositionalEmbedding.forward(x) == pe[:, :seq_len]."""
    position = np.arange(max_len, dtype=np.float32)[:, None]
    div_term = np.exp(np.arange(0, d_model, 2, dtype=np.float32)
                      * -(math.log(10000.0) / d_model))
    pe = np.zeros((max_len, d_model), dtype=np.float32)
    pe[:, 0::2] = np.sin(position * div_term)
    pe[:, 1::2] = np.cos(position * div_term)
    return jnp.asarray(pe[None, :seq_len])          # [1, seq_len, d_model]


# ----------------------------- kernel helpers -------------------------------------
def _layernorm(z, g, b):
    m = jnp.mean(z, axis=-1, keepdims=True)
    var = jnp.mean((z - m) ** 2, axis=-1, keepdims=True)
    return (z - m) * jax.lax.rsqrt(var + EPS) * g + b


def _recip(v):
    # EUP approximate reciprocal + one Newton-Raphson refinement (~f32 accuracy).
    r = pl.reciprocal(v, approx=True)
    return r * (2.0 - v * r)


# ----------------------------- fused encoder kernel ------------------------------
def fused_encoder_kernel(x_ref, nhd2_ref, wproj_ref, wffn1_ref, wow2_ref, bias_ref,
                         xo_ref, sp_ref, sigma_ref):
    x = x_ref[...]              # [B*L, D] slab; stays resident in VMEM across layers
    nhd2 = nhd2_ref[...]        # [L, L] = -0.5 * dist**2 (host-side precompute)

    for layer in range(NUM_LAYERS):              # static unroll over layers
        bp = bias_ref[layer]                     # [8, 128] packed biases / gains

        # ---- fused q|k|v|sigma projection: ONE MXU matmul (scale folded into q) ----
        proj = jnp.dot(x, wproj_ref[layer], preferred_element_type=jnp.float32) + bp[0]

        # sigma transform:  sigmoid(5x) + 1e-5 ; 3**x - 1
        sig = proj[:, 3 * D:3 * D + H]                           # [B*L, H]
        sig = jax.nn.sigmoid(sig * 5.0) + 1e-5
        sig = jnp.exp(sig * LOG3) - 1.0

        series_parts, prior_parts, attn_out_parts = [], [], []
        for b in range(B):                      # B=2 static loop: attention is per-batch
            r0 = b * L
            qb = proj[r0:r0 + L, 0 * D:1 * D].reshape(L, H, E)
            kb = proj[r0:r0 + L, 1 * D:2 * D].reshape(L, H, E)
            vb = proj[r0:r0 + L, 2 * D:3 * D].reshape(L, H, E)

            # ---- scores + softmax (series), batched over heads ----
            scores = jnp.einsum('lhe,she->hls', qb, kb,
                                preferred_element_type=jnp.float32)   # [H, L, L]
            s_max = jnp.max(scores, axis=-1, keepdims=True)
            ex = jnp.exp(scores - s_max)
            attn = ex * _recip(jnp.sum(ex, axis=-1, keepdims=True))   # [H, L, L]

            # ---- Gaussian prior from sigma (1/sigma rewrite) ----
            sig_t = jnp.transpose(sig[r0:r0 + L])                     # [H, L]
            sigma_ref[layer, b] = sig_t                               # un-broadcast sigma out
            inv_sig = _recip(sig_t)[:, :, None]                       # [H, L, 1]
            prior = (INV_SQRT_2PI * inv_sig) * jnp.exp(nhd2[None] * (inv_sig * inv_sig))

            for h in range(H):                  # lane-concat pieces for the 128-wide slab
                series_parts.append(attn[h])
                prior_parts.append(prior[h])

            # ---- attn @ V (batched over heads), merge heads ----
            attn_out_parts.append(
                jnp.einsum('hls,she->lhe', attn, vb,
                           preferred_element_type=jnp.float32).reshape(L, D))

        # lane-dense [L, 128] output slab: series(b,h-major) | prior(b,h-major)
        sp_ref[layer] = jnp.concatenate(series_parts + prior_parts, axis=-1)

        # ---- output projection + residual + LayerNorm1 ----
        attn_out = jnp.concatenate(attn_out_parts, axis=0)            # [B*L, D]
        attn_out = jnp.dot(attn_out, wow2_ref[layer, 0:D, :],
                           preferred_element_type=jnp.float32) + bp[1, :D]
        xn = _layernorm(x + attn_out, bp[2, :D], bp[3, :D])

        # ---- FFN: Conv1d(k=1) == per-position linear, ReLU, Conv1d(k=1) ----
        y = jnp.dot(xn, wffn1_ref[layer], preferred_element_type=jnp.float32) + bp[4, :DFF]
        y = jnp.maximum(y, 0.0)
        y = jnp.dot(y, wow2_ref[layer, D:D + DFF, :],
                    preferred_element_type=jnp.float32) + bp[5, :D]

        # ---- residual + LayerNorm2 ----
        x = _layernorm(xn + y, bp[6, :D], bp[7, :D])

    # ---- final encoder LayerNorm, fused into the same kernel ----
    xo_ref[...] = _layernorm(x, bias_ref[NUM_LAYERS, 0, :D], bias_ref[NUM_LAYERS, 1, :D])


# ----------------------------- wrapper ---------------------------------------------
def encoder_forward(x, params, dist):
    """x: [B, L, D], already includes the PositionalEmbedding table."""
    scale = 1.0 / math.sqrt(E)
    NL = NUM_LAYERS
    layers = params["layers"]

    # --- packed weights (host-side): fused projections padded to 128 lanes ---
    wproj = jnp.stack([
        jnp.concatenate([p["wq"] * scale, p["wk"], p["wv"], p["wsig"],
                         jnp.zeros((D, PROJ_W - 3 * D - H), jnp.float32)], axis=1)
        for p in layers])                                    # [NL, D, 128]
    wffn1 = jnp.stack([p["w1"] for p in layers])             # [NL, D, DFF]
    wow2 = jnp.stack([jnp.concatenate([p["wo"], p["w2"]], axis=0)
                      for p in layers])                      # [NL, D+DFF, D]

    # --- single bias/gain pack: [NL+1, 8, 128] (last slot = final LayerNorm) ---
    def row(v):
        v = jnp.reshape(v, (-1,))
        return jnp.pad(v, (0, PROJ_W - v.shape[0]))

    bias_rows = []
    for p in layers:
        bproj = jnp.concatenate([p["bq"][0] * scale, p["bk"][0], p["bv"][0], p["bsig"][0]])
        bias_rows.append(jnp.stack([row(bproj), row(p["bo"]), row(p["g1"]), row(p["be1"]),
                                    row(p["b1"]), row(p["b2"]), row(p["g2"]), row(p["be2"])]))
    bias_rows.append(jnp.stack([row(params["norm_g"]), row(params["norm_b"])]
                               + [jnp.zeros((PROJ_W,), jnp.float32)] * 6))
    bias_pack = jnp.stack(bias_rows)                         # [NL+1, 8, 128]

    nhd2 = (-0.5) * dist * dist                              # -dist^2/2
    x_slab = x.reshape(B * L, D)                             # fold batch into the block

    def full_spec(shape):
        zeros = (0,) * len(shape)
        return pl.BlockSpec(shape, lambda: zeros)

    inputs = (x_slab, nhd2, wproj, wffn1, wow2, bias_pack)
    out_shape = (jax.ShapeDtypeStruct((B * L, D), jnp.float32),
                 jax.ShapeDtypeStruct((NL, L, SLAB_W), jnp.float32),
                 jax.ShapeDtypeStruct((NL, B, H, L), jnp.float32))

    xo, sp, sig = pl.pallas_call(
        fused_encoder_kernel,                                # grid=() : single invocation
        out_shape=out_shape,
        in_specs=[full_spec(a.shape) for a in inputs],
        out_specs=tuple(full_spec(s.shape) for s in out_shape),
    )(*inputs)

    # --- cheap wrapper-side unpacking (free/fusable XLA ops) ---
    half = B * H * L
    ser = jnp.transpose(sp[:, :, :half].reshape(NL, L, B, H, L), (0, 2, 3, 1, 4))
    pri = jnp.transpose(sp[:, :, half:].reshape(NL, L, B, H, L), (0, 2, 3, 1, 4))
    sigma_full = jnp.broadcast_to(sig[..., None], (NL, B, H, L, L))

    series_list = [ser[l] for l in range(NL)]
    prior_list = [pri[l] for l in range(NL)]
    sigma_list = [sigma_full[l] for l in range(NL)]
    return xo.reshape(B, L, D), series_list, prior_list, sigma_list


# ----------------------------- pure-JAX reference (for checking) ------------------
def encoder_reference(x, params, dist):
    def ln(x, g, b):
        m = jnp.mean(x, axis=-1, keepdims=True)
        v = jnp.mean((x - m) ** 2, axis=-1, keepdims=True)
        return (x - m) / jnp.sqrt(v + EPS) * g[0] + b[0]

    series_list, prior_list, sigma_list = [], [], []
    for p in params["layers"]:
        q = x @ p["wq"] + p["bq"][0]
        k = x @ p["wk"] + p["bk"][0]
        v = x @ p["wv"] + p["bv"][0]
        sig = x @ p["wsig"] + p["bsig"][0]                       # [B, L, H]
        q = q.reshape(B, L, H, E); k = k.reshape(B, L, H, E); v = v.reshape(B, L, H, E)
        scores = jnp.einsum("blhe,bshe->bhls", q, k) * (1.0 / math.sqrt(E))
        series = jax.nn.softmax(scores, axis=-1)                 # [B, H, L, L]
        sig = jnp.transpose(sig, (0, 2, 1))                      # [B, H, L]
        sig = jax.nn.sigmoid(sig * 5.0) + 1e-5
        sig = jnp.power(3.0, sig) - 1.0
        sigma_full = jnp.broadcast_to(sig[..., None], (B, H, L, L))
        prior = (1.0 / (jnp.sqrt(2.0 * jnp.pi) * sigma_full)) * \
                jnp.exp(-(dist[None, None] ** 2) / 2.0 / (sigma_full ** 2))
        out = jnp.einsum("bhls,bshd->blhd", series, v).reshape(B, L, D)
        out = out @ p["wo"] + p["bo"][0]
        x1 = ln(x + out, p["g1"], p["be1"])
        y = jnp.maximum(x1 @ p["w1"] + p["b1"][0], 0.0)
        y = y @ p["w2"] + p["b2"][0]
        x = ln(x1 + y, p["g2"], p["be2"])
        series_list.append(series); prior_list.append(prior); sigma_list.append(sigma_full)
    x = ln(x, params["norm_g"], params["norm_b"])
    return x, series_list, prior_list, sigma_list


# ----------------------------- parameter init --------------------------------------
def init_params(key):
    def nrm(key, shape, scale=0.05):
        return scale * jax.random.normal(key, shape, dtype=jnp.float32)

    layers = []
    for _ in range(NUM_LAYERS):
        keys = jax.random.split(key, 13)
        key = keys[0]
        layers.append(dict(
            wq=nrm(keys[1], (D, D)),   bq=nrm(keys[2], (1, D)),
            wk=nrm(keys[3], (D, D)),   bk=nrm(keys[4], (1, D)),
            wv=nrm(keys[5], (D, D)),   bv=nrm(keys[6], (1, D)),
            wsig=nrm(keys[7], (D, H)), bsig=nrm(keys[8], (1, H)),
            wo=nrm(keys[9], (D, D)),   bo=nrm(keys[10], (1, D)),
            g1=jnp.ones((1, D), jnp.float32),  be1=jnp.zeros((1, D), jnp.float32),
            w1=nrm(keys[11], (D, DFF)), b1=jnp.zeros((1, DFF), jnp.float32),
            w2=nrm(keys[12], (DFF, D)), b2=jnp.zeros((1, D), jnp.float32),
            g2=jnp.ones((1, D), jnp.float32),  be2=jnp.zeros((1, D), jnp.float32),
        ))
    return dict(layers=layers,
                norm_g=jnp.ones((1, D), jnp.float32),
                norm_b=jnp.zeros((1, D), jnp.float32))


# ----------------------------- main ------------------------------------------------
if __name__ == "__main__":
    key = jax.random.PRNGKey(0)
    kx, kp = jax.random.split(key)
    x_val = jax.random.normal(kx, (B, L, D), dtype=jnp.float32)
    # add the PositionalEmbedding table (spec module: pe[:, :L]) as DataEmbedding does
    x = x_val + positional_embedding(L, D)
    params = init_params(kp)

    ii = jnp.arange(L, dtype=jnp.float32)
    dist = jnp.abs(ii[:, None] - ii[None, :])     # |i - j| distances, [L, L]

    fwd = jax.jit(encoder_forward)
    out, series_list, prior_list, sigma_list = fwd(x, params, dist)
    jax.block_until_ready(out)
    for t in series_list + prior_list + sigma_list:
        jax.block_until_ready(t)

    # sanity check against pure-JAX reference
    ref_out, ref_series, ref_prior, ref_sigma = encoder_reference(x, params, dist)
    np.testing.assert_allclose(np.asarray(out), np.asarray(ref_out), rtol=1e-4, atol=1e-4)
    for a, b in zip(series_list, ref_series):
        np.testing.assert_allclose(np.asarray(a), np.asarray(b), rtol=1e-4, atol=1e-4)
    for a, b in zip(prior_list, ref_prior):
        np.testing.assert_allclose(np.asarray(a), np.asarray(b), rtol=1e-4, atol=1e-4)
    for a, b in zip(sigma_list, ref_sigma):
        np.testing.assert_allclose(np.asarray(a), np.asarray(b), rtol=1e-4, atol=1e-4)

    print("KERNEL_OK")
</pallas_src>

<mosaic_0001>
module attributes {stable_mosaic.version = 11 : i64} {
  func.func @fused_encoder_kernel(%arg0: memref<16x32xf32, #tpu.memory_space<vmem>>, %arg1: memref<8x8xf32, #tpu.memory_space<vmem>>, %arg2: memref<2x32x128xf32, #tpu.memory_space<vmem>>, %arg3: memref<2x32x64xf32, #tpu.memory_space<vmem>>, %arg4: memref<2x96x32xf32, #tpu.memory_space<vmem>>, %arg5: memref<3x8x128xf32, #tpu.memory_space<vmem>>, %arg6: memref<16x32xf32, #tpu.memory_space<vmem>>, %arg7: memref<2x8x128xf32, #tpu.memory_space<vmem>>, %arg8: memref<2x2x4x8xf32, #tpu.memory_space<vmem>>) attributes {dimension_semantics = [], scalar_prefetch = 0 : i64, scratch_operands = 0 : i64, tpu.core_type = #tpu.core_type<tc>} {
    %c0 = arith.constant 0 : index
    %c0_0 = arith.constant 0 : index
    %0 = vector.load %arg0[%c0, %c0_0] : memref<16x32xf32, #tpu.memory_space<vmem>>, vector<16x32xf32>
    %c0_1 = arith.constant 0 : index
    %c0_2 = arith.constant 0 : index
    %1 = vector.load %arg1[%c0_1, %c0_2] : memref<8x8xf32, #tpu.memory_space<vmem>>, vector<8x8xf32>
    %c0_3 = arith.constant 0 : index
    %c0_4 = arith.constant 0 : index
    %c0_5 = arith.constant 0 : index
    %2 = vector.load %arg5[%c0_3, %c0_4, %c0_5] : memref<3x8x128xf32, #tpu.memory_space<vmem>>, vector<1x8x128xf32>
    %3 = vector.shape_cast %2 : vector<1x8x128xf32> to vector<8x128xf32>
    %c0_6 = arith.constant 0 : index
    %c0_7 = arith.constant 0 : index
    %c0_8 = arith.constant 0 : index
    %4 = vector.load %arg2[%c0_6, %c0_7, %c0_8] : memref<2x32x128xf32, #tpu.memory_space<vmem>>, vector<1x32x128xf32>
    %5 = vector.shape_cast %4 : vector<1x32x128xf32> to vector<32x128xf32>
    %cst = arith.constant dense<0.000000e+00> : vector<16x128xf32>
    %6 = tpu.matmul %0, %5, %cst {dimension_numbers = #tpu.dot_dimension_numbers<[1], [0], [0], [1], [0, 0, 1, 1], [], []>} : vector<16x32xf32>, vector<32x128xf32>, vector<16x128xf32> -> vector<16x128xf32>
    %7 = vector.extract_strided_slice %3 {offsets = [0, 0], sizes = [1, 128], strides = [1, 1]} : vector<8x128xf32> to vector<1x128xf32>
    %8 = vector.shape_cast %7 : vector<1x128xf32> to vector<128xf32>
    %9 = vector.shape_cast %8 : vector<128xf32> to vector<1x128xf32>
    %10 = vector.broadcast %9 : vector<1x128xf32> to vector<16x128xf32>
    %11 = arith.addf %6, %10 : vector<16x128xf32>
    %12 = vector.extract_strided_slice %11 {offsets = [0, 96], sizes = [16, 4], strides = [1, 1]} : vector<16x128xf32> to vector<16x4xf32>
    %cst_9 = arith.constant 5.000000e+00 : f32
    %13 = vector.broadcast %cst_9 : f32 to vector<16x4xf32>
    %14 = arith.mulf %12, %13 : vector<16x4xf32>
    %15 = arith.negf %14 : vector<16x4xf32>
    %16 = math.exp %15 : vector<16x4xf32>
    %cst_10 = arith.constant 1.000000e+00 : f32
    %17 = vector.broadcast %cst_10 : f32 to vector<16x4xf32>
    %18 = arith.addf %17, %16 : vector<16x4xf32>
    %19 = arith.divf %17, %18 : vector<16x4xf32>
    %cst_11 = arith.constant 9.99999974E-6 : f32
    %20 = vector.broadcast %cst_11 : f32 to vector<16x4xf32>
    %21 = arith.addf %19, %20 : vector<16x4xf32>
    %cst_12 = arith.constant 1.09861231 : f32
    %22 = vector.broadcast %cst_12 : f32 to vector<16x4xf32>
    %23 = arith.mulf %21, %22 : vector<16x4xf32>
    %24 = math.exp %23 : vector<16x4xf32>
    %cst_13 = arith.constant 1.000000e+00 : f32
    %25 = vector.broadcast %cst_13 : f32 to vector<16x4xf32>
    %26 = arith.subf %24, %25 : vector<16x4xf32>
    %27 = vector.extract_strided_slice %11 {offsets = [0, 0], sizes = [8, 32], strides = [1, 1]} : vector<16x128xf32> to vector<8x32xf32>
    %28 = vector.shape_cast %27 : vector<8x32xf32> to vector<8x4x8xf32>
    %29 = vector.extract_strided_slice %11 {offsets = [0, 32], sizes = [8, 32], strides = [1, 1]} : vector<16x128xf32> to vector<8x32xf32>
    %30 = vector.shape_cast %29 : vector<8x32xf32> to vector<8x4x8xf32>
    %31 = vector.extract_strided_slice %11 {offsets = [0, 64], sizes = [8, 32], strides = [1, 1]} : vector<16x128xf32> to vector<8x32xf32>
    %32 = vector.shape_cast %31 : vector<8x32xf32> to vector<8x4x8xf32>
    "tpu.trace_start"() <{level = 10 : i32, message = "lhe,she->hls"}> : () -> ()
    %cst_14 = arith.constant dense<0.000000e+00> : vector<4x8x8xf32>
    %33 = tpu.matmul %28, %30, %cst_14 {dimension_numbers = #tpu.dot_dimension_numbers<[2], [2], [0], [0], [0, 1, 0, 0, 1, 0], [1], [1]>} : vector<8x4x8xf32>, vector<8x4x8xf32>, vector<4x8x8xf32> -> vector<4x8x8xf32>
    "tpu.trace_stop"() : () -> ()
    %cst_15 = arith.constant dense<0xFF800000> : vector<4x8xf32>
    %34 = vector.multi_reduction <maximumf>, %33, %cst_15 [2] : vector<4x8x8xf32> to vector<4x8xf32>
    %35 = vector.shape_cast %34 : vector<4x8xf32> to vector<4x8x1xf32>
    %36 = vector.broadcast %35 : vector<4x8x1xf32> to vector<4x8x8xf32>
    %37 = arith.subf %33, %36 : vector<4x8x8xf32>
    %38 = math.exp %37 : vector<4x8x8xf32>
    %cst_16 = arith.constant dense<0.000000e+00> : vector<4x8xf32>
    %39 = vector.multi_reduction <add>, %38, %cst_16 [2] : vector<4x8x8xf32> to vector<4x8xf32>
    %40 = vector.shape_cast %39 : vector<4x8xf32> to vector<4x8x1xf32>
    %41 = tpu.reciprocal %40 {approx = true} : vector<4x8x1xf32> -> vector<4x8x1xf32>
    %42 = arith.mulf %40, %41 : vector<4x8x1xf32>
    %cst_17 = arith.constant 2.000000e+00 : f32
    %43 = vector.broadcast %cst_17 : f32 to vector<4x8x1xf32>
    %44 = arith.subf %43, %42 : vector<4x8x1xf32>
    %45 = arith.mulf %41, %44 : vector<4x8x1xf32>
    %46 = vector.broadcast %45 : vector<4x8x1xf32> to vector<4x8x8xf32>
    %47 = arith.mulf %38, %46 : vector<4x8x8xf32>
    %48 = vector.extract_strided_slice %26 {offsets = [0, 0], sizes = [8, 4], strides = [1, 1]} : vector<16x4xf32> to vector<8x4xf32>
    %49 = tpu.transpose %48, [1, 0] : vector<8x4xf32> -> vector<4x8xf32>
    %c0_18 = arith.constant 0 : index
    %c0_19 = arith.constant 0 : index
    %c0_20 = arith.constant 0 : index
    %c0_21 = arith.constant 0 : index
    %50 = vector.load %arg8[%c0_18, %c0_19, %c0_20, %c0_21] : memref<2x2x4x8xf32, #tpu.memory_space<vmem>>, vector<1x1x4x8xf32>
    %51 = vector.shape_cast %50 : vector<1x1x4x8xf32> to vector<4x8xf32>
    %52 = vector.shape_cast %49 : vector<4x8xf32> to vector<1x1x4x8xf32>
    tpu.vector_store %arg8[%c0_18, %c0_19, %c0_20, %c0_21], %52 {strides = array<i32>} : memref<2x2x4x8xf32, #tpu.memory_space<vmem>>, vector<1x1x4x8xf32>,
    %53 = tpu.reciprocal %49 {approx = true} : vector<4x8xf32> -> vector<4x8xf32>
    %54 = arith.mulf %49, %53 : vector<4x8xf32>
    %cst_22 = arith.constant 2.000000e+00 : f32
    %55 = vector.broadcast %cst_22 : f32 to vector<4x8xf32>
    %56 = arith.subf %55, %54 : vector<4x8xf32>
    %57 = arith.mulf %53, %56 : vector<4x8xf32>
    %58 = vector.shape_cast %57 : vector<4x8xf32> to vector<4x8x1xf32>
    %cst_23 = arith.constant 0.398942292 : f32
    %59 = vector.broadcast %cst_23 : f32 to vector<4x8x1xf32>
    %60 = arith.mulf %59, %58 : vector<4x8x1xf32>
    %61 = vector.shape_cast %1 : vector<8x8xf32> to vector<1x8x8xf32>
    %62 = arith.mulf %58, %58 : vector<4x8x1xf32>
    %63 = vector.broadcast %61 : vector<1x8x8xf32> to vector<4x8x8xf32>
    %64 = vector.broadcast %62 : vector<4x8x1xf32> to vector<4x8x8xf32>
    %65 = arith.mulf %63, %64 : vector<4x8x8xf32>
    %66 = math.exp %65 : vector<4x8x8xf32>
    %67 = vector.broadcast %60 : vector<4x8x1xf32> to vector<4x8x8xf32>
    %68 = arith.mulf %67, %66 : vector<4x8x8xf32>
    %69 = vector.extract_strided_slice %47 {offsets = [0, 0, 0], sizes = [1, 8, 8], strides = [1, 1, 1]} : vector<4x8x8xf32> to vector<1x8x8xf32>
    %70 = vector.shape_cast %69 : vector<1x8x8xf32> to vector<8x8xf32>
    %71 = vector.extract_strided_slice %68 {offsets = [0, 0, 0], sizes = [1, 8, 8], strides = [1, 1, 1]} : vector<4x8x8xf32> to vector<1x8x8xf32>
    %72 = vector.shape_cast %71 : vector<1x8x8xf32> to vector<8x8xf32>
    %73 = vector.extract_strided_slice %47 {offsets = [1, 0, 0], sizes = [1, 8, 8], strides = [1, 1, 1]} : vector<4x8x8xf32> to vector<1x8x8xf32>
    %74 = vector.shape_cast %73 : vector<1x8x8xf32> to vector<8x8xf32>
    %75 = vector.extract_strided_slice %68 {offsets = [1, 0, 0], sizes = [1, 8, 8], strides = [1, 1, 1]} : vector<4x8x8xf32> to vector<1x8x8xf32>
    %76 = vector.shape_cast %75 : vector<1x8x8xf32> to vector<8x8xf32>
    %77 = vector.extract_strided_slice %47 {offsets = [2, 0, 0], sizes = [1, 8, 8], strides = [1, 1, 1]} : vector<4x8x8xf32> to vector<1x8x8xf32>
    %78 = vector.shape_cast %77 : vector<1x8x8xf32> to vector<8x8xf32>
    %79 = vector.extract_strided_slice %68 {offsets = [2, 0, 0], sizes = [1, 8, 8], strides = [1, 1, 1]} : vector<4x8x8xf32> to vector<1x8x8xf32>
    %80 = vector.shape_cast %79 : vector<1x8x8xf32> to vector<8x8xf32>
    %81 = vector.extract_strided_slice %47 {offsets = [3, 0, 0], sizes = [1, 8, 8], strides = [1, 1, 1]} : vector<4x8x8xf32> to vector<1x8x8xf32>
    %82 = vector.shape_cast %81 : vector<1x8x8xf32> to vector<8x8xf32>
    %83 = vector.extract_strided_slice %68 {offsets = [3, 0, 0], sizes = [1, 8, 8], strides = [1, 1, 1]} : vector<4x8x8xf32> to vector<1x8x8xf32>
    %84 = vector.shape_cast %83 : vector<1x8x8xf32> to vector<8x8xf32>
    "tpu.trace_start"() <{level = 10 : i32, message = "hls,she->lhe"}> : () -> ()
    %cst_24 = arith.constant dense<0.000000e+00> : vector<4x8x8xf32>
    %85 = tpu.matmul %32, %47, %cst_24 {dimension_numbers = #tpu.dot_dimension_numbers<[0], [2], [2], [1], [0, 1, 0, 2, 1, 1], [1], [0]>} : vector<8x4x8xf32>, vector<4x8x8xf32>, vector<4x8x8xf32> -> vector<4x8x8xf32>
    %86 = tpu.transpose %85, [2, 0, 1] : vector<4x8x8xf32> -> vector<8x4x8xf32>
    "tpu.trace_stop"() : () -> ()
    %87 = vector.shape_cast %86 : vector<8x4x8xf32> to vector<8x32xf32>
    %88 = vector.extract_strided_slice %11 {offsets = [8, 0], sizes = [8, 32], strides = [1, 1]} : vector<16x128xf32> to vector<8x32xf32>
    %89 = vector.shape_cast %88 : vector<8x32xf32> to vector<8x4x8xf32>
    %90 = vector.extract_strided_slice %11 {offsets = [8, 32], sizes = [8, 32], strides = [1, 1]} : vector<16x128xf32> to vector<8x32xf32>
    %91 = vector.shape_cast %90 : vector<8x32xf32> to vector<8x4x8xf32>
    %92 = vector.extract_strided_slice %11 {offsets = [8, 64], sizes = [8, 32], strides = [1, 1]} : vector<16x128xf32> to vector<8x32xf32>
    %93 = vector.shape_cast %92 : vector<8x32xf32> to vector<8x4x8xf32>
    "tpu.trace_start"() <{level = 10 : i32, message = "lhe,she->hls"}> : () -> ()
    %cst_25 = arith.constant dense<0.000000e+00> : vector<4x8x8xf32>
    %94 = tpu.matmul %89, %91, %cst_25 {dimension_numbers = #tpu.dot_dimension_numbers<[2], [2], [0], [0], [0, 1, 0, 0, 1, 0], [1], [1]>} : vector<8x4x8xf32>, vector<8x4x8xf32>, vector<4x8x8xf32> -> vector<4x8x8xf32>
    "tpu.trace_stop"() : () -> ()
    %cst_26 = arith.constant dense<0xFF800000> : vector<4x8xf32>
    %95 = vector.multi_reduction <maximumf>, %94, %cst_26 [2] : vector<4x8x8xf32> to vector<4x8xf32>
    %96 = vector.shape_cast %95 : vector<4x8xf32> to vector<4x8x1xf32>
    %97 = vector.broadcast %96 : vector<4x8x1xf32> to vector<4x8x8xf32>
    %98 = arith.subf %94, %97 : vector<4x8x8xf32>
    %99 = math.exp %98 : vector<4x8x8xf32>
    %cst_27 = arith.constant dense<0.000000e+00> : vector<4x8xf32>
    %100 = vector.multi_reduction <add>, %99, %cst_27 [2] : vector<4x8x8xf32> to vector<4x8xf32>
    %101 = vector.shape_cast %100 : vector<4x8xf32> to vector<4x8x1xf32>
    %102 = tpu.reciprocal %101 {approx = true} : vector<4x8x1xf32> -> vector<4x8x1xf32>
    %103 = arith.mulf %101, %102 : vector<4x8x1xf32>
    %cst_28 = arith.constant 2.000000e+00 : f32
    %104 = vector.broadcast %cst_28 : f32 to vector<4x8x1xf32>
    %105 = arith.subf %104, %103 : vector<4x8x1xf32>
    %106 = arith.mulf %102, %105 : vector<4x8x1xf32>
    %107 = vector.broadcast %106 : vector<4x8x1xf32> to vector<4x8x8xf32>
    %108 = arith.mulf %99, %107 : vector<4x8x8xf32>
    %109 = vector.extract_strided_slice %26 {offsets = [8, 0], sizes = [8, 4], strides = [1, 1]} : vector<16x4xf32> to vector<8x4xf32>
    %110 = tpu.transpose %109, [1, 0] : vector<8x4xf32> -> vector<4x8xf32>
    %c0_29 = arith.constant 0 : index
    %c1 = arith.constant 1 : index
    %c0_30 = arith.constant 0 : index
    %c0_31 = arith.constant 0 : index
    %111 = vector.load %arg8[%c0_29, %c1, %c0_30, %c0_31] : memref<2x2x4x8xf32, #tpu.memory_space<vmem>>, vector<1x1x4x8xf32>
    %112 = vector.shape_cast %111 : vector<1x1x4x8xf32> to vector<4x8xf32>
    %113 = vector.shape_cast %110 : vector<4x8xf32> to vector<1x1x4x8xf32>
    tpu.vector_store %arg8[%c0_29, %c1, %c0_30, %c0_31], %113 {strides = array<i32>} : memref<2x2x4x8xf32, #tpu.memory_space<vmem>>, vector<1x1x4x8xf32>,
    %114 = tpu.reciprocal %110 {approx = true} : vector<4x8xf32> -> vector<4x8xf32>
    %115 = arith.mulf %110, %114 : vector<4x8xf32>
    %cst_32 = arith.constant 2.000000e+00 : f32
    %116 = vector.broadcast %cst_32 : f32 to vector<4x8xf32>
    %117 = arith.subf %116, %115 : vector<4x8xf32>
    %118 = arith.mulf %114, %117 : vector<4x8xf32>
    %119 = vector.shape_cast %118 : vector<4x8xf32> to vector<4x8x1xf32>
    %cst_33 = arith.constant 0.398942292 : f32
    %120 = vector.broadcast %cst_33 : f32 to vector<4x8x1xf32>
    %121 = arith.mulf %120, %119 : vector<4x8x1xf32>
    %122 = vector.shape_cast %1 : vector<8x8xf32> to vector<1x8x8xf32>
    %123 = arith.mulf %119, %119 : vector<4x8x1xf32>
    %124 = vector.broadcast %122 : vector<1x8x8xf32> to vector<4x8x8xf32>
    %125 = vector.broadcast %123 : vector<4x8x1xf32> to vector<4x8x8xf32>
    %126 = arith.mulf %124, %125 : vector<4x8x8xf32>
    %127 = math.exp %126 : vector<4x8x8xf32>
    %128 = vector.broadcast %121 : vector<4x8x1xf32> to vector<4x8x8xf32>
    %129 = arith.mulf %128, %127 : vector<4x8x8xf32>
    %130 = vector.extract_strided_slice %108 {offsets = [0, 0, 0], sizes = [1, 8, 8], strides = [1, 1, 1]} : vector<4x8x8xf32> to vector<1x8x8xf32>
    %131 = vector.shape_cast %130 : vector<1x8x8xf32> to vector<8x8xf32>
    %132 = vector.extract_strided_slice %129 {offsets = [0, 0, 0], sizes = [1, 8, 8], strides = [1, 1, 1]} : vector<4x8x8xf32> to vector<1x8x8xf32>
    %133 = vector.shape_cast %132 : vector<1x8x8xf32> to vector<8x8xf32>
    %134 = vector.extract_strided_slice %108 {offsets = [1, 0, 0], sizes = [1, 8, 8], strides = [1, 1, 1]} : vector<4x8x8xf32> to vector<1x8x8xf32>
    %135 = vector.shape_cast %134 : vector<1x8x8xf32> to vector<8x8xf32>
    %136 = vector.extract_strided_slice %129 {offsets = [1, 0, 0], sizes = [1, 8, 8], strides = [1, 1, 1]} : vector<4x8x8xf32> to vector<1x8x8xf32>
    %137 = vector.shape_cast %136 : vector<1x8x8xf32> to vector<8x8xf32>
    %138 = vector.extract_strided_slice %108 {offsets = [2, 0, 0], sizes = [1, 8, 8], strides = [1, 1, 1]} : vector<4x8x8xf32> to vector<1x8x8xf32>
    %139 = vector.shape_cast %138 : vector<1x8x8xf32> to vector<8x8xf32>
    %140 = vector.extract_strided_slice %129 {offsets = [2, 0, 0], sizes = [1, 8, 8], strides = [1, 1, 1]} : vector<4x8x8xf32> to vector<1x8x8xf32>
    %141 = vector.shape_cast %140 : vector<1x8x8xf32> to vector<8x8xf32>
    %142 = vector.extract_strided_slice %108 {offsets = [3, 0, 0], sizes = [1, 8, 8], strides = [1, 1, 1]} : vector<4x8x8xf32> to vector<1x8x8xf32>
    %143 = vector.shape_cast %142 : vector<1x8x8xf32> to vector<8x8xf32>
    %144 = vector.extract_strided_slice %129 {offsets = [3, 0, 0], sizes = [1, 8, 8], strides = [1, 1, 1]} : vector<4x8x8xf32> to vector<1x8x8xf32>
    %145 = vector.shape_cast %144 : vector<1x8x8xf32> to vector<8x8xf32>
    "tpu.trace_start"() <{level = 10 : i32, message = "hls,she->lhe"}> : () -> ()
    %cst_34 = arith.constant dense<0.000000e+00> : vector<4x8x8xf32>
    %146 = tpu.matmul %93, %108, %cst_34 {dimension_numbers = #tpu.dot_dimension_numbers<[0], [2], [2], [1], [0, 1, 0, 2, 1, 1], [1], [0]>} : vector<8x4x8xf32>, vector<4x8x8xf32>, vector<4x8x8xf32> -> vector<4x8x8xf32>
    %147 = tpu.transpose %146, [2, 0, 1] : vector<4x8x8xf32> -> vector<8x4x8xf32>
    "tpu.trace_stop"() : () -> ()
    %148 = vector.shape_cast %147 : vector<8x4x8xf32> to vector<8x32xf32>
    %149 = tpu.concatenate %70, %74, %78, %82, %131, %135, %139, %143, %72, %76, %80, %84, %133, %137, %141, %145 in 1 : vector<8x8xf32>, vector<8x8xf32>, vector<8x8xf32>, vector<8x8xf32>, vector<8x8xf32>, vector<8x8xf32>, vector<8x8xf32>, vector<8x8xf32>, vector<8x8xf32>, vector<8x8xf32>, vector<8x8xf32>, vector<8x8xf32>, vector<8x8xf32>, vector<8x8xf32>, vector<8x8xf32>, vector<8x8xf32> -> vector<8x128xf32>
    %c0_35 = arith.constant 0 : index
    %c0_36 = arith.constant 0 : index
    %c0_37 = arith.constant 0 : index
    %150 = vector.load %arg7[%c0_35, %c0_36, %c0_37] : memref<2x8x128xf32, #tpu.memory_space<vmem>>, vector<1x8x128xf32>
    %151 = vector.shape_cast %150 : vector<1x8x128xf32> to vector<8x128xf32>
    %152 = vector.shape_cast %149 : vector<8x128xf32> to vector<1x8x128xf32>
    tpu.vector_store %arg7[%c0_35, %c0_36, %c0_37], %152 {strides = array<i32>} : memref<2x8x128xf32, #tpu.memory_space<vmem>>, vector<1x8x128xf32>,
    %153 = tpu.concatenate %87, %148 in 0 : vector<8x32xf32>, vector<8x32xf32> -> vector<16x32xf32>
    %c0_38 = arith.constant 0 : index
    %c0_39 = arith.constant 0 : index
    %c0_40 = arith.constant 0 : index
    %154 = vector.load %arg4[%c0_38, %c0_39, %c0_40] : memref<2x96x32xf32, #tpu.memory_space<vmem>>, vector<1x32x32xf32>
    %155 = vector.shape_cast %154 : vector<1x32x32xf32> to vector<32x32xf32>
    %cst_41 = arith.constant dense<0.000000e+00> : vector<16x32xf32>
    %156 = tpu.matmul %153, %155, %cst_41 {dimension_numbers = #tpu.dot_dimension_numbers<[1], [0], [0], [1], [0, 0, 1, 1], [], []>} : vector<16x32xf32>, vector<32x32xf32>, vector<16x32xf32> -> vector<16x32xf32>
    %157 = vector.extract_strided_slice %3 {offsets = [1, 0], sizes = [1, 32], strides = [1, 1]} : vector<8x128xf32> to vector<1x32xf32>
    %158 = vector.shape_cast %157 : vector<1x32xf32> to vector<32xf32>
    %159 = vector.shape_cast %158 : vector<32xf32> to vector<1x32xf32>
    %160 = vector.broadcast %159 : vector<1x32xf32> to vector<16x32xf32>
    %161 = arith.addf %156, %160 : vector<16x32xf32>
    %162 = arith.addf %0, %161 : vector<16x32xf32>
    %163 = vector.extract_strided_slice %3 {offsets = [2, 0], sizes = [1, 32], strides = [1, 1]} : vector<8x128xf32> to vector<1x32xf32>
    %164 = vector.shape_cast %163 : vector<1x32xf32> to vector<32xf32>
    %165 = vector.extract_strided_slice %3 {offsets = [3, 0], sizes = [1, 32], strides = [1, 1]} : vector<8x128xf32> to vector<1x32xf32>
    %166 = vector.shape_cast %165 : vector<1x32xf32> to vector<32xf32>
    %cst_42 = arith.constant dense<0.000000e+00> : vector<16xf32>
    %167 = vector.multi_reduction <add>, %162, %cst_42 [1] : vector<16x32xf32> to vector<16xf32>
    %168 = vector.shape_cast %167 : vector<16xf32> to vector<16x1xf32>
    %cst_43 = arith.constant 3.200000e+01 : f32
    %169 = vector.broadcast %cst_43 : f32 to vector<16x1xf32>
    %170 = arith.divf %168, %169 : vector<16x1xf32>
    %171 = vector.broadcast %170 : vector<16x1xf32> to vector<16x32xf32>
    %172 = arith.subf %162, %171 : vector<16x32xf32>
    %173 = arith.mulf %172, %172 : vector<16x32xf32>
    %cst_44 = arith.constant dense<0.000000e+00> : vector<16xf32>
    %174 = vector.multi_reduction <add>, %173, %cst_44 [1] : vector<16x32xf32> to vector<16xf32>
    %175 = vector.shape_cast %174 : vector<16xf32> to vector<16x1xf32>
    %cst_45 = arith.constant 3.200000e+01 : f32
    %176 = vector.broadcast %cst_45 : f32 to vector<16x1xf32>
    %177 = arith.divf %175, %176 : vector<16x1xf32>
    %178 = vector.broadcast %170 : vector<16x1xf32> to vector<16x32xf32>
    %179 = arith.subf %162, %178 : vector<16x32xf32>
    %cst_46 = arith.constant 9.99999974E-6 : f32
    %180 = vector.broadcast %cst_46 : f32 to vector<16x1xf32>
    %181 = arith.addf %177, %180 : vector<16x1xf32>
    %182 = math.rsqrt %181 : vector<16x1xf32>
    %183 = vector.broadcast %182 : vector<16x1xf32> to vector<16x32xf32>
    %184 = arith.mulf %179, %183 : vector<16x32xf32>
    %185 = vector.shape_cast %164 : vector<32xf32> to vector<1x32xf32>
    %186 = vector.broadcast %185 : vector<1x32xf32> to vector<16x32xf32>
    %187 = arith.mulf %184, %186 : vector<16x32xf32>
    %188 = vector.shape_cast %166 : vector<32xf32> to vector<1x32xf32>
    %189 = vector.broadcast %188 : vector<1x32xf32> to vector<16x32xf32>
    %190 = arith.addf %187, %189 : vector<16x32xf32>
    %c0_47 = arith.constant 0 : index
    %c0_48 = arith.constant 0 : index
    %c0_49 = arith.constant 0 : index
    %191 = vector.load %arg3[%c0_47, %c0_48, %c0_49] : memref<2x32x64xf32, #tpu.memory_space<vmem>>, vector<1x32x64xf32>
    %192 = vector.shape_cast %191 : vector<1x32x64xf32> to vector<32x64xf32>
    %cst_50 = arith.constant dense<0.000000e+00> : vector<16x64xf32>
    %193 = tpu.matmul %190, %192, %cst_50 {dimension_numbers = #tpu.dot_dimension_numbers<[1], [0], [0], [1], [0, 0, 1, 1], [], []>} : vector<16x32xf32>, vector<32x64xf32>, vector<16x64xf32> -> vector<16x64xf32>
    %194 = vector.extract_strided_slice %3 {offsets = [4, 0], sizes = [1, 64], strides = [1, 1]} : vector<8x128xf32> to vector<1x64xf32>
    %195 = vector.shape_cast %194 : vector<1x64xf32> to vector<64xf32>
    %196 = vector.shape_cast %195 : vector<64xf32> to vector<1x64xf32>
    %197 = vector.broadcast %196 : vector<1x64xf32> to vector<16x64xf32>
    %198 = arith.addf %193, %197 : vector<16x64xf32>
    %cst_51 = arith.constant 0.000000e+00 : f32
    %199 = vector.broadcast %cst_51 : f32 to vector<16x64xf32>
    %200 = arith.maximumf %198, %199 : vector<16x64xf32>
    %c0_52 = arith.constant 0 : index
    %c32 = arith.constant 32 : index
    %c0_53 = arith.constant 0 : index
    %201 = vector.load %arg4[%c0_52, %c32, %c0_53] : memref<2x96x32xf32, #tpu.memory_space<vmem>>, vector<1x64x32xf32>
    %202 = vector.shape_cast %201 : vector<1x64x32xf32> to vector<64x32xf32>
    %cst_54 = arith.constant dense<0.000000e+00> : vector<16x32xf32>
    %203 = tpu.matmul %200, %202, %cst_54 {dimension_numbers = #tpu.dot_dimension_numbers<[1], [0], [0], [1], [0, 0, 1, 1], [], []>} : vector<16x64xf32>, vector<64x32xf32>, vector<16x32xf32> -> vector<16x32xf32>
    %204 = vector.extract_strided_slice %3 {offsets = [5, 0], sizes = [1, 32], strides = [1, 1]} : vector<8x128xf32> to vector<1x32xf32>
    %205 = vector.shape_cast %204 : vector<1x32xf32> to vector<32xf32>
    %206 = vector.shape_cast %205 : vector<32xf32> to vector<1x32xf32>
    %207 = vector.broadcast %206 : vector<1x32xf32> to vector<16x32xf32>
    %208 = arith.addf %203, %207 : vector<16x32xf32>
    %209 = arith.addf %190, %208 : vector<16x32xf32>
    %210 = vector.extract_strided_slice %3 {offsets = [6, 0], sizes = [1, 32], strides = [1, 1]} : vector<8x128xf32> to vector<1x32xf32>
    %211 = vector.shape_cast %210 : vector<1x32xf32> to vector<32xf32>
    %212 = vector.extract_strided_slice %3 {offsets = [7, 0], sizes = [1, 32], strides = [1, 1]} : vector<8x128xf32> to vector<1x32xf32>
    %213 = vector.shape_cast %212 : vector<1x32xf32> to vector<32xf32>
    %cst_55 = arith.constant dense<0.000000e+00> : vector<16xf32>
    %214 = vector.multi_reduction <add>, %209, %cst_55 [1] : vector<16x32xf32> to vector<16xf32>
    %215 = vector.shape_cast %214 : vector<16xf32> to vector<16x1xf32>
    %cst_56 = arith.constant 3.200000e+01 : f32
    %216 = vector.broadcast %cst_56 : f32 to vector<16x1xf32>
    %217 = arith.divf %215, %216 : vector<16x1xf32>
    %218 = vector.broadcast %217 : vector<16x1xf32> to vector<16x32xf32>
    %219 = arith.subf %209, %218 : vector<16x32xf32>
    %220 = arith.mulf %219, %219 : vector<16x32xf32>
    %cst_57 = arith.constant dense<0.000000e+00> : vector<16xf32>
    %221 = vector.multi_reduction <add>, %220, %cst_57 [1] : vector<16x32xf32> to vector<16xf32>
    %222 = vector.shape_cast %221 : vector<16xf32> to vector<16x1xf32>
    %cst_58 = arith.constant 3.200000e+01 : f32
    %223 = vector.broadcast %cst_58 : f32 to vector<16x1xf32>
    %224 = arith.divf %222, %223 : vector<16x1xf32>
    %225 = vector.broadcast %217 : vector<16x1xf32> to vector<16x32xf32>
    %226 = arith.subf %209, %225 : vector<16x32xf32>
    %cst_59 = arith.constant 9.99999974E-6 : f32
    %227 = vector.broadcast %cst_59 : f32 to vector<16x1xf32>
    %228 = arith.addf %224, %227 : vector<16x1xf32>
    %229 = math.rsqrt %228 : vector<16x1xf32>
    %230 = vector.broadcast %229 : vector<16x1xf32> to vector<16x32xf32>
    %231 = arith.mulf %226, %230 : vector<16x32xf32>
    %232 = vector.shape_cast %211 : vector<32xf32> to vector<1x32xf32>
    %233 = vector.broadcast %232 : vector<1x32xf32> to vector<16x32xf32>
    %234 = arith.mulf %231, %233 : vector<16x32xf32>
    %235 = vector.shape_cast %213 : vector<32xf32> to vector<1x32xf32>
    %236 = vector.broadcast %235 : vector<1x32xf32> to vector<16x32xf32>
    %237 = arith.addf %234, %236 : vector<16x32xf32>
    %c1_60 = arith.constant 1 : index
    %c0_61 = arith.constant 0 : index
    %c0_62 = arith.constant 0 : index
    %238 = vector.load %arg5[%c1_60, %c0_61, %c0_62] : memref<3x8x128xf32, #tpu.memory_space<vmem>>, vector<1x8x128xf32>
    %239 = vector.shape_cast %238 : vector<1x8x128xf32> to vector<8x128xf32>
    %c1_63 = arith.constant 1 : index
    %c0_64 = arith.constant 0 : index
    %c0_65 = arith.constant 0 : index
    %240 = vector.load %arg2[%c1_63, %c0_64, %c0_65] : memref<2x32x128xf32, #tpu.memory_space<vmem>>, vector<1x32x128xf32>
    %241 = vector.shape_cast %240 : vector<1x32x128xf32> to vector<32x128xf32>
    %cst_66 = arith.constant dense<0.000000e+00> : vector<16x128xf32>
    %242 = tpu.matmul %237, %241, %cst_66 {dimension_numbers = #tpu.dot_dimension_numbers<[1], [0], [0], [1], [0, 0, 1, 1], [], []>} : vector<16x32xf32>, vector<32x128xf32>, vector<16x128xf32> -> vector<16x128xf32>
    %243 = vector.extract_strided_slice %239 {offsets = [0, 0], sizes = [1, 128], strides = [1, 1]} : vector<8x128xf32> to vector<1x128xf32>
    %244 = vector.shape_cast %243 : vector<1x128xf32> to vector<128xf32>
    %245 = vector.shape_cast %244 : vector<128xf32> to vector<1x128xf32>
    %246 = vector.broadcast %245 : vector<1x128xf32> to vector<16x128xf32>
    %247 = arith.addf %242, %246 : vector<16x128xf32>
    %248 = vector.extract_strided_slice %247 {offsets = [0, 96], sizes = [16, 4], strides = [1, 1]} : vector<16x128xf32> to vector<16x4xf32>
    %cst_67 = arith.constant 5.000000e+00 : f32
    %249 = vector.broadcast %cst_67 : f32 to vector<16x4xf32>
    %250 = arith.mulf %248, %249 : vector<16x4xf32>
    %251 = arith.negf %250 : vector<16x4xf32>
    %252 = math.exp %251 : vector<16x4xf32>
    %cst_68 = arith.constant 1.000000e+00 : f32
    %253 = vector.broadcast %cst_68 : f32 to vector<16x4xf32>
    %254 = arith.addf %253, %252 : vector<16x4xf32>
    %255 = arith.divf %253, %254 : vector<16x4xf32>
    %cst_69 = arith.constant 9.99999974E-6 : f32
    %256 = vector.broadcast %cst_69 : f32 to vector<16x4xf32>
    %257 = arith.addf %255, %256 : vector<16x4xf32>
    %cst_70 = arith.constant 1.09861231 : f32
    %258 = vector.broadcast %cst_70 : f32 to vector<16x4xf32>
    %259 = arith.mulf %257, %258 : vector<16x4xf32>
    %260 = math.exp %259 : vector<16x4xf32>
    %cst_71 = arith.constant 1.000000e+00 : f32
    %261 = vector.broadcast %cst_71 : f32 to vector<16x4xf32>
    %262 = arith.subf %260, %261 : vector<16x4xf32>
    %263 = vector.extract_strided_slice %247 {offsets = [0, 0], sizes = [8, 32], strides = [1, 1]} : vector<16x128xf32> to vector<8x32xf32>
    %264 = vector.shape_cast %263 : vector<8x32xf32> to vector<8x4x8xf32>
    %265 = vector.extract_strided_slice %247 {offsets = [0, 32], sizes = [8, 32], strides = [1, 1]} : vector<16x128xf32> to vector<8x32xf32>
    %266 = vector.shape_cast %265 : vector<8x32xf32> to vector<8x4x8xf32>
    %267 = vector.extract_strided_slice %247 {offsets = [0, 64], sizes = [8, 32], strides = [1, 1]} : vector<16x128xf32> to vector<8x32xf32>
    %268 = vector.shape_cast %267 : vector<8x32xf32> to vector<8x4x8xf32>
    "tpu.trace_start"() <{level = 10 : i32, message = "lhe,she->hls"}> : () -> ()
    %cst_72 = arith.constant dense<0.000000e+00> : vector<4x8x8xf32>
    %269 = tpu.matmul %264, %266, %cst_72 {dimension_numbers = #tpu.dot_dimension_numbers<[2], [2], [0], [0], [0, 1, 0, 0, 1, 0], [1], [1]>} : vector<8x4x8xf32>, vector<8x4x8xf32>, vector<4x8x8xf32> -> vector<4x8x8xf32>
    "tpu.trace_stop"() : () -> ()
    %cst_73 = arith.constant dense<0xFF800000> : vector<4x8xf32>
    %270 = vector.multi_reduction <maximumf>, %269, %cst_73 [2] : vector<4x8x8xf32> to vector<4x8xf32>
    %271 = vector.shape_cast %270 : vector<4x8xf32> to vector<4x8x1xf32>
    %272 = vector.broadcast %271 : vector<4x8x1xf32> to vector<4x8x8xf32>
    %273 = arith.subf %269, %272 : vector<4x8x8xf32>
    %274 = math.exp %273 : vector<4x8x8xf32>
    %cst_74 = arith.constant dense<0.000000e+00> : vector<4x8xf32>
    %275 = vector.multi_reduction <add>, %274, %cst_74 [2] : vector<4x8x8xf32> to vector<4x8xf32>
    %276 = vector.shape_cast %275 : vector<4x8xf32> to vector<4x8x1xf32>
    %277 = tpu.reciprocal %276 {approx = true} : vector<4x8x1xf32> -> vector<4x8x1xf32>
    %278 = arith.mulf %276, %277 : vector<4x8x1xf32>
    %cst_75 = arith.constant 2.000000e+00 : f32
    %279 = vector.broadcast %cst_75 : f32 to vector<4x8x1xf32>
    %280 = arith.subf %279, %278 : vector<4x8x1xf32>
    %281 = arith.mulf %277, %280 : vector<4x8x1xf32>
    %282 = vector.broadcast %281 : vector<4x8x1xf32> to vector<4x8x8xf32>
    %283 = arith.mulf %274, %282 : vector<4x8x8xf32>
    %284 = vector.extract_strided_slice %262 {offsets = [0, 0], sizes = [8, 4], strides = [1, 1]} : vector<16x4xf32> to vector<8x4xf32>
    %285 = tpu.transpose %284, [1, 0] : vector<8x4xf32> -> vector<4x8xf32>
    %c1_76 = arith.constant 1 : index
    %c0_77 = arith.constant 0 : index
    %c0_78 = arith.constant 0 : index
    %c0_79 = arith.constant 0 : index
    %286 = vector.load %arg8[%c1_76, %c0_77, %c0_78, %c0_79] : memref<2x2x4x8xf32, #tpu.memory_space<vmem>>, vector<1x1x4x8xf32>
    %287 = vector.shape_cast %286 : vector<1x1x4x8xf32> to vector<4x8xf32>
    %288 = vector.shape_cast %285 : vector<4x8xf32> to vector<1x1x4x8xf32>
    tpu.vector_store %arg8[%c1_76, %c0_77, %c0_78, %c0_79], %288 {strides = array<i32>} : memref<2x2x4x8xf32, #tpu.memory_space<vmem>>, vector<1x1x4x8xf32>,
    %289 = tpu.reciprocal %285 {approx = true} : vector<4x8xf32> -> vector<4x8xf32>
    %290 = arith.mulf %285, %289 : vector<4x8xf32>
    %cst_80 = arith.constant 2.000000e+00 : f32
    %291 = vector.broadcast %cst_80 : f32 to vector<4x8xf32>
    %292 = arith.subf %291, %290 : vector<4x8xf32>
    %293 = arith.mulf %289, %292 : vector<4x8xf32>
    %294 = vector.shape_cast %293 : vector<4x8xf32> to vector<4x8x1xf32>
    %cst_81 = arith.constant 0.398942292 : f32
    %295 = vector.broadcast %cst_81 : f32 to vector<4x8x1xf32>
    %296 = arith.mulf %295, %294 : vector<4x8x1xf32>
    %297 = vector.shape_cast %1 : vector<8x8xf32> to vector<1x8x8xf32>
    %298 = arith.mulf %294, %294 : vector<4x8x1xf32>
    %299 = vector.broadcast %297 : vector<1x8x8xf32> to vector<4x8x8xf32>
    %300 = vector.broadcast %298 : vector<4x8x1xf32> to vector<4x8x8xf32>
    %301 = arith.mulf %299, %300 : vector<4x8x8xf32>
    %302 = math.exp %301 : vector<4x8x8xf32>
    %303 = vector.broadcast %296 : vector<4x8x1xf32> to vector<4x8x8xf32>
    %304 = arith.mulf %303, %302 : vector<4x8x8xf32>
    %305 = vector.extract_strided_slice %283 {offsets = [0, 0, 0], sizes = [1, 8, 8], strides = [1, 1, 1]} : vector<4x8x8xf32> to vector<1x8x8xf32>
    %306 = vector.shape_cast %305 : vector<1x8x8xf32> to vector<8x8xf32>
    %307 = vector.extract_strided_slice %304 {offsets = [0, 0, 0], sizes = [1, 8, 8], strides = [1, 1, 1]} : vector<4x8x8xf32> to vector<1x8x8xf32>
    %308 = vector.shape_cast %307 : vector<1x8x8xf32> to vector<8x8xf32>
    %309 = vector.extract_strided_slice %283 {offsets = [1, 0, 0], sizes = [1, 8, 8], strides = [1, 1, 1]} : vector<4x8x8xf32> to vector<1x8x8xf32>
    %310 = vector.shape_cast %309 : vector<1x8x8xf32> to vector<8x8xf32>
    %311 = vector.extract_strided_slice %304 {offsets = [1, 0, 0], sizes = [1, 8, 8], strides = [1, 1, 1]} : vector<4x8x8xf32> to vector<1x8x8xf32>
    %312 = vector.shape_cast %311 : vector<1x8x8xf32> to vector<8x8xf32>
    %313 = vector.extract_strided_slice %283 {offsets = [2, 0, 0], sizes = [1, 8, 8], strides = [1, 1, 1]} : vector<4x8x8xf32> to vector<1x8x8xf32>
    %314 = vector.shape_cast %313 : vector<1x8x8xf32> to vector<8x8xf32>
    %315 = vector.extract_strided_slice %304 {offsets = [2, 0, 0], sizes = [1, 8, 8], strides = [1, 1, 1]} : vector<4x8x8xf32> to vector<1x8x8xf32>
    %316 = vector.shape_cast %315 : vector<1x8x8xf32> to vector<8x8xf32>
    %317 = vector.extract_strided_slice %283 {offsets = [3, 0, 0], sizes = [1, 8, 8], strides = [1, 1, 1]} : vector<4x8x8xf32> to vector<1x8x8xf32>
    %318 = vector.shape_cast %317 : vector<1x8x8xf32> to vector<8x8xf32>
    %319 = vector.extract_strided_slice %304 {offsets = [3, 0, 0], sizes = [1, 8, 8], strides = [1, 1, 1]} : vector<4x8x8xf32> to vector<1x8x8xf32>
    %320 = vector.shape_cast %319 : vector<1x8x8xf32> to vector<8x8xf32>
    "tpu.trace_start"() <{level = 10 : i32, message = "hls,she->lhe"}> : () -> ()
    %cst_82 = arith.constant dense<0.000000e+00> : vector<4x8x8xf32>
    %321 = tpu.matmul %268, %283, %cst_82 {dimension_numbers = #tpu.dot_dimension_numbers<[0], [2], [2], [1], [0, 1, 0, 2, 1, 1], [1], [0]>} : vector<8x4x8xf32>, vector<4x8x8xf32>, vector<4x8x8xf32> -> vector<4x8x8xf32>
    %322 = tpu.transpose %321, [2, 0, 1] : vector<4x8x8xf32> -> vector<8x4x8xf32>
    "tpu.trace_stop"() : () -> ()
    %323 = vector.shape_cast %322 : vector<8x4x8xf32> to vector<8x32xf32>
    %324 = vector.extract_strided_slice %247 {offsets = [8, 0], sizes = [8, 32], strides = [1, 1]} : vector<16x128xf32> to vector<8x32xf32>
    %325 = vector.shape_cast %324 : vector<8x32xf32> to vector<8x4x8xf32>
    %326 = vector.extract_strided_slice %247 {offsets = [8, 32], sizes = [8, 32], strides = [1, 1]} : vector<16x128xf32> to vector<8x32xf32>
    %327 = vector.shape_cast %326 : vector<8x32xf32> to vector<8x4x8xf32>
    %328 = vector.extract_strided_slice %247 {offsets = [8, 64], sizes = [8, 32], strides = [1, 1]} : vector<16x128xf32> to vector<8x32xf32>
    %329 = vector.shape_cast %328 : vector<8x32xf32> to vector<8x4x8xf32>
    "tpu.trace_start"() <{level = 10 : i32, message = "lhe,she->hls"}> : () -> ()
    %cst_83 = arith.constant dense<0.000000e+00> : vector<4x8x8xf32>
    %330 = tpu.matmul %325, %327, %cst_83 {dimension_numbers = #tpu.dot_dimension_numbers<[2], [2], [0], [0], [0, 1, 0, 0, 1, 0], [1], [1]>} : vector<8x4x8xf32>, vector<8x4x8xf32>, vector<4x8x8xf32> -> vector<4x8x8xf32>
    "tpu.trace_stop"() : () -> ()
    %cst_84 = arith.constant dense<0xFF800000> : vector<4x8xf32>
    %331 = vector.multi_reduction <maximumf>, %330, %cst_84 [2] : vector<4x8x8xf32> to vector<4x8xf32>
    %332 = vector.shape_cast %331 : vector<4x8xf32> to vector<4x8x1xf32>
    %333 = vector.broadcast %332 : vector<4x8x1xf32> to vector<4x8x8xf32>
    %334 = arith.subf %330, %333 : vector<4x8x8xf32>
    %335 = math.exp %334 : vector<4x8x8xf32>
    %cst_85 = arith.constant dense<0.000000e+00> : vector<4x8xf32>
    %336 = vector.multi_reduction <add>, %335, %cst_85 [2] : vector<4x8x8xf32> to vector<4x8xf32>
    %337 = vector.shape_cast %336 : vector<4x8xf32> to vector<4x8x1xf32>
    %338 = tpu.reciprocal %337 {approx = true} : vector<4x8x1xf32> -> vector<4x8x1xf32>
    %339 = arith.mulf %337, %338 : vector<4x8x1xf32>
    %cst_86 = arith.constant 2.000000e+00 : f32
    %340 = vector.broadcast %cst_86 : f32 to vector<4x8x1xf32>
    %341 = arith.subf %340, %339 : vector<4x8x1xf32>
    %342 = arith.mulf %338, %341 : vector<4x8x1xf32>
    %343 = vector.broadcast %342 : vector<4x8x1xf32> to vector<4x8x8xf32>
    %344 = arith.mulf %335, %343 : vector<4x8x8xf32>
    %345 = vector.extract_strided_slice %262 {offsets = [8, 0], sizes = [8, 4], strides = [1, 1]} : vector<16x4xf32> to vector<8x4xf32>
    %346 = tpu.transpose %345, [1, 0] : vector<8x4xf32> -> vector<4x8xf32>
    %c1_87 = arith.constant 1 : index
    %c1_88 = arith.constant 1 : index
    %c0_89 = arith.constant 0 : index
    %c0_90 = arith.constant 0 : index
    %347 = vector.load %arg8[%c1_87, %c1_88, %c0_89, %c0_90] : memref<2x2x4x8xf32, #tpu.memory_space<vmem>>, vector<1x1x4x8xf32>
    %348 = vector.shape_cast %347 : vector<1x1x4x8xf32> to vector<4x8xf32>
    %349 = vector.shape_cast %346 : vector<4x8xf32> to vector<1x1x4x8xf32>
    tpu.vector_store %arg8[%c1_87, %c1_88, %c0_89, %c0_90], %349 {strides = array<i32>} : memref<2x2x4x8xf32, #tpu.memory_space<vmem>>, vector<1x1x4x8xf32>,
    %350 = tpu.reciprocal %346 {approx = true} : vector<4x8xf32> -> vector<4x8xf32>
    %351 = arith.mulf %346, %350 : vector<4x8xf32>
    %cst_91 = arith.constant 2.000000e+00 : f32
    %352 = vector.broadcast %cst_91 : f32 to vector<4x8xf32>
    %353 = arith.subf %352, %351 : vector<4x8xf32>
    %354 = arith.mulf %350, %353 : vector<4x8xf32>
    %355 = vector.shape_cast %354 : vector<4x8xf32> to vector<4x8x1xf32>
    %cst_92 = arith.constant 0.398942292 : f32
    %356 = vector.broadcast %cst_92 : f32 to vector<4x8x1xf32>
    %357 = arith.mulf %356, %355 : vector<4x8x1xf32>
    %358 = vector.shape_cast %1 : vector<8x8xf32> to vector<1x8x8xf32>
    %359 = arith.mulf %355, %355 : vector<4x8x1xf32>
    %360 = vector.broadcast %358 : vector<1x8x8xf32> to vector<4x8x8xf32>
    %361 = vector.broadcast %359 : vector<4x8x1xf32> to vector<4x8x8xf32>
    %362 = arith.mulf %360, %361 : vector<4x8x8xf32>
    %363 = math.exp %362 : vector<4x8x8xf32>
    %364 = vector.broadcast %357 : vector<4x8x1xf32> to vector<4x8x8xf32>
    %365 = arith.mulf %364, %363 : vector<4x8x8xf32>
    %366 = vector.extract_strided_slice %344 {offsets = [0, 0, 0], sizes = [1, 8, 8], strides = [1, 1, 1]} : vector<4x8x8xf32> to vector<1x8x8xf32>
    %367 = vector.shape_cast %366 : vector<1x8x8xf32> to vector<8x8xf32>
    %368 = vector.extract_strided_slice %365 {offsets = [0, 0, 0], sizes = [1, 8, 8], strides = [1, 1, 1]} : vector<4x8x8xf32> to vector<1x8x8xf32>
    %369 = vector.shape_cast %368 : vector<1x8x8xf32> to vector<8x8xf32>
    %370 = vector.extract_strided_slice %344 {offsets = [1, 0, 0], sizes = [1, 8, 8], strides = [1, 1, 1]} : vector<4x8x8xf32> to vector<1x8x8xf32>
    %371 = vector.shape_cast %370 : vector<1x8x8xf32> to vector<8x8xf32>
    %372 = vector.extract_strided_slice %365 {offsets = [1, 0, 0], sizes = [1, 8, 8], strides = [1, 1, 1]} : vector<4x8x8xf32> to vector<1x8x8xf32>
    %373 = vector.shape_cast %372 : vector<1x8x8xf32> to vector<8x8xf32>
    %374 = vector.extract_strided_slice %344 {offsets = [2, 0, 0], sizes = [1, 8, 8], strides = [1, 1, 1]} : vector<4x8x8xf32> to vector<1x8x8xf32>
    %375 = vector.shape_cast %374 : vector<1x8x8xf32> to vector<8x8xf32>
    %376 = vector.extract_strided_slice %365 {offsets = [2, 0, 0], sizes = [1, 8, 8], strides = [1, 1, 1]} : vector<4x8x8xf32> to vector<1x8x8xf32>
    %377 = vector.shape_cast %376 : vector<1x8x8xf32> to vector<8x8xf32>
    %378 = vector.extract_strided_slice %344 {offsets = [3, 0, 0], sizes = [1, 8, 8], strides = [1, 1, 1]} : vector<4x8x8xf32> to vector<1x8x8xf32>
    %379 = vector.shape_cast %378 : vector<1x8x8xf32> to vector<8x8xf32>
    %380 = vector.extract_strided_slice %365 {offsets = [3, 0, 0], sizes = [1, 8, 8], strides = [1, 1, 1]} : vector<4x8x8xf32> to vector<1x8x8xf32>
    %381 = vector.shape_cast %380 : vector<1x8x8xf32> to vector<8x8xf32>
    "tpu.trace_start"() <{level = 10 : i32, message = "hls,she->lhe"}> : () -> ()
    %cst_93 = arith.constant dense<0.000000e+00> : vector<4x8x8xf32>
    %382 = tpu.matmul %329, %344, %cst_93 {dimension_numbers = #tpu.dot_dimension_numbers<[0], [2], [2], [1], [0, 1, 0, 2, 1, 1], [1], [0]>} : vector<8x4x8xf32>, vector<4x8x8xf32>, vector<4x8x8xf32> -> vector<4x8x8xf32>
    %383 = tpu.transpose %382, [2, 0, 1] : vector<4x8x8xf32> -> vector<8x4x8xf32>
    "tpu.trace_stop"() : () -> ()
    %384 = vector.shape_cast %383 : vector<8x4x8xf32> to vector<8x32xf32>
    %385 = tpu.concatenate %306, %310, %314, %318, %367, %371, %375, %379, %308, %312, %316, %320, %369, %373, %377, %381 in 1 : vector<8x8xf32>, vector<8x8xf32>, vector<8x8xf32>, vector<8x8xf32>, vector<8x8xf32>, vector<8x8xf32>, vector<8x8xf32>, vector<8x8xf32>, vector<8x8xf32>, vector<8x8xf32>, vector<8x8xf32>, vector<8x8xf32>, vector<8x8xf32>, vector<8x8xf32>, vector<8x8xf32>, vector<8x8xf32> -> vector<8x128xf32>
    %c1_94 = arith.constant 1 : index
    %c0_95 = arith.constant 0 : index
    %c0_96 = arith.constant 0 : index
    %386 = vector.load %arg7[%c1_94, %c0_95, %c0_96] : memref<2x8x128xf32, #tpu.memory_space<vmem>>, vector<1x8x128xf32>
    %387 = vector.shape_cast %386 : vector<1x8x128xf32> to vector<8x128xf32>
    %388 = vector.shape_cast %385 : vector<8x128xf32> to vector<1x8x128xf32>
    tpu.vector_store %arg7[%c1_94, %c0_95, %c0_96], %388 {strides = array<i32>} : memref<2x8x128xf32, #tpu.memory_space<vmem>>, vector<1x8x128xf32>,
    %389 = tpu.concatenate %323, %384 in 0 : vector<8x32xf32>, vector<8x32xf32> -> vector<16x32xf32>
    %c1_97 = arith.constant 1 : index
    %c0_98 = arith.constant 0 : index
    %c0_99 = arith.constant 0 : index
    %390 = vector.load %arg4[%c1_97, %c0_98, %c0_99] : memref<2x96x32xf32, #tpu.memory_space<vmem>>, vector<1x32x32xf32>
    %391 = vector.shape_cast %390 : vector<1x32x32xf32> to vector<32x32xf32>
    %cst_100 = arith.constant dense<0.000000e+00> : vector<16x32xf32>
    %392 = tpu.matmul %389, %391, %cst_100 {dimension_numbers = #tpu.dot_dimension_numbers<[1], [0], [0], [1], [0, 0, 1, 1], [], []>} : vector<16x32xf32>, vector<32x32xf32>, vector<16x32xf32> -> vector<16x32xf32>
    %393 = vector.extract_strided_slice %239 {offsets = [1, 0], sizes = [1, 32], strides = [1, 1]} : vector<8x128xf32> to vector<1x32xf32>
    %394 = vector.shape_cast %393 : vector<1x32xf32> to vector<32xf32>
    %395 = vector.shape_cast %394 : vector<32xf32> to vector<1x32xf32>
    %396 = vector.broadcast %395 : vector<1x32xf32> to vector<16x32xf32>
    %397 = arith.addf %392, %396 : vector<16x32xf32>
    %398 = arith.addf %237, %397 : vector<16x32xf32>
    %399 = vector.extract_strided_slice %239 {offsets = [2, 0], sizes = [1, 32], strides = [1, 1]} : vector<8x128xf32> to vector<1x32xf32>
    %400 = vector.shape_cast %399 : vector<1x32xf32> to vector<32xf32>
    %401 = vector.extract_strided_slice %239 {offsets = [3, 0], sizes = [1, 32], strides = [1, 1]} : vector<8x128xf32> to vector<1x32xf32>
    %402 = vector.shape_cast %401 : vector<1x32xf32> to vector<32xf32>
    %cst_101 = arith.constant dense<0.000000e+00> : vector<16xf32>
    %403 = vector.multi_reduction <add>, %398, %cst_101 [1] : vector<16x32xf32> to vector<16xf32>
    %404 = vector.shape_cast %403 : vector<16xf32> to vector<16x1xf32>
    %cst_102 = arith.constant 3.200000e+01 : f32
    %405 = vector.broadcast %cst_102 : f32 to vector<16x1xf32>
    %406 = arith.divf %404, %405 : vector<16x1xf32>
    %407 = vector.broadcast %406 : vector<16x1xf32> to vector<16x32xf32>
    %408 = arith.subf %398, %407 : vector<16x32xf32>
    %409 = arith.mulf %408, %408 : vector<16x32xf32>
    %cst_103 = arith.constant dense<0.000000e+00> : vector<16xf32>
    %410 = vector.multi_reduction <add>, %409, %cst_103 [1] : vector<16x32xf32> to vector<16xf32>
    %411 = vector.shape_cast %410 : vector<16xf32> to vector<16x1xf32>
    %cst_104 = arith.constant 3.200000e+01 : f32
    %412 = vector.broadcast %cst_104 : f32 to vector<16x1xf32>
    %413 = arith.divf %411, %412 : vector<16x1xf32>
    %414 = vector.broadcast %406 : vector<16x1xf32> to vector<16x32xf32>
    %415 = arith.subf %398, %414 : vector<16x32xf32>
    %cst_105 = arith.constant 9.99999974E-6 : f32
    %416 = vector.broadcast %cst_105 : f32 to vector<16x1xf32>
    %417 = arith.addf %413, %416 : vector<16x1xf32>
    %418 = math.rsqrt %417 : vector<16x1xf32>
    %419 = vector.broadcast %418 : vector<16x1xf32> to vector<16x32xf32>
    %420 = arith.mulf %415, %419 : vector<16x32xf32>
    %421 = vector.shape_cast %400 : vector<32xf32> to vector<1x32xf32>
    %422 = vector.broadcast %421 : vector<1x32xf32> to vector<16x32xf32>
    %423 = arith.mulf %420, %422 : vector<16x32xf32>
    %424 = vector.shape_cast %402 : vector<32xf32> to vector<1x32xf32>
    %425 = vector.broadcast %424 : vector<1x32xf32> to vector<16x32xf32>
    %426 = arith.addf %423, %425 : vector<16x32xf32>
    %c1_106 = arith.constant 1 : index
    %c0_107 = arith.constant 0 : index
    %c0_108 = arith.constant 0 : index
    %427 = vector.load %arg3[%c1_106, %c0_107, %c0_108] : memref<2x32x64xf32, #tpu.memory_space<vmem>>, vector<1x32x64xf32>
    %428 = vector.shape_cast %427 : vector<1x32x64xf32> to vector<32x64xf32>
    %cst_109 = arith.constant dense<0.000000e+00> : vector<16x64xf32>
    %429 = tpu.matmul %426, %428, %cst_109 {dimension_numbers = #tpu.dot_dimension_numbers<[1], [0], [0], [1], [0, 0, 1, 1], [], []>} : vector<16x32xf32>, vector<32x64xf32>, vector<16x64xf32> -> vector<16x64xf32>
    %430 = vector.extract_strided_slice %239 {offsets = [4, 0], sizes = [1, 64], strides = [1, 1]} : vector<8x128xf32> to vector<1x64xf32>
    %431 = vector.shape_cast %430 : vector<1x64xf32> to vector<64xf32>
    %432 = vector.shape_cast %431 : vector<64xf32> to vector<1x64xf32>
    %433 = vector.broadcast %432 : vector<1x64xf32> to vector<16x64xf32>
    %434 = arith.addf %429, %433 : vector<16x64xf32>
    %cst_110 = arith.constant 0.000000e+00 : f32
    %435 = vector.broadcast %cst_110 : f32 to vector<16x64xf32>
    %436 = arith.maximumf %434, %435 : vector<16x64xf32>
    %c1_111 = arith.constant 1 : index
    %c32_112 = arith.constant 32 : index
    %c0_113 = arith.constant 0 : index
    %437 = vector.load %arg4[%c1_111, %c32_112, %c0_113] : memref<2x96x32xf32, #tpu.memory_space<vmem>>, vector<1x64x32xf32>
    %438 = vector.shape_cast %437 : vector<1x64x32xf32> to vector<64x32xf32>
    %cst_114 = arith.constant dense<0.000000e+00> : vector<16x32xf32>
    %439 = tpu.matmul %436, %438, %cst_114 {dimension_numbers = #tpu.dot_dimension_numbers<[1], [0], [0], [1], [0, 0, 1, 1], [], []>} : vector<16x64xf32>, vector<64x32xf32>, vector<16x32xf32> -> vector<16x32xf32>
    %440 = vector.extract_strided_slice %239 {offsets = [5, 0], sizes = [1, 32], strides = [1, 1]} : vector<8x128xf32> to vector<1x32xf32>
    %441 = vector.shape_cast %440 : vector<1x32xf32> to vector<32xf32>
    %442 = vector.shape_cast %441 : vector<32xf32> to vector<1x32xf32>
    %443 = vector.broadcast %442 : vector<1x32xf32> to vector<16x32xf32>
    %444 = arith.addf %439, %443 : vector<16x32xf32>
    %445 = arith.addf %426, %444 : vector<16x32xf32>
    %446 = vector.extract_strided_slice %239 {offsets = [6, 0], sizes = [1, 32], strides = [1, 1]} : vector<8x128xf32> to vector<1x32xf32>
    %447 = vector.shape_cast %446 : vector<1x32xf32> to vector<32xf32>
    %448 = vector.extract_strided_slice %239 {offsets = [7, 0], sizes = [1, 32], strides = [1, 1]} : vector<8x128xf32> to vector<1x32xf32>
    %449 = vector.shape_cast %448 : vector<1x32xf32> to vector<32xf32>
    %cst_115 = arith.constant dense<0.000000e+00> : vector<16xf32>
    %450 = vector.multi_reduction <add>, %445, %cst_115 [1] : vector<16x32xf32> to vector<16xf32>
    %451 = vector.shape_cast %450 : vector<16xf32> to vector<16x1xf32>
    %cst_116 = arith.constant 3.200000e+01 : f32
    %452 = vector.broadcast %cst_116 : f32 to vector<16x1xf32>
    %453 = arith.divf %451, %452 : vector<16x1xf32>
    %454 = vector.broadcast %453 : vector<16x1xf32> to vector<16x32xf32>
    %455 = arith.subf %445, %454 : vector<16x32xf32>
    %456 = arith.mulf %455, %455 : vector<16x32xf32>
    %cst_117 = arith.constant dense<0.000000e+00> : vector<16xf32>
    %457 = vector.multi_reduction <add>, %456, %cst_117 [1] : vector<16x32xf32> to vector<16xf32>
    %458 = vector.shape_cast %457 : vector<16xf32> to vector<16x1xf32>
    %cst_118 = arith.constant 3.200000e+01 : f32
    %459 = vector.broadcast %cst_118 : f32 to vector<16x1xf32>
    %460 = arith.divf %458, %459 : vector<16x1xf32>
    %461 = vector.broadcast %453 : vector<16x1xf32> to vector<16x32xf32>
    %462 = arith.subf %445, %461 : vector<16x32xf32>
    %cst_119 = arith.constant 9.99999974E-6 : f32
    %463 = vector.broadcast %cst_119 : f32 to vector<16x1xf32>
    %464 = arith.addf %460, %463 : vector<16x1xf32>
    %465 = math.rsqrt %464 : vector<16x1xf32>
    %466 = vector.broadcast %465 : vector<16x1xf32> to vector<16x32xf32>
    %467 = arith.mulf %462, %466 : vector<16x32xf32>
    %468 = vector.shape_cast %447 : vector<32xf32> to vector<1x32xf32>
    %469 = vector.broadcast %468 : vector<1x32xf32> to vector<16x32xf32>
    %470 = arith.mulf %467, %469 : vector<16x32xf32>
    %471 = vector.shape_cast %449 : vector<32xf32> to vector<1x32xf32>
    %472 = vector.broadcast %471 : vector<1x32xf32> to vector<16x32xf32>
    %473 = arith.addf %470, %472 : vector<16x32xf32>
    %c2 = arith.constant 2 : index
    %c0_120 = arith.constant 0 : index
    %c0_121 = arith.constant 0 : index
    %474 = vector.load %arg5[%c2, %c0_120, %c0_121] : memref<3x8x128xf32, #tpu.memory_space<vmem>>, vector<1x1x32xf32>
    %475 = vector.shape_cast %474 : vector<1x1x32xf32> to vector<32xf32>
    %c2_122 = arith.constant 2 : index
    %c1_123 = arith.constant 1 : index
    %c0_124 = arith.constant 0 : index
    %476 = vector.load %arg5[%c2_122, %c1_123, %c0_124] : memref<3x8x128xf32, #tpu.memory_space<vmem>>, vector<1x1x32xf32>
    %477 = vector.shape_cast %476 : vector<1x1x32xf32> to vector<32xf32>
    %cst_125 = arith.constant dense<0.000000e+00> : vector<16xf32>
    %478 = vector.multi_reduction <add>, %473, %cst_125 [1] : vector<16x32xf32> to vector<16xf32>
    %479 = vector.shape_cast %478 : vector<16xf32> to vector<16x1xf32>
    %cst_126 = arith.constant 3.200000e+01 : f32
    %480 = vector.broadcast %cst_126 : f32 to vector<16x1xf32>
    %481 = arith.divf %479, %480 : vector<16x1xf32>
    %482 = vector.broadcast %481 : vector<16x1xf32> to vector<16x32xf32>
    %483 = arith.subf %473, %482 : vector<16x32xf32>
    %484 = arith.mulf %483, %483 : vector<16x32xf32>
    %cst_127 = arith.constant dense<0.000000e+00> : vector<16xf32>
    %485 = vector.multi_reduction <add>, %484, %cst_127 [1] : vector<16x32xf32> to vector<16xf32>
    %486 = vector.shape_cast %485 : vector<16xf32> to vector<16x1xf32>
    %cst_128 = arith.constant 3.200000e+01 : f32
    %487 = vector.broadcast %cst_128 : f32 to vector<16x1xf32>
    %488 = arith.divf %486, %487 : vector<16x1xf32>
    %489 = vector.broadcast %481 : vector<16x1xf32> to vector<16x32xf32>
    %490 = arith.subf %473, %489 : vector<16x32xf32>
    %cst_129 = arith.constant 9.99999974E-6 : f32
    %491 = vector.broadcast %cst_129 : f32 to vector<16x1xf32>
    %492 = arith.addf %488, %491 : vector<16x1xf32>
    %493 = math.rsqrt %492 : vector<16x1xf32>
    %494 = vector.broadcast %493 : vector<16x1xf32> to vector<16x32xf32>
    %495 = arith.mulf %490, %494 : vector<16x32xf32>
    %496 = vector.shape_cast %475 : vector<32xf32> to vector<1x32xf32>
    %497 = vector.broadcast %496 : vector<1x32xf32> to vector<16x32xf32>
    %498 = arith.mulf %495, %497 : vector<16x32xf32>
    %499 = vector.shape_cast %477 : vector<32xf32> to vector<1x32xf32>
    %500 = vector.broadcast %499 : vector<1x32xf32> to vector<16x32xf32>
    %501 = arith.addf %498, %500 : vector<16x32xf32>
    %c0_130 = arith.constant 0 : index
    %c0_131 = arith.constant 0 : index
    %502 = vector.load %arg6[%c0_130, %c0_131] : memref<16x32xf32, #tpu.memory_space<vmem>>, vector<16x32xf32>
    tpu.vector_store %arg6[%c0_130, %c0_131], %501 {strides = array<i32>} : memref<16x32xf32, #tpu.memory_space<vmem>>, vector<16x32xf32>,
    return
  }
}

</mosaic_0001>

<bundles_post_ra>
// kernel: encoder_forward.1
= control target key start
LH: loop header
LB: loop body
LE: loop exit
PB: predicated region body
PF: predicated region fallthrough
CT: control target
= control target key end

     0   :  { %vm39_vm0 = vcmask 261120   ;;  %s8213_s0 = inlined_call_operand.vmem [shape: f32[16,32], index: 0, kind: input, shape index: {}]   ;;  %s8214_s1 = inlined_call_operand.vmem [shape: f32[8,8], index: 1, kind: input, shape index: {}]   ;;  %s8215_s2 = inlined_call_operand.vmem [shape: f32[2,32,128], index: 2, kind: input, shape index: {}]   ;;  %s8216_s3 = inlined_call_operand.vmem [shape: f32[2,32,64], index: 3, kind: input, shape index: {}]   ;;  %s8217_s4 = inlined_call_operand.vmem [shape: f32[2,96,32], index: 4, kind: input, shape index: {}]   ;;  %s8218_s5 = inlined_call_operand.vmem [shape: f32[3,8,128], index: 5, kind: input, shape index: {}]   ;;  %s8219_s6 = inlined_call_operand.hbm [shape: f32[16,32], index: 6, kind: output, shape index: {0}]   ;;  %s8220_s7 = inlined_call_operand.vmem [shape: f32[2,8,128], index: 7, kind: output, shape index: {1}]   ;;  %s8221_s8 = inlined_call_operand.vmem [shape: f32[2,2,4,8], index: 8, kind: output, shape index: {2}]  }
   0x1   :  { %v31_v0 = vld [vmem:[%s8215_s2] sm:$0xff]  ;;  %v32_v1 = vld [vmem:[%s8215_s2 + $0x8] sm:$0xff]  ;;  %v33_v2 = vld [vmem:[%s8215_s2 + $0x10] sm:$0xff] }
   0x2   :  { %v6915_v3 = vpack.c.bf16 %v32_v1, %v31_v0  ;;  %v34_v4 = vld [vmem:[%s8215_s2 + $0x18] sm:$0xff]  ;;  %v7271_v5 = vld [vmem:[%s8213_s0] sm:$0xff] }
   0x3   :  { %v6919_v6 = vpack.c.bf16 %v34_v4, %v33_v2  ;;  %6659 = vmatprep.mubr.msk.f32.mxu0 %vm39_vm0, %v7271_v5 }
   0x4   :  { %14 = vsyncpa [#allocation3], 0  ;;  %6916 = vmatprep.subr.bf16.mxu0 %v6915_v3  ;;  %v7278_v7 = vld [vmem:[%s8213_s0 + $0x8] sm:$0xff]  ;;  %v35_v8 = vlaneseq  ;;  %v7290_v11 = vld [vmem:[%s8218_s5] sm:$0xff]  ;;  %s7190_s0 = smov 104   ;;  %s7191_s19 = smov 120  }
   0x5   :  { %6918 = vmatpush3.bf16.msra.mxu0 %v6915_v3  ;;  %s7192_s20 = smov 96   ;;  %s7193_s21 = smov 112   ;;  %v7194_v17 = vmov 0.0   ;;  %vm7195_vm1 = vmmov 0   ;;  %vm292_vm2 = vcmask 64512   ;;  %vm1452_vm3 = vcmask 130048  }
   0x6   :  { %6920 = vmatprep.subr.bf16.mxu0 %v6919_v6  ;;  %v7282_v9 = vshrl.u32 %v35_v8, 7  ;;  %6662 = vmatprep.subr.mxu1 %v7194_v17  ;;  %s7196_s22 = smov 64   ;;  %s7199_s27 = smov 8   ;;  %vm1454_vm4 = vcmask 195584   ;;  %vm2827_vm5 = vcmask 523264   ;;  %vm673_vm6 = vcmask 60416  }
   0x7   :  { %6664 = vmatprep.mubr.msk.f32.mxu1 %vm7195_vm1, %v7194_v17  ;;  %s7200_s28 = smov 16   ;;  %s7201_s29 = smov 24   ;;  %vm2821_vm7 = vcmask 326656   ;;  %vm2823_vm8 = vcmask 392192   ;;  %vm2825_vm9 = vcmask 457728   ;;  %vm2829_vm10 = vcmask 588800  }
   0x8   :  { %v7285_v10 = vsub.s32 0, %v7282_v9  ;;  %s7202_s10 = smov 32   ;;  %s7206_s12 = smov 72   ;;  %vm2831_vm11 = vcmask 654336   ;;  %vm2833_vm12 = vcmask 719872   ;;  %vm2835_vm13 = vcmask 785408  }
   0x9   :  { %6922 = vmatpush3.bf16.msra.mxu0 %v6919_v6  ;;  %s7207_s13 = smov 80   ;;  %s7208_s14 = smov 88   ;;  %vm2837_vm14 = vcmask 850944   ;;  %vm2839_vm15 = vcmask 916480  }
   0xa   :  { %v38_v12 = vrot.slane %v7290_v11, %v7285_v10  ;;  %6677 = vmatprep.subr.mxu0 %v7194_v17  ;;  %s7209_s16 = smov [#allocation2]  }
   0xb   :  { %s6403_s17 = sshll.u32 %s7209_s16, 4  ;;  %s6404_s17 = int_to_ptr.vmem [resolvable:$true] %s6403_s17 }
   0xc   :  { %6660 = vmatmul.mubr.msk.f32.vlgmr.msra.gmra.mrb[0].mxu0 %vm39_vm0, %v7278_v7  ;;  %s7166_s18 = scalar_lea.vmem %s6404_s17, 256  ;;  %p7171_p1 = scmp.lt.s32.totalorder %s6404_s17, %s6404_s17 }
   0xd   :  { %6679 = vmatprep.mubr.msk.f32.mxu0 %vm7195_vm1, %v7194_v17  ;;  %p7167_p0 = scmp.ne.s32.totalorder %s6404_s17, %s7166_s18  ;;  %p7172_p2 = scmp.lt.s32.totalorder %s7166_s18, %s7166_s18 }
   0xf   :  { %p7173_p3 = por %p7172_p2, %p7171_p1 }
  0x11   :  { %p7174_p4 = pnand %p7173_p3, %p7167_p0 }
  0xdf   :  { %v6661_v13 = vpop.f32.mrb[0].mxu0 }
  0xe0   :  { %v7294_v14 = vadd.f32 %v6661_v13, %v38_v12  ;;  %v112_v15 = vpop.f32.mrb[1].mxu0 }
  0xe1   :  { %v7296_v16 = vadd.f32 %v112_v15, %v38_v12 }
  0xe3   :  { %150 = vrot.lane.b32.xlu1 %v7296_v16, %s7190_s0  ;;  %146 = vrot.lane.b32.xlu0 %v7296_v16, %s7191_s19 }
  0xe7   :  { %152 = vrot.lane.b32.xlu1 %v7296_v16, %s7192_s20  ;;  %148 = vrot.lane.b32.xlu0 %v7296_v16, %s7193_s21 }
 0x155   :  { %v147_v18 = vpop.permute.xlu0 %146  ;;  %v151_v19 = vpop.permute.xlu1 %150 }
 0x156   :  { %154 = vrot.lane.b32.xlu0 %v147_v18, %s7192_s20 }
 0x159   :  { %v149_v20 = vpop.permute.xlu0 %148  ;;  %v153_v21 = vpop.permute.xlu1 %152 }
 0x15a   :  { %158 = vrot.lane.b32.xlu0 %v151_v19, %s7192_s20  ;;  %156 = vrot.lane.b32.xlu1 %v149_v20, %s7192_s20 }
 0x183   :  { %164 = vxpose.xlu1.b32.start.end [1/1] (short) (narrow) %v153_v21, 8 }
 0x1c8   :  { %v155_v22 = vpop.permute.xlu0 %154 }
 0x1c9   :  { %196 = vxpose.xlu0.b32.start.end [1/1] (short) (narrow) %v155_v22, 8 }
 0x1cc   :  { %v157_v23 = vpop.permute.xlu1 %156  ;;  %v159_v24 = vpop.permute.xlu0 %158 }
 0x1cd   :  { %228 = vxpose.xlu0.b32.start.end [1/1] (short) (narrow) %v157_v23, 8 }
 0x1d1   :  { %260 = vxpose.xlu0.b32.start.end [1/1] (short) (narrow) %v159_v24, 8 }
 0x203   :  { %v180_v25 = vpop.trf.xlu1 }
 0x204   :  { %6663 = vmatpush3.msra.mxu1 %v180_v25 }
 0x205   :  { %6665 = vmatmul.mubr.msk.f32.vlgmr.msra.gmra.mrb[0].mxu1 %vm292_vm2, %v7296_v16  ;;  %6667 = vmatprep.subr.mxu1 %v7194_v17 }
 0x206   :  { %6669 = vmatprep.mubr.msk.f32.mxu1 %vm7195_vm1, %v7194_v17 }
 0x249   :  { %v212_v26 = vpop.trf.xlu0 }
 0x24a   :  { %6668 = vmatpush3.msra.mxu1 %v212_v26 }
 0x24b   :  { %6670 = vmatmul.mubr.msk.f32.vlgmr.msra.gmra.mrb[2].mxu1 %vm292_vm2, %v147_v18  ;;  %6672 = vmatprep.subr.mxu1 %v7194_v17 }
 0x24c   :  { %6674 = vmatprep.mubr.msk.f32.mxu1 %vm7195_vm1, %v7194_v17 }
 0x24d   :  { %v244_v27 = vpop.trf.xlu0 }
 0x24e   :  { %6673 = vmatpush3.msra.mxu1 %v244_v27 }
 0x24f   :  { %6675 = vmatmul.mubr.msk.f32.vlgmr.msra.gmra.mrb[4].mxu1 %vm292_vm2, %v149_v20  ;;  %6682 = vmatprep.subr.mxu1 %v7194_v17 }
 0x250   :  { %6684 = vmatprep.mubr.msk.f32.mxu1 %vm7195_vm1, %v7194_v17 }
 0x251   :  { %v276_v28 = vpop.trf.xlu0 }
 0x252   :  { %6678 = vmatpush3.msra.mxu0 %v276_v28 }
 0x253   :  { %6680 = vmatmul.mubr.msk.f32.vlgmr.msra.gmra.mrb[2].mxu0 %vm292_vm2, %v151_v19  ;;  %6687 = vmatprep.subr.mxu0 %v7194_v17 }
 0x254   :  { %6689 = vmatprep.mubr.msk.f32.mxu0 %vm7195_vm1, %v7194_v17 }
 0x2d8   :  { %v361_v29 = vpop.f32.mrb[0].mxu1 }
 0x2d9   :  { %v6666_v30 = vpop.f32.mrb[1].mxu1  ;;  %v581_v31 = vsel %vm292_vm2, %v361_v29, -inf }
 0x2da   :  { %582 = vmax.xlane.f32.xlu1 %v581_v31 }
 0x2eb   :  { %1459 = vrot.lane.b32.xlu1 %v7294_v14, %s7193_s21 }
 0x2ef   :  { %1461 = vrot.lane.b32.xlu1 %v7294_v14, %s7190_s0 }
 0x2f3   :  { %733 = vrot.lane.b32.xlu1 %v147_v18, %s7196_s22 }
 0x31e   :  { %v433_v32 = vpop.f32.mrb[2].mxu1 }
 0x31f   :  { %v6671_v33 = vpop.f32.mrb[3].mxu1  ;;  %v584_v34 = vsel %vm292_vm2, %v433_v32, -inf }
 0x320   :  { %585 = vmax.xlane.f32.xlu0 %v584_v34 }
 0x322   :  { %v505_v35 = vpop.f32.mrb[4].mxu1 }
 0x323   :  { %v6676_v36 = vpop.f32.mrb[5].mxu1  ;;  %v587_v40 = vsel %vm292_vm2, %v505_v35, -inf }
 0x326   :  { %v577_v37 = vpop.f32.mrb[2].mxu0 }
 0x327   :  { %v6681_v38 = vpop.f32.mrb[3].mxu0  ;;  %v590_v39 = vsel %vm292_vm2, %v577_v37, -inf }
 0x328   :  { %591 = vmax.xlane.f32.xlu1 %v590_v39 }
 0x32c   :  { %588 = vmax.xlane.f32.xlu1 %v587_v40 }
 0x336   :  { %1457 = vrot.lane.b32.xlu0 %v7294_v14, %s7191_s19 }
 0x33a   :  { %731 = vrot.lane.b32.xlu0 %v7296_v16, %s7196_s22 }
 0x33d   :  { %737 = vrot.lane.b32.xlu1 %v151_v19, %s7196_s22 }
 0x33e   :  { %735 = vrot.lane.b32.xlu0 %v149_v20, %s7196_s22 }
 0x342   :  { %1463 = vrot.lane.b32.xlu0 %v7294_v14, %s7192_s20 }
 0x367   :  { %v583_v41 = vpop.xlane.xlu1 %582 }
 0x368   :  { %v593_v42 = vsub.f32 %v361_v29, %v583_v41 }
 0x36a   :  { %v597_v43 = vmul.f32 1.442695, %v593_v42 }
 0x36b   :  { %v7350_v46 = vpop.permute.xlu1 %1459 }
 0x36c   :  { %7016 = vpow2.f32 %v597_v43 }
 0x36f   :  { %v7352_v47 = vpop.permute.xlu1 %1461 }
 0x373   :  { %v734_v49 = vpop.permute.xlu1 %733 }
 0x376   :  { %v7017_v44 = vpop.eup %7016 }
 0x377   :  { %v605_v45 = vsel %vm292_vm2, %v7017_v44, 0.0 }
 0x378   :  { %606 = vadd.xlane.f32.xlu0 %v605_v45 }
 0x3ad   :  { %v586_v48 = vpop.xlane.xlu0 %585 }
 0x3ae   :  { %v594_v55 = vsub.f32 %v433_v32, %v586_v48 }
 0x3b0   :  { %v599_v56 = vmul.f32 1.442695, %v594_v55 }
 0x3b1   :  { %v7354_v50 = vpop.permute.xlu0 %1457 }
 0x3b2   :  { %1465 = vrot.lane.b32.xlu1 %v7354_v50, %s7192_s20 }
 0x3b5   :  { %v592_v51 = vpop.xlane.xlu1 %591  ;;  %v732_v1 = vpop.permute.xlu0 %731 }
 0x3b6   :  { %v596_v57 = vsub.f32 %v577_v37, %v592_v51 }
 0x3b8   :  { %v603_v59 = vmul.f32 1.442695, %v596_v57 }
 0x3b9   :  { %v589_v52 = vpop.xlane.xlu1 %588  ;;  %v736_v2 = vpop.permute.xlu0 %735 }
 0x3ba   :  { %v595_v53 = vsub.f32 %v505_v35, %v589_v52 }
 0x3bc   :  { %v601_v54 = vmul.f32 1.442695, %v595_v53 }
 0x3bd   :  { %v1464_v3 = vpop.permute.xlu0 %1463  ;;  %v738_v4 = vpop.permute.xlu1 %737 }
 0x3be   :  { %7018 = vpow2.f32 %v601_v54 }
 0x3bf   :  { %7020 = vpow2.f32 %v599_v56 }
 0x3c0   :  { %7022 = vpow2.f32 %v603_v59 }
 0x3c8   :  { %v7019_v58 = vpop.eup %7018 }
 0x3c9   :  { %v611_v60 = vsel %vm292_vm2, %v7019_v58, 0.0  ;;  %v7021_v61 = vpop.eup %7020 }
 0x3ca   :  { %612 = vadd.xlane.f32.xlu0 %v611_v60  ;;  %v608_v62 = vsel %vm292_vm2, %v7021_v61, 0.0  ;;  %v7360_v63 = vpop.eup %7022 }
 0x3cb   :  { %v614_v0 = vsel %vm292_vm2, %v7360_v63, 0.0 }
 0x3d6   :  { %609 = vadd.xlane.f32.xlu1 %v608_v62 }
 0x3da   :  { %615 = vadd.xlane.f32.xlu1 %v614_v0 }
 0x3e0   :  { %1467 = vrot.lane.b32.xlu0 %v7350_v46, %s7192_s20 }
 0x3eb   :  { %1469 = vrot.lane.b32.xlu1 %v7352_v47, %s7192_s20 }
 0x3fe   :  { %743 = vxpose.xlu0.b32.start.end [1/1] (short) (narrow) %v732_v1, 8 }
 0x402   :  { %807 = vxpose.xlu0.b32.start.end [1/1] (short) (narrow) %v736_v2, 8 }
 0x405   :  { %v607_v6 = vpop.xlane.xlu0 %606 }
 0x406   :  { %7024 = vrcp.f32 %v607_v6  ;;  %839 = vxpose.xlu0.b32.start.end [1/1] (short) (narrow) %v738_v4, 8 }
 0x40a   :  { %1475 = vxpose.xlu0.b32.start.end [1/1] (short) (narrow) %v1464_v3, 8 }
 0x410   :  { %v7025_v8 = vpop.eup %7024 }
 0x411   :  { %v621_v12 = vmul.f32 %v7025_v8, %v607_v6 }
 0x413   :  { %v625_v13 = vsub.f32 2.0, %v621_v12 }
 0x414   :  { %775 = vxpose.xlu1.b32.start.end [1/1] (short) (narrow) %v734_v49, 8 }
 0x415   :  { %v629_v15 = vmul.f32 %v7025_v8, %v625_v13 }
 0x417   :  { %v7368_v18 = vmul.f32 %v7017_v44, %v629_v15 }
 0x419   :  { %6683 = vmatpush3.xpose.msk.msra.mxu1 %vm292_vm2, %v7368_v18 }
 0x41a   :  { %6692 = vmatprep.subr.mxu1 %v7194_v17 }
 0x424   :  { %v1466_v19 = vpop.permute.xlu1 %1465 }
 0x425   :  { %1507 = vxpose.xlu1.b32.start.end [1/1] (short) (narrow) %v1466_v19, 8 }
 0x457   :  { %v613_v20 = vpop.xlane.xlu0 %612 }
 0x45b   :  { %v1468_v21 = vpop.permute.xlu0 %1467 }
 0x45c   :  { %1539 = vxpose.xlu0.b32.start.end [1/1] (short) (narrow) %v1468_v21, 8 }
 0x463   :  { %v610_v22 = vpop.xlane.xlu1 %609 }
 0x464   :  { %7026 = vrcp.f32 %v610_v22 }
 0x465   :  { %7028 = vrcp.f32 %v613_v20 }
 0x467   :  { %v616_v23 = vpop.xlane.xlu1 %615 }
 0x468   :  { %7030 = vrcp.f32 %v616_v23 }
 0x46b   :  { %v1470_v24 = vpop.permute.xlu1 %1469 }
 0x46c   :  { %1571 = vxpose.xlu1.b32.start.end [1/1] (short) (narrow) %v1470_v24, 8 }
 0x46e   :  { %v7027_v25 = vpop.eup %7026 }
 0x46f   :  { %v7029_v26 = vpop.eup %7028  ;;  %v622_v27 = vmul.f32 %v7027_v25, %v610_v22 }
 0x470   :  { %v623_v29 = vmul.f32 %v7029_v26, %v613_v20 }
 0x471   :  { %v626_v28 = vsub.f32 2.0, %v622_v27 }
 0x472   :  { %v627_v32 = vsub.f32 2.0, %v623_v29  ;;  %v7031_v37 = vpop.eup %7030 }
 0x473   :  { %v630_v30 = vmul.f32 %v7027_v25, %v626_v28  ;;  %v624_v39 = vmul.f32 %v7031_v37, %v616_v23 }
 0x474   :  { %v631_v33 = vmul.f32 %v7029_v26, %v627_v32 }
 0x475   :  { %v7373_v31 = vmul.f32 %v7021_v61, %v630_v30  ;;  %v628_v41 = vsub.f32 2.0, %v624_v39 }
 0x476   :  { %v7378_v34 = vmul.f32 %v7019_v58, %v631_v33 }
 0x477   :  { %6688 = vmatpush3.xpose.msk.msra.mxu0 %vm292_vm2, %v7373_v31  ;;  %v632_v42 = vmul.f32 %v7031_v37, %v628_v41 }
 0x478   :  { %6697 = vmatprep.subr.mxu0 %v7194_v17 }
 0x479   :  { %v7395_v43 = vmul.f32 %v7360_v63, %v632_v42 }
 0x47e   :  { %v759_v35 = vpop.trf.xlu0 }
 0x47f   :  { %6685 = vmatmul.mubr.msk.f32.vlgmr.msra.gmra.mrb[6].mxu1 %vm292_vm2, %v759_v35 }
 0x480   :  { %6693 = vmatpush3.xpose.msk.msra.mxu1 %vm292_vm2, %v7378_v34  ;;  %6694 = vmatprep.mubr.msk.f32.mxu1 %vm7195_vm1, %v7194_v17 }
 0x481   :  { %6702 = vmatprep.subr.mxu1 %v7194_v17 }
 0x482   :  { %v823_v36 = vpop.trf.xlu0 }
 0x483   :  { %6695 = vmatmul.mubr.msk.f32.vlgmr.msra.gmra.mrb[8].mxu1 %vm292_vm2, %v823_v36 }
 0x484   :  { %6704 = vmatprep.mubr.msk.f32.mxu1 %vm7195_vm1, %v7194_v17 }
 0x486   :  { %v855_v38 = vpop.trf.xlu0 }
 0x48a   :  { %v1491_v40 = vpop.trf.xlu0 }
 0x48b   :  { %6703 = vmatpush3.msra.mxu1 %v1491_v40 }
 0x48c   :  { %6705 = vmatmul.mubr.msk.f32.vlgmr.msra.gmra.mrb[10].mxu1 %vm292_vm2, %v7294_v14  ;;  %6712 = vmatprep.subr.mxu1 %v7194_v17 }
 0x48d   :  { %6714 = vmatprep.mubr.msk.f32.mxu1 %vm7195_vm1, %v7194_v17 }
 0x494   :  { %v791_v44 = vpop.trf.xlu1 }
 0x495   :  { %6690 = vmatmul.mubr.msk.f32.vlgmr.msra.gmra.mrb[4].mxu0 %vm292_vm2, %v791_v44 }
 0x496   :  { %6698 = vmatpush3.xpose.msk.msra.mxu0 %vm292_vm2, %v7395_v43  ;;  %6699 = vmatprep.mubr.msk.f32.mxu0 %vm7195_vm1, %v7194_v17 }
 0x497   :  { %6707 = vmatprep.subr.mxu0 %v7194_v17 }
 0x499   :  { %6700 = vmatmul.mubr.msk.f32.vlgmr.msra.gmra.mrb[6].mxu0 %vm292_vm2, %v855_v38 }
 0x49a   :  { %6709 = vmatprep.mubr.msk.f32.mxu0 %vm7195_vm1, %v7194_v17 }
 0x4a5   :  { %v1523_v45 = vpop.trf.xlu1 }
 0x4a6   :  { %6708 = vmatpush3.msra.mxu0 %v1523_v45 }
 0x4a7   :  { %6710 = vmatmul.mubr.msk.f32.vlgmr.msra.gmra.mrb[8].mxu0 %vm292_vm2, %v7354_v50  ;;  %6717 = vmatprep.subr.mxu0 %v7194_v17 }
 0x4a8   :  { %6719 = vmatprep.mubr.msk.f32.mxu0 %vm7195_vm1, %v7194_v17 }
 0x4dc   :  { %v1555_v48 = vpop.trf.xlu0 }
 0x4dd   :  { %6713 = vmatpush3.msra.mxu1 %v1555_v48 }
 0x4de   :  { %6715 = vmatmul.mubr.msk.f32.vlgmr.msra.gmra.mrb[12].mxu1 %vm292_vm2, %v7350_v46  ;;  %6722 = vmatprep.subr.mxu1 %v7194_v17 }
 0x4df   :  { %6724 = vmatprep.mubr.msk.f32.mxu1 %vm7195_vm1, %v7194_v17 }
 0x4ec   :  { %v1587_v49 = vpop.trf.xlu1 }
 0x4ed   :  { %6718 = vmatpush3.msra.mxu0 %v1587_v49 }
 0x4ee   :  { %6720 = vmatmul.mubr.msk.f32.vlgmr.msra.gmra.mrb[10].mxu0 %vm292_vm2, %v7352_v47  ;;  %6727 = vmatprep.subr.mxu0 %v7194_v17 }
 0x4ef   :  { %6729 = vmatprep.mubr.msk.f32.mxu0 %vm7195_vm1, %v7194_v17 }
 0x552   :  { %v7421_v51 = vpop.f32.mrb[6].mxu1 }
 0x553   :  { %v6686_v52 = vpop.f32.mrb[7].mxu1 }
 0x556   :  { %v7423_v53 = vpop.f32.mrb[8].mxu1 }
 0x557   :  { %v6696_v54 = vpop.f32.mrb[9].mxu1 }
 0x55f   :  { %v1671_v55 = vpop.f32.mrb[10].mxu1 }
 0x560   :  { %v6706_v56 = vpop.f32.mrb[11].mxu1  ;;  %v1891_v57 = vsel %vm292_vm2, %v1671_v55, -inf }
 0x561   :  { %1892 = vmax.xlane.f32.xlu0 %v1891_v57 }
 0x568   :  { %v7426_v58 = vpop.f32.mrb[4].mxu0 }
 0x569   :  { %v6691_v59 = vpop.f32.mrb[5].mxu0 }
 0x56c   :  { %v7428_v60 = vpop.f32.mrb[6].mxu0 }
 0x56d   :  { %v6701_v61 = vpop.f32.mrb[7].mxu0 }
 0x57a   :  { %v1743_v62 = vpop.f32.mrb[8].mxu0 }
 0x57b   :  { %v6711_v63 = vpop.f32.mrb[9].mxu0  ;;  %v1894_v0 = vsel %vm292_vm2, %v1743_v62, -inf }
 0x57c   :  { %1895 = vmax.xlane.f32.xlu1 %v1894_v0 }
 0x5b1   :  { %v1815_v1 = vpop.f32.mrb[12].mxu1 }
 0x5b2   :  { %v6716_v2 = vpop.f32.mrb[13].mxu1  ;;  %v1897_v3 = vsel %vm292_vm2, %v1815_v1, -inf }
 0x5b3   :  { %1898 = vmax.xlane.f32.xlu1 %v1897_v3 }
 0x5c1   :  { %v1887_v4 = vpop.f32.mrb[10].mxu0 }
 0x5c2   :  { %v6721_v6 = vpop.f32.mrb[11].mxu0  ;;  %v1900_v8 = vsel %vm292_vm2, %v1887_v4, -inf }
 0x5c3   :  { %1901 = vmax.xlane.f32.xlu0 %v1900_v8 }
 0x5c4   :  { %2041 = vrot.lane.b32.xlu1 %v7294_v14, %s7196_s22 }
 0x5d9   :  { %2043 = vrot.lane.b32.xlu0 %v7354_v50, %s7196_s22 }
 0x5ee   :  { %v1893_v12 = vpop.xlane.xlu0 %1892 }
 0x5ef   :  { %v1903_v13 = vsub.f32 %v1671_v55, %v1893_v12 }
 0x5f1   :  { %v1907_v15 = vmul.f32 1.442695, %v1903_v13 }
 0x5f3   :  { %7032 = vpow2.f32 %v1907_v15 }
 0x5fd   :  { %v7033_v19 = vpop.eup %7032 }
 0x5fe   :  { %v1915_v20 = vsel %vm292_vm2, %v7033_v19, 0.0 }
 0x5ff   :  { %1916 = vadd.xlane.f32.xlu1 %v1915_v20  ;;  %v7197_v20 = vmov 1983009808  }
 0x609   :  { %v1896_v21 = vpop.xlane.xlu1 %1895 }
 0x60a   :  { %v1904_v22 = vsub.f32 %v1743_v62, %v1896_v21  ;;  %v1306_v21 = vunpack.c.l.s4 %v7197_v20 }
 0x60c   :  { %v1909_v23 = vmul.f32 1.442695, %v1904_v22 }
 0x60e   :  { %7034 = vpow2.f32 %v1909_v23 }
 0x618   :  { %v7035_v24 = vpop.eup %7034 }
 0x619   :  { %v1918_v25 = vsel %vm292_vm2, %v7035_v24, 0.0 }
 0x61a   :  { %1919 = vadd.xlane.f32.xlu0 %v1918_v25  ;;  %v1307_v25 = vunpack.c.0.s8 %v1306_v21  ;;  %v2844_v21 = vld [vmem:[%s8217_s4] sm:$0xff] }
 0x640   :  { %v1899_v26 = vpop.xlane.xlu1 %1898 }
 0x641   :  { %v1905_v27 = vsub.f32 %v1815_v1, %v1899_v26 }
 0x643   :  { %v1911_v28 = vmul.f32 1.442695, %v1905_v27 }
 0x644   :  { %v2042_v37 = vpop.permute.xlu1 %2041 }
 0x645   :  { %7036 = vpow2.f32 %v1911_v28 }
 0x64f   :  { %v7037_v50 = vpop.eup %7036 }
 0x650   :  { %v1902_v29 = vpop.xlane.xlu0 %1901  ;;  %v1921_v30 = vsel %vm292_vm2, %v7037_v50, 0.0 }
 0x651   :  { %v1906_v32 = vsub.f32 %v1887_v4, %v1902_v29  ;;  %1922 = vadd.xlane.f32.xlu1 %v1921_v30  ;;  %v7198_v29 = vmov 1934713408  }
 0x652   :  { %v1338_v30 = vunpack.c.l.s4 %v7198_v29 }
 0x653   :  { %v1913_v33 = vmul.f32 1.442695, %v1906_v32 }
 0x654   :  { %v2044_v39 = vpop.permute.xlu0 %2043 }
 0x655   :  { %7038 = vpow2.f32 %v1913_v33 }
 0x65f   :  { %v7039_v35 = vpop.eup %7038 }
 0x660   :  { %v1924_v36 = vsel %vm292_vm2, %v7039_v35, 0.0 }
 0x661   :  { %1925 = vadd.xlane.f32.xlu0 %v1924_v36 }
 0x662   :  { %2045 = vrot.lane.b32.xlu1 %v7350_v46, %s7196_s22 }
 0x677   :  { %2047 = vrot.lane.b32.xlu0 %v7352_v47, %s7196_s22 }
 0x68b   :  { %2053 = vxpose.xlu1.b32.start.end [1/1] (short) (narrow) %v2042_v37, 8  ;;  %v1339_v37 = vunpack.c.0.s8 %v1338_v30 }
 0x68c   :  { %v1917_v38 = vpop.xlane.xlu1 %1916 }
 0x68d   :  { %7040 = vrcp.f32 %v1917_v38 }
 0x695   :  { %2085 = vxpose.xlu0.b32.start.end [1/1] (short) (narrow) %v2044_v39, 8 }
 0x697   :  { %v7041_v40 = vpop.eup %7040 }
 0x698   :  { %v1931_v41 = vmul.f32 %v7041_v40, %v1917_v38 }
 0x69a   :  { %v1935_v42 = vsub.f32 2.0, %v1931_v41 }
 0x69c   :  { %v1939_v44 = vmul.f32 %v7041_v40, %v1935_v42  ;;  %v7483_v42 = vsub.s32 %v1339_v37, %v7282_v9 }
 0x69e   :  { %v7445_v45 = vmul.f32 %v7033_v19, %v1939_v44 }
 0x6a0   :  { %6723 = vmatpush3.xpose.msk.msra.mxu1 %vm292_vm2, %v7445_v45 }
 0x6a1   :  { %6732 = vmatprep.subr.mxu1 %v7194_v17 }
 0x6a7   :  { %v1920_v46 = vpop.xlane.xlu0 %1919 }
 0x6a8   :  { %7042 = vrcp.f32 %v1920_v46 }
 0x6b2   :  { %v7043_v47 = vpop.eup %7042 }
 0x6b3   :  { %v1932_v48 = vmul.f32 %v7043_v47, %v1920_v46 }
 0x6b5   :  { %v1936_v49 = vsub.f32 2.0, %v1932_v48 }
 0x6b7   :  { %v1940_v52 = vmul.f32 %v7043_v47, %v1936_v49 }
 0x6b9   :  { %v7450_v54 = vmul.f32 %v7035_v24, %v1940_v52 }
 0x6bb   :  { %6728 = vmatpush3.xpose.msk.msra.mxu0 %vm292_vm2, %v7450_v54 }
 0x6bc   :  { %6737 = vmatprep.subr.mxu0 %v7194_v17 }
 0x6de   :  { %v1923_v55 = vpop.xlane.xlu1 %1922 }
 0x6df   :  { %7044 = vrcp.f32 %v1923_v55 }
 0x6e2   :  { %v2046_v56 = vpop.permute.xlu1 %2045 }
 0x6e3   :  { %2117 = vxpose.xlu0.b32.start.end [1/1] (short) (narrow) %v2046_v56, 8 }
 0x6e7   :  { %1175 = vxpose.xlu0.b32.start.end [1/1] (short) (narrow) %v7421_v51, 8 }
 0x6e9   :  { %v7045_v61 = vpop.eup %7044 }
 0x6ea   :  { %v1933_v62 = vmul.f32 %v7045_v61, %v1923_v55 }
 0x6eb   :  { %1239 = vxpose.xlu0.b32.start.end [1/1] (short) (narrow) %v7423_v53, 8 }
 0x6ec   :  { %v1937_v63 = vsub.f32 2.0, %v1933_v62 }
 0x6ee   :  { %v1926_v57 = vpop.xlane.xlu0 %1925  ;;  %v1941_v1 = vmul.f32 %v7045_v61, %v1937_v63 }
 0x6ef   :  { %7046 = vrcp.f32 %v1926_v57 }
 0x6f0   :  { %v7459_v3 = vmul.f32 %v7037_v50, %v1941_v1  ;;  %v7476_v50 = vsub.s32 %v1307_v25, %v7282_v9 }
 0x6f2   :  { %v2048_v59 = vpop.permute.xlu0 %2047 }
 0x6f3   :  { %2149 = vxpose.xlu1.b32.start.end [1/1] (short) (narrow) %v2048_v59, 8 }
 0x6f7   :  { %1207 = vxpose.xlu1.b32.start.end [1/1] (short) (narrow) %v7426_v58, 8 }
 0x6f9   :  { %v7047_v0 = vpop.eup %7046 }
 0x6fa   :  { %v1934_v2 = vmul.f32 %v7047_v0, %v1926_v57 }
 0x6fb   :  { %1271 = vxpose.xlu1.b32.start.end [1/1] (short) (narrow) %v7428_v60, 8 }
 0x6fc   :  { %v1938_v53 = vsub.f32 2.0, %v1934_v2 }
 0x6fe   :  { %v1942_v58 = vmul.f32 %v7047_v0, %v1938_v53 }
 0x700   :  { %v7466_v60 = vmul.f32 %v7039_v35, %v1942_v58 }
 0x70b   :  { %v2069_v51 = vpop.trf.xlu1 }
 0x70c   :  { %6725 = vmatmul.mubr.msk.f32.vlgmr.msra.gmra.mrb[14].mxu1 %vm292_vm2, %v2069_v51 }
 0x70d   :  { %6733 = vmatpush3.xpose.msk.msra.mxu1 %vm292_vm2, %v7459_v3  ;;  %6734 = vmatprep.mubr.msk.f32.mxu1 %vm7195_vm1, %v7194_v17 }
 0x715   :  { %v2101_v4 = vpop.trf.xlu0 }
 0x716   :  { %6730 = vmatmul.mubr.msk.f32.vlgmr.msra.gmra.mrb[12].mxu0 %vm292_vm2, %v2101_v4 }
 0x717   :  { %6738 = vmatpush3.xpose.msk.msra.mxu0 %vm292_vm2, %v7466_v60  ;;  %6739 = vmatprep.mubr.msk.f32.mxu0 %vm7195_vm1, %v7194_v17 }
 0x763   :  { %v2133_v6 = vpop.trf.xlu0 }
 0x764   :  { %6735 = vmatmul.mubr.msk.f32.vlgmr.msra.gmra.mrb[16].mxu1 %vm292_vm2, %v2133_v6 }
 0x767   :  { %v1191_v23 = vpop.trf.xlu0 }
 0x76b   :  { %v1255_v28 = vpop.trf.xlu0 }
 0x76c   :  { %v1303_v35 = vcombine.low %v1191_v23, %v1255_v28  ;;  %v1304_v36 = vcombine.high %v1191_v23, %v1255_v28 }
 0x76e   :  { %v1311_v40 = vrot.slane %v1303_v35, %v7476_v50  ;;  %v1318_v41 = vrot.slane %v1304_v36, %v7476_v50 }
 0x773   :  { %v2165_v8 = vpop.trf.xlu1 }
 0x774   :  { %6740 = vmatmul.mubr.msk.f32.vlgmr.msra.gmra.mrb[14].mxu0 %vm292_vm2, %v2165_v8 }
 0x777   :  { %v1223_v22 = vpop.trf.xlu1 }
 0x77b   :  { %v1287_v27 = vpop.trf.xlu1 }
 0x77c   :  { %v1319_v32 = vcombine.low %v1223_v22, %v1287_v27  ;;  %v1320_v33 = vcombine.high %v1223_v22, %v1287_v27  ;;  %v2845_v22 = vld [vmem:[%s8217_s4 + $0x8] sm:$0xff] }
 0x77d   :  { %v6923_v23 = vpack.c.bf16 %v2845_v22, %v2844_v21 }
 0x77e   :  { %v1327_v38 = vrot.slane %v1319_v32, %v7476_v50  ;;  %v1334_v39 = vrot.slane %v1320_v33, %v7476_v50 }
 0x77f   :  { %6924 = vmatprep.subr.bf16.mxu0 %v6923_v23 }
 0x780   :  { %v1335_v44 = vcombine.low %v1311_v40, %v1327_v38  ;;  %v1336_v46 = vcombine.high %v1311_v40, %v1327_v38  ;;  %v1351_v47 = vcombine.low %v1318_v41, %v1334_v39  ;;  %v1352_v48 = vcombine.high %v1318_v41, %v1334_v39  ;;  %6926 = vmatpush3.bf16.msra.mxu0 %v6923_v23 }
 0x782   :  { %v1343_v55 = vrot.slane %v1335_v44, %v7483_v42  ;;  %v1350_v56 = vrot.slane %v1336_v46, %v7483_v42  ;;  %v1359_v57 = vrot.slane %v1351_v47, %v7483_v42  ;;  %v1366_v59 = vrot.slane %v1352_v48, %v7483_v42  ;;  %v2846_v47 = vld [vmem:[%s8217_s4 + $0x10] sm:$0xff]  ;;  %v2847_v48 = vld [vmem:[%s8217_s4 + $0x18] sm:$0xff] }
 0x784   :  { %v1371_v61 = vcombine.low %v1343_v55, %v1350_v56  ;;  %v6440_v62 = vcombine.high %v1343_v55, %v1350_v56  ;;  %v1387_v63 = vcombine.low %v1359_v57, %v1366_v59  ;;  %v6441_v0 = vcombine.high %v1359_v57, %v1366_v59 }
 0x786   :  { %v1378_v1 = vrot.slane %v1371_v61, %v7476_v50  ;;  %v1386_v2 = vrot.slane %v6440_v62, %v7476_v50  ;;  %v1394_v51 = vrot.slane %v1387_v63, %v7476_v50  ;;  %v1402_v53 = vrot.slane %v6441_v0, %v7476_v50 }
 0x788   :  { %v1403_v58 = vcombine.low %v1378_v1, %v1386_v2  ;;  %v1419_v4 = vcombine.low %v1394_v51, %v1402_v53 }
 0x78a   :  { %v7494_v6 = vrot.slane %v1403_v58, %v7483_v42  ;;  %v7497_v8 = vrot.slane %v1419_v4, %v7483_v42 }
 0x78c   :  { %v1435_v23 = vcombine.low %v7494_v6, %v7497_v8 }
 0x7df   :  { %v2253_v12 = vpop.f32.mrb[14].mxu1 }
 0x7e0   :  { %2485 = vxpose.xlu0.b32.start.end [1/1] (short) (narrow) %v2253_v12, 8  ;;  %v6726_v13 = vpop.f32.mrb[15].mxu1  ;;  %v1404_v12 = vcombine.high %v1378_v1, %v1386_v2 }
 0x7e1   :  { %v1420_v13 = vcombine.high %v1394_v51, %v1402_v53 }
 0x7e3   :  { %v1434_v20 = vrot.slane %v1420_v13, %v7483_v42 }
 0x7e9   :  { %v2329_v15 = vpop.f32.mrb[12].mxu0 }
 0x7ea   :  { %v6731_v19 = vpop.f32.mrb[13].mxu0  ;;  %2517 = vxpose.xlu1.b32.start.end [1/1] (short) (narrow) %v2329_v15, 8  ;;  %v1436_v15 = vcombine.high %v7494_v6, %v7497_v8 }
 0x7eb   :  { %v1418_v19 = vrot.slane %v1404_v12, %v7483_v42 }
 0x7ed   :  { %v1438_v25 = vcombine.high %v1418_v19, %v1434_v20 }
 0x837   :  { %v2405_v24 = vpop.f32.mrb[16].mxu1 }
 0x838   :  { %2549 = vxpose.xlu0.b32.start.end [1/1] (short) (narrow) %v2405_v24, 8  ;;  %v6736_v26 = vpop.f32.mrb[17].mxu1  ;;  %v1437_v24 = vcombine.low %v1418_v19, %v1434_v20 }
 0x847   :  { %v2481_v49 = vpop.f32.mrb[14].mxu0 }
 0x848   :  { %2581 = vxpose.xlu1.b32.start.end [1/1] (short) (narrow) %v2481_v49, 8  ;;  %v6741_v52 = vpop.f32.mrb[15].mxu0  ;;  %v6927_v49 = vpack.c.bf16 %v2847_v48, %v2846_v47 }
 0x84a   :  { %6928 = vmatprep.subr.bf16.mxu0 %v6927_v49 }
 0x84b   :  { %6930 = vmatpush3.bf16.msra.mxu0 %v6927_v49 }
 0x860   :  { %v2501_v26 = vpop.trf.xlu0 }
 0x861   :  { %1440 = vrot.lane.b32.xlu0 %v1436_v15, %s7199_s27 }
 0x866   :  { %1444 = vrot.lane.b32.xlu1 %v1437_v24, %s7200_s28 }
 0x86a   :  { %1448 = vrot.lane.b32.xlu1 %v1438_v25, %s7201_s29  ;;  %v2533_v27 = vpop.trf.xlu1 }
 0x8b8   :  { %v2565_v28 = vpop.trf.xlu0 }
 0x8b9   :  { %v2613_v29 = vcombine.low %v2501_v26, %v2565_v28  ;;  %v2614_v30 = vcombine.high %v2501_v26, %v2565_v28 }
 0x8bb   :  { %v2621_v36 = vrot.slane %v2613_v29, %v7476_v50  ;;  %v2628_v37 = vrot.slane %v2614_v30, %v7476_v50 }
 0x8c8   :  { %v2597_v32 = vpop.trf.xlu1 }
 0x8c9   :  { %v2629_v33 = vcombine.low %v2533_v27, %v2597_v32  ;;  %v2630_v35 = vcombine.high %v2533_v27, %v2597_v32 }
 0x8cb   :  { %v2637_v38 = vrot.slane %v2629_v33, %v7476_v50  ;;  %v2644_v39 = vrot.slane %v2630_v35, %v7476_v50 }
 0x8cd   :  { %v2645_v40 = vcombine.low %v2621_v36, %v2637_v38  ;;  %v2646_v41 = vcombine.high %v2621_v36, %v2637_v38  ;;  %v2661_v44 = vcombine.low %v2628_v37, %v2644_v39  ;;  %v2662_v46 = vcombine.high %v2628_v37, %v2644_v39 }
 0x8ce   :  { %v7548_v38 = vsub.s32 1, %v7282_v9 }
 0x8cf   :  { %v2653_v52 = vrot.slane %v2645_v40, %v7483_v42  ;;  %v2660_v55 = vrot.slane %v2646_v41, %v7483_v42  ;;  %v2669_v56 = vrot.slane %v2661_v44, %v7483_v42  ;;  %v2676_v57 = vrot.slane %v2662_v46, %v7483_v42 }
 0x8d0   :  { %v2851_v39 = vrot.slane %v7290_v11, %v7548_v38 }
 0x8d1   :  { %v2681_v59 = vcombine.low %v2653_v52, %v2660_v55  ;;  %v6455_v61 = vcombine.high %v2653_v52, %v2660_v55  ;;  %v2697_v62 = vcombine.low %v2669_v56, %v2676_v57  ;;  %v6456_v63 = vcombine.high %v2669_v56, %v2676_v57 }
 0x8d3   :  { %v2688_v0 = vrot.slane %v2681_v59, %v7476_v50  ;;  %v2696_v1 = vrot.slane %v6455_v61, %v7476_v50  ;;  %v2704_v2 = vrot.slane %v2697_v62, %v7476_v50  ;;  %v2712_v51 = vrot.slane %v6456_v63, %v7476_v50  ;;  %v1441_v21 = vpop.permute.xlu0 %1440 }
 0x8d4   :  { %v1451_v27 = vsel %vm292_vm2, %v1435_v23, %v1441_v21  ;;  %v3070_v23 = vld [vmem:[%s8217_s4 + $0x48] sm:$0xff] }
 0x8d5   :  { %v2714_v53 = vcombine.high %v2688_v0, %v2696_v1  ;;  %v2730_v58 = vcombine.high %v2704_v2, %v2712_v51  ;;  %v2713_v4 = vcombine.low %v2688_v0, %v2696_v1  ;;  %v2729_v12 = vcombine.low %v2704_v2, %v2712_v51  ;;  %v2975_v2 = vld [vmem:[%s8216_s3 + $0x8] sm:$0xff] }
 0x8d7   :  { %v2728_v13 = vrot.slane %v2714_v53, %v7483_v42  ;;  %v2744_v15 = vrot.slane %v2730_v58, %v7483_v42  ;;  %v2721_v19 = vrot.slane %v2713_v4, %v7483_v42  ;;  %v2737_v20 = vrot.slane %v2729_v12, %v7483_v42  ;;  %v2976_v53 = vld [vmem:[%s8216_s3 + $0x10] sm:$0xff]  ;;  %v2977_v58 = vld [vmem:[%s8216_s3 + $0x18] sm:$0xff]  ;;  %v3065_v12 = vld [vmem:[%s8217_s4 + $0x20] sm:$0xff] }
 0x8d8   :  { %v1445_v22 = vpop.permute.xlu1 %1444  ;;  %v6935_v4 = vpack.c.bf16 %v2977_v58, %v2976_v53 }
 0x8d9   :  { %v2747_v24 = vcombine.low %v2728_v13, %v2744_v15  ;;  %v2746_v25 = vcombine.high %v2721_v19, %v2737_v20  ;;  %v2745_v26 = vcombine.low %v2721_v19, %v2737_v20  ;;  %v1453_v28 = vsel %vm1452_vm3, %v1451_v27, %v1445_v22  ;;  %v3068_v20 = vld [vmem:[%s8217_s4 + $0x38] sm:$0xff]  ;;  %v3069_v22 = vld [vmem:[%s8217_s4 + $0x40] sm:$0xff] }
 0x8da   :  { %v2748_v32 = vcombine.high %v2728_v13, %v2744_v15  ;;  %v3066_v13 = vld [vmem:[%s8217_s4 + $0x28] sm:$0xff]  ;;  %v3067_v15 = vld [vmem:[%s8217_s4 + $0x30] sm:$0xff] }
 0x8db   :  { %2754 = vrot.lane.b32.xlu0 %v2747_v24, %s7200_s28  ;;  %2750 = vrot.lane.b32.xlu1 %v2746_v25, %s7199_s27  ;;  %v6939_v19 = vpack.c.bf16 %v3066_v13, %v3065_v12  ;;  %v6943_v21 = vpack.c.bf16 %v3068_v20, %v3067_v15  ;;  %v6947_v24 = vpack.c.bf16 %v3070_v23, %v3069_v22 }
 0x8dc   :  { %v1449_v29 = vpop.permute.xlu1 %1448 }
 0x8dd   :  { %v1455_v30 = vsel %vm1454_vm4, %v1453_v28, %v1449_v29  ;;  %6940 = vmatprep.subr.bf16.mxu1 %v6939_v19 }
 0x8de   :  { %6750 = vmatprep.mubr.msk.f32.mxu0 %vm39_vm0, %v1455_v30  ;;  %6942 = vmatpush3.bf16.msra.mxu1 %v6939_v19 }
 0x8df   :  { %2758 = vrot.lane.b32.xlu1 %v2748_v32, %s7201_s29  ;;  %6944 = vmatprep.subr.bf16.mxu1 %v6943_v21  ;;  %v7589_v32 = vsub.s32 2, %v7282_v9 }
 0x8e2   :  { %6946 = vmatpush3.bf16.msra.mxu1 %v6943_v21 }
 0x8e3   :  { %6948 = vmatprep.subr.bf16.mxu1 %v6947_v24 }
 0x8e6   :  { %6950 = vmatpush3.bf16.msra.mxu1 %v6947_v24 }
 0x94d   :  { %v2751_v6 = vpop.permute.xlu1 %2750  ;;  %v2755_v33 = vpop.permute.xlu0 %2754 }
 0x94e   :  { %v2761_v8 = vsel %vm292_vm2, %v2745_v26, %v2751_v6  ;;  %v7592_v6 = vsub.s32 3, %v7282_v9 }
 0x94f   :  { %v2762_v35 = vsel %vm1452_vm3, %v2761_v8, %v2755_v33  ;;  %v2965_v8 = vrot.slane %v7290_v11, %v7589_v32 }
 0x951   :  { %v2759_v36 = vpop.permute.xlu1 %2758 }
 0x952   :  { %v2763_v37 = vsel %vm1454_vm4, %v2762_v35, %v2759_v36  ;;  %v2971_v36 = vrot.slane %v7290_v11, %v7592_v6  ;;  %v2980_v11 = vsub.s32 4, %v7282_v9 }
 0x953   :  { %6751 = vmatmul.mubr.msk.f32.vlgmr.msra.gmra.mrb[16].mxu0 %vm39_vm0, %v2763_v37 }
 0xa26   :  { %v6752_v40 = vpop.f32.mrb[16].mxu0 }
 0xa27   :  { %v2930_v41 = vadd.f32 %v6752_v40, %v2851_v39  ;;  %v2924_v44 = vpop.f32.mrb[17].mxu0 }
 0xa28   :  { %v2925_v46 = vadd.f32 %v2924_v44, %v2851_v39 }
 0xa29   :  { %v2934_v47 = vadd.f32 %v2930_v41, %v7278_v7 }
 0xa2a   :  { %v2933_v48 = vadd.f32 %v2925_v46, %v7271_v5  ;;  %v2974_v5 = vld [vmem:[%s8216_s3] sm:$0xff] }
 0xa2b   :  { %v2938_v49 = vsel %vm39_vm0, %v2934_v47, 0.0  ;;  %v6931_v51 = vpack.c.bf16 %v2975_v2, %v2974_v5 }
 0xa2c   :  { %2939 = vadd.xlane.f32.xlu1 %v2938_v49  ;;  %v2935_v52 = vsel %vm39_vm0, %v2933_v48, 0.0 }
 0xa2d   :  { %2936 = vadd.xlane.f32.xlu0 %v2935_v52  ;;  %6932 = vmatprep.subr.bf16.mxu0 %v6931_v51  ;;  %v7164_v52 = vld [vmem:[%s8218_s5] sm:$0xff] }
 0xa2e   :  { %6934 = vmatpush3.bf16.msra.mxu0 %v6931_v51 }
 0xa2f   :  { %6936 = vmatprep.subr.bf16.mxu0 %v6935_v4 }
 0xa32   :  { %6938 = vmatpush3.bf16.msra.mxu0 %v6935_v4 }
 0xab9   :  { %v2940_v55 = vpop.xlane.xlu1 %2939 }
 0xaba   :  { %v2943_v56 = vmul.f32 0.03125, %v2940_v55  ;;  %v2937_v57 = vpop.xlane.xlu0 %2936  ;;  %v2981_v55 = vrot.slane %v7164_v52, %v2980_v11 }
 0xabb   :  { %v2942_v59 = vmul.f32 0.03125, %v2937_v57 }
 0xabc   :  { %v2945_v61 = vsub.f32 %v2934_v47, %v2943_v56  ;;  %v3071_v47 = vld [vmem:[%s8217_s4 + $0x50] sm:$0xff] }
 0xabd   :  { %v2944_v62 = vsub.f32 %v2933_v48, %v2942_v59  ;;  %v3072_v48 = vld [vmem:[%s8217_s4 + $0x58] sm:$0xff] }
 0xabe   :  { %v2947_v1 = vmul.f32 %v2945_v61, %v2945_v61  ;;  %v6951_v49 = vpack.c.bf16 %v3072_v48, %v3071_v47 }
 0xabf   :  { %v2946_v63 = vmul.f32 %v2944_v62, %v2944_v62 }
 0xac0   :  { %v2951_v7 = vsel %vm39_vm0, %v2947_v1, 0.0  ;;  %6952 = vmatprep.subr.bf16.mxu1 %v6951_v49 }
 0xac1   :  { %v2948_v0 = vsel %vm39_vm0, %v2946_v63, 0.0  ;;  %6954 = vmatpush3.bf16.msra.mxu1 %v6951_v49 }
 0xac2   :  { %2949 = vadd.xlane.f32.xlu0 %v2948_v0  ;;  %6804 = vmatprep.subr.mxu1 %v7194_v17  ;;  %v3075_v0 = vsub.s32 5, %v7282_v9 }
 0xac4   :  { %v3076_v1 = vrot.slane %v7164_v52, %v3075_v0 }
 0xac6   :  { %2952 = vadd.xlane.f32.xlu0 %v2951_v7 }
 0xb4f   :  { %v2950_v25 = vpop.xlane.xlu0 %2949 }
 0xb50   :  { %v2954_v26 = vmul.f32 0.03125, %v2950_v25 }
 0xb52   :  { %v2956_v27 = vadd.f32 1e-05, %v2954_v26 }
 0xb53   :  { %v2953_v28 = vpop.xlane.xlu0 %2952 }
 0xb54   :  { %7048 = vrsqrt.f32 %v2956_v27  ;;  %v2955_v29 = vmul.f32 0.03125, %v2953_v28  ;;  %v6464_v27 = vld [vmem:[%s8215_s2 + $0x20] sm:$0xff]  ;;  %v6465_v28 = vld [vmem:[%s8215_s2 + $0x28] sm:$0xff] }
 0xb56   :  { %v2957_v30 = vadd.f32 1e-05, %v2955_v29  ;;  %v6955_v29 = vpack.c.bf16 %v6465_v28, %v6464_v27 }
 0xb58   :  { %7050 = vrsqrt.f32 %v2957_v30  ;;  %v6466_v30 = vld [vmem:[%s8215_s2 + $0x30] sm:$0xff]  ;;  %6956 = vmatprep.subr.bf16.mxu0 %v6955_v29 }
 0xb5e   :  { %v7049_v33 = vpop.eup %7048 }
 0xb5f   :  { %v2960_v35 = vmul.f32 %v7049_v33, %v2944_v62 }
 0xb61   :  { %v2966_v37 = vmul.f32 %v2965_v8, %v2960_v35 }
 0xb62   :  { %v7051_v39 = vpop.eup %7050 }
 0xb63   :  { %v2961_v40 = vmul.f32 %v7051_v39, %v2945_v61  ;;  %v2972_v41 = vadd.f32 %v2971_v36, %v2966_v37 }
 0xb65   :  { %v2967_v44 = vmul.f32 %v2965_v8, %v2961_v40  ;;  %6761 = vmatprep.mubr.msk.f32.mxu0 %vm39_vm0, %v2972_v41  ;;  %v6467_v8 = vld [vmem:[%s8215_s2 + $0x38] sm:$0xff] }
 0xb66   :  { %v6959_v33 = vpack.c.bf16 %v6467_v8, %v6466_v30 }
 0xb67   :  { %v2973_v46 = vadd.f32 %v2971_v36, %v2967_v44  ;;  %v3188_v44 = vsub.s32 6, %v7282_v9 }
 0xb69   :  { %6762 = vmatmul.mubr.msk.f32.vlgmr.msra.gmra.mrb[18].mxu0 %vm39_vm0, %v2973_v46  ;;  %v3189_v47 = vrot.slane %v7164_v52, %v3188_v44 }
 0xb6a   :  { %6958 = vmatpush3.bf16.msra.mxu0 %v6955_v29 }
 0xb6b   :  { %6960 = vmatprep.subr.bf16.mxu0 %v6959_v33 }
 0xb6e   :  { %6962 = vmatpush3.bf16.msra.mxu0 %v6959_v33 }
 0xb6f   :  { %6794 = vmatprep.subr.mxu0 %v7194_v17 }
 0xc3c   :  { %v6763_v56 = vpop.f32.mrb[18].mxu0 }
 0xc3d   :  { %v3060_v57 = vadd.f32 %v6763_v56, %v2981_v55  ;;  %v3054_v59 = vpop.f32.mrb[19].mxu0 }
 0xc3e   :  { %v3055_v61 = vadd.f32 %v3054_v59, %v2981_v55 }
 0xc3f   :  { %v3064_v63 = vmax.f32 %v3060_v57, 0.0 }
 0xc40   :  { %v3063_v62 = vmax.f32 %v3055_v61, 0.0 }
 0xc42   :  { %6780 = vmatprep.mubr.msk.f32.mxu1 %vm2827_vm5, %v3063_v62 }
 0xc43   :  { %6781 = vmatmul.mubr.msk.f32.vlgmr.msra.gmra.mrb[18].mxu1 %vm2827_vm5, %v3064_v63 }
 0xc44   :  { %6806 = vmatprep.mubr.msk.f32.mxu1 %vm7195_vm1, %v7194_v17 }
 0xd16   :  { %v6782_v7 = vpop.f32.mrb[18].mxu1 }
 0xd17   :  { %v3155_v5 = vadd.f32 %v6782_v7, %v3076_v1  ;;  %v3149_v2 = vpop.f32.mrb[19].mxu1 }
 0xd18   :  { %v3150_v51 = vadd.f32 %v3149_v2, %v3076_v1  ;;  %v7656_v1 = vld [vmem:[%s8218_s5 + $0x8] sm:$0xff] }
 0xd19   :  { %v3159_v53 = vadd.f32 %v3155_v5, %v2973_v46  ;;  %v3194_v46 = vsub.s32 7, %v7282_v9 }
 0xd1a   :  { %v3158_v58 = vadd.f32 %v3150_v51, %v2972_v41 }
 0xd1b   :  { %v3163_v4 = vsel %vm39_vm0, %v3159_v53, 0.0  ;;  %v3195_v57 = vrot.slane %v7164_v52, %v3194_v46  ;;  %v3208_v52 = vrot.slane %v7656_v1, %v7285_v10 }
 0xd1c   :  { %3164 = vadd.xlane.f32.xlu0 %v3163_v4  ;;  %v3160_v12 = vsel %vm39_vm0, %v3158_v58, 0.0 }
 0xd1d   :  { %3161 = vadd.xlane.f32.xlu1 %v3160_v12 }
 0xda9   :  { %v3165_v13 = vpop.xlane.xlu0 %3164 }
 0xdaa   :  { %v3167_v15 = vmul.f32 0.03125, %v3165_v13  ;;  %v3162_v19 = vpop.xlane.xlu1 %3161 }
 0xdab   :  { %v3166_v20 = vmul.f32 0.03125, %v3162_v19 }
 0xdac   :  { %v3169_v21 = vsub.f32 %v3159_v53, %v3167_v15 }
 0xdad   :  { %v3168_v22 = vsub.f32 %v3158_v58, %v3166_v20 }
 0xdae   :  { %v3171_v23 = vmul.f32 %v3169_v21, %v3169_v21 }
 0xdaf   :  { %v3170_v24 = vmul.f32 %v3168_v22, %v3168_v22 }
 0xdb0   :  { %v3175_v25 = vsel %vm39_vm0, %v3171_v23, 0.0 }
 0xdb1   :  { %3176 = vadd.xlane.f32.xlu0 %v3175_v25  ;;  %v3172_v26 = vsel %vm39_vm0, %v3170_v24, 0.0 }
 0xdb2   :  { %3173 = vadd.xlane.f32.xlu1 %v3172_v26 }
 0xe3e   :  { %v3177_v35 = vpop.xlane.xlu0 %3176 }
 0xe3f   :  { %v3179_v36 = vmul.f32 0.03125, %v3177_v35  ;;  %v3174_v37 = vpop.xlane.xlu1 %3173 }
 0xe40   :  { %v3178_v39 = vmul.f32 0.03125, %v3174_v37 }
 0xe41   :  { %v3181_v40 = vadd.f32 1e-05, %v3179_v36 }
 0xe42   :  { %v3180_v41 = vadd.f32 1e-05, %v3178_v39 }
 0xe43   :  { %7052 = vrsqrt.f32 %v3181_v40 }
 0xe44   :  { %7054 = vrsqrt.f32 %v3180_v41 }
 0xe4d   :  { %v7053_v48 = vpop.eup %7052 }
 0xe4e   :  { %v7055_v49 = vpop.eup %7054  ;;  %v3185_v55 = vmul.f32 %v7053_v48, %v3169_v21 }
 0xe4f   :  { %v3184_v56 = vmul.f32 %v7055_v49, %v3168_v22 }
 0xe50   :  { %v3191_v59 = vmul.f32 %v3189_v47, %v3185_v55 }
 0xe51   :  { %v3190_v61 = vmul.f32 %v3189_v47, %v3184_v56 }
 0xe52   :  { %v7645_v63 = vadd.f32 %v3195_v57, %v3191_v59 }
 0xe53   :  { %v7643_v62 = vadd.f32 %v3195_v57, %v3190_v61 }
 0xe55   :  { %6791 = vmatprep.mubr.msk.f32.mxu0 %vm39_vm0, %v7643_v62 }
 0xe56   :  { %6792 = vmatmul.mubr.msk.f32.vlgmr.msra.gmra.mrb[20].mxu0 %vm39_vm0, %v7645_v63 }
 0xe57   :  { %6796 = vmatprep.mubr.msk.f32.mxu0 %vm7195_vm1, %v7194_v17 }
 0xf29   :  { %v6793_v7 = vpop.f32.mrb[20].mxu0 }
 0xf2a   :  { %v7660_v5 = vadd.f32 %v6793_v7, %v3208_v52  ;;  %v3281_v2 = vpop.f32.mrb[21].mxu0 }
 0xf2b   :  { %v7662_v51 = vadd.f32 %v3281_v2, %v3208_v52 }
 0xf2d   :  { %3317 = vrot.lane.b32.xlu0 %v7662_v51, %s7193_s21  ;;  %3315 = vrot.lane.b32.xlu1 %v7662_v51, %s7191_s19 }
 0xf31   :  { %3319 = vrot.lane.b32.xlu1 %v7662_v51, %s7190_s0 }
 0xf35   :  { %3321 = vrot.lane.b32.xlu1 %v7662_v51, %s7192_s20 }
 0xf9f   :  { %v3318_v53 = vpop.permute.xlu0 %3317  ;;  %v3316_v58 = vpop.permute.xlu1 %3315 }
 0xfa0   :  { %3325 = vrot.lane.b32.xlu1 %v3318_v53, %s7192_s20  ;;  %3323 = vrot.lane.b32.xlu0 %v3316_v58, %s7192_s20 }
 0xfa3   :  { %v3320_v4 = vpop.permute.xlu1 %3319 }
 0xfa4   :  { %3327 = vrot.lane.b32.xlu0 %v3320_v4, %s7192_s20 }
 0xfa7   :  { %v3322_v12 = vpop.permute.xlu1 %3321 }
 0xfc9   :  { %3333 = vxpose.xlu1.b32.start.end [1/1] (short) (narrow) %v3322_v12, 8 }
0x1012   :  { %v3324_v13 = vpop.permute.xlu0 %3323  ;;  %v3326_v15 = vpop.permute.xlu1 %3325 }
0x1013   :  { %3365 = vxpose.xlu0.b32.start.end [1/1] (short) (narrow) %v3324_v13, 8 }
0x1016   :  { %v3328_v19 = vpop.permute.xlu0 %3327 }
0x1017   :  { %3397 = vxpose.xlu0.b32.start.end [1/1] (short) (narrow) %v3326_v15, 8 }
0x101b   :  { %3429 = vxpose.xlu0.b32.start.end [1/1] (short) (narrow) %v3328_v19, 8 }
0x1049   :  { %v3349_v20 = vpop.trf.xlu1 }
0x104a   :  { %6795 = vmatpush3.msra.mxu0 %v3349_v20 }
0x104b   :  { %6797 = vmatmul.mubr.msk.f32.vlgmr.msra.gmra.mrb[22].mxu0 %vm292_vm2, %v7662_v51  ;;  %6799 = vmatprep.subr.mxu0 %v7194_v17 }
0x104c   :  { %6801 = vmatprep.mubr.msk.f32.mxu0 %vm7195_vm1, %v7194_v17 }
0x1093   :  { %v3381_v21 = vpop.trf.xlu0 }
0x1094   :  { %6800 = vmatpush3.msra.mxu0 %v3381_v21 }
0x1095   :  { %6802 = vmatmul.mubr.msk.f32.vlgmr.msra.gmra.mrb[24].mxu0 %vm292_vm2, %v3316_v58  ;;  %6809 = vmatprep.subr.mxu0 %v7194_v17 }
0x1096   :  { %6811 = vmatprep.mubr.msk.f32.mxu0 %vm7195_vm1, %v7194_v17 }
0x1097   :  { %v3413_v22 = vpop.trf.xlu0 }
0x1098   :  { %6805 = vmatpush3.msra.mxu1 %v3413_v22 }
0x1099   :  { %6807 = vmatmul.mubr.msk.f32.vlgmr.msra.gmra.mrb[20].mxu1 %vm292_vm2, %v3318_v53  ;;  %6814 = vmatprep.subr.mxu1 %v7194_v17 }
0x109a   :  { %6816 = vmatprep.mubr.msk.f32.mxu1 %vm7195_vm1, %v7194_v17 }
0x109b   :  { %v3445_v23 = vpop.trf.xlu0 }
0x109c   :  { %6810 = vmatpush3.msra.mxu0 %v3445_v23 }
0x109d   :  { %6812 = vmatmul.mubr.msk.f32.vlgmr.msra.gmra.mrb[26].mxu0 %vm292_vm2, %v3320_v4  ;;  %6819 = vmatprep.subr.mxu0 %v7194_v17 }
0x109e   :  { %6821 = vmatprep.mubr.msk.f32.mxu0 %vm7195_vm1, %v7194_v17 }
0x111e   :  { %v3529_v24 = vpop.f32.mrb[22].mxu0 }
0x111f   :  { %v6798_v25 = vpop.f32.mrb[23].mxu0  ;;  %v3749_v26 = vsel %vm292_vm2, %v3529_v24, -inf }
0x1120   :  { %3750 = vmax.xlane.f32.xlu1 %v3749_v26 }
0x1131   :  { %4625 = vrot.lane.b32.xlu1 %v7660_v5, %s7193_s21 }
0x1135   :  { %4627 = vrot.lane.b32.xlu1 %v7660_v5, %s7190_s0 }
0x1139   :  { %3901 = vrot.lane.b32.xlu1 %v3316_v58, %s7196_s22 }
0x1168   :  { %v3601_v27 = vpop.f32.mrb[24].mxu0 }
0x1169   :  { %v6803_v28 = vpop.f32.mrb[25].mxu0  ;;  %v3752_v29 = vsel %vm292_vm2, %v3601_v27, -inf }
0x116a   :  { %3753 = vmax.xlane.f32.xlu0 %v3752_v29 }
0x116c   :  { %v3673_v30 = vpop.f32.mrb[20].mxu1 }
0x116d   :  { %v6808_v8 = vpop.f32.mrb[21].mxu1  ;;  %v3755_v33 = vsel %vm292_vm2, %v3673_v30, -inf }
0x116e   :  { %3756 = vmax.xlane.f32.xlu1 %v3755_v33 }
0x1170   :  { %v3745_v35 = vpop.f32.mrb[26].mxu0 }
0x1171   :  { %v6813_v36 = vpop.f32.mrb[27].mxu0  ;;  %v3758_v37 = vsel %vm292_vm2, %v3745_v35, -inf }
0x1172   :  { %3759 = vmax.xlane.f32.xlu1 %v3758_v37 }
0x1180   :  { %4623 = vrot.lane.b32.xlu0 %v7660_v5, %s7191_s19 }
0x1183   :  { %3905 = vrot.lane.b32.xlu1 %v3320_v4, %s7196_s22 }
0x1184   :  { %3899 = vrot.lane.b32.xlu0 %v7662_v51, %s7196_s22 }
0x1188   :  { %3903 = vrot.lane.b32.xlu0 %v3318_v53, %s7196_s22 }
0x118c   :  { %4629 = vrot.lane.b32.xlu0 %v7660_v5, %s7192_s20 }
0x11ad   :  { %v3751_v39 = vpop.xlane.xlu1 %3750 }
0x11ae   :  { %v3761_v40 = vsub.f32 %v3529_v24, %v3751_v39 }
0x11b0   :  { %v3765_v41 = vmul.f32 1.442695, %v3761_v40 }
0x11b1   :  { %v7710_v49 = vpop.permute.xlu1 %4625 }
0x11b2   :  { %7056 = vpow2.f32 %v3765_v41 }
0x11b5   :  { %v7712_v55 = vpop.permute.xlu1 %4627 }
0x11b9   :  { %v3902_v56 = vpop.permute.xlu1 %3901 }
0x11bc   :  { %v7057_v47 = vpop.eup %7056 }
0x11bd   :  { %v3773_v48 = vsel %vm292_vm2, %v7057_v47, 0.0 }
0x11be   :  { %3774 = vadd.xlane.f32.xlu0 %v3773_v48 }
0x11f7   :  { %v3754_v57 = vpop.xlane.xlu0 %3753 }
0x11f8   :  { %v3762_v53 = vsub.f32 %v3601_v27, %v3754_v57 }
0x11fa   :  { %v3767_v12 = vmul.f32 1.442695, %v3762_v53 }
0x11fb   :  { %v3757_v59 = vpop.xlane.xlu1 %3756  ;;  %v7714_v61 = vpop.permute.xlu0 %4623 }
0x11fc   :  { %v3763_v52 = vsub.f32 %v3673_v30, %v3757_v59  ;;  %4631 = vrot.lane.b32.xlu1 %v7714_v61, %s7192_s20 }
0x11fe   :  { %v3769_v7 = vmul.f32 1.442695, %v3763_v52 }
0x11ff   :  { %v3760_v58 = vpop.xlane.xlu1 %3759  ;;  %v3900_v23 = vpop.permute.xlu0 %3899 }
0x1200   :  { %7058 = vpow2.f32 %v3769_v7  ;;  %v3764_v13 = vsub.f32 %v3745_v35, %v3760_v58 }
0x1201   :  { %7060 = vpow2.f32 %v3767_v12 }
0x1202   :  { %v3771_v15 = vmul.f32 1.442695, %v3764_v13 }
0x1203   :  { %v3904_v24 = vpop.permute.xlu0 %3903  ;;  %v3906_v25 = vpop.permute.xlu1 %3905 }
0x1204   :  { %7062 = vpow2.f32 %v3771_v15 }
0x1207   :  { %v4630_v26 = vpop.permute.xlu0 %4629 }
0x120a   :  { %v7059_v2 = vpop.eup %7058 }
0x120b   :  { %v3779_v4 = vsel %vm292_vm2, %v7059_v2, 0.0  ;;  %v7061_v19 = vpop.eup %7060 }
0x120c   :  { %3780 = vadd.xlane.f32.xlu0 %v3779_v4  ;;  %v3776_v20 = vsel %vm292_vm2, %v7061_v19, 0.0 }
0x120e   :  { %v7720_v21 = vpop.eup %7062 }
0x120f   :  { %v3782_v22 = vsel %vm292_vm2, %v7720_v21, 0.0 }
0x1220   :  { %3777 = vadd.xlane.f32.xlu1 %v3776_v20 }
0x1222   :  { %4633 = vrot.lane.b32.xlu0 %v7710_v49, %s7192_s20 }
0x1224   :  { %3783 = vadd.xlane.f32.xlu1 %v3782_v22 }
0x1235   :  { %4635 = vrot.lane.b32.xlu1 %v7712_v55, %s7192_s20 }
0x1240   :  { %3911 = vxpose.xlu0.b32.start.end [1/1] (short) (narrow) %v3900_v23, 8 }
0x1244   :  { %3975 = vxpose.xlu0.b32.start.end [1/1] (short) (narrow) %v3904_v24, 8 }
0x1248   :  { %4007 = vxpose.xlu0.b32.start.end [1/1] (short) (narrow) %v3906_v25, 8 }
0x124b   :  { %v3775_v27 = vpop.xlane.xlu0 %3774 }
0x124c   :  { %7064 = vrcp.f32 %v3775_v27  ;;  %4641 = vxpose.xlu0.b32.start.end [1/1] (short) (narrow) %v4630_v26, 8 }
0x1256   :  { %v7065_v28 = vpop.eup %7064 }
0x1257   :  { %v3789_v29 = vmul.f32 %v7065_v28, %v3775_v27 }
0x1259   :  { %v3793_v30 = vsub.f32 2.0, %v3789_v29 }
0x125b   :  { %v3797_v8 = vmul.f32 %v7065_v28, %v3793_v30 }
0x125d   :  { %v7728_v33 = vmul.f32 %v7057_v47, %v3797_v8 }
0x125e   :  { %3943 = vxpose.xlu1.b32.start.end [1/1] (short) (narrow) %v3902_v56, 8 }
0x125f   :  { %6815 = vmatpush3.xpose.msk.msra.mxu1 %vm292_vm2, %v7728_v33 }
0x1260   :  { %6824 = vmatprep.subr.mxu1 %v7194_v17 }
0x126e   :  { %v4632_v35 = vpop.permute.xlu1 %4631 }
0x126f   :  { %4673 = vxpose.xlu1.b32.start.end [1/1] (short) (narrow) %v4632_v35, 8 }
0x1299   :  { %v3781_v36 = vpop.xlane.xlu0 %3780 }
0x129a   :  { %7066 = vrcp.f32 %v3781_v36 }
0x129d   :  { %v4634_v37 = vpop.permute.xlu0 %4633 }
0x129e   :  { %4705 = vxpose.xlu0.b32.start.end [1/1] (short) (narrow) %v4634_v37, 8 }
0x12a4   :  { %v7067_v40 = vpop.eup %7066 }
0x12a5   :  { %v3791_v48 = vmul.f32 %v7067_v40, %v3781_v36 }
0x12a7   :  { %v3795_v56 = vsub.f32 2.0, %v3791_v48 }
0x12a9   :  { %v3799_v7 = vmul.f32 %v7067_v40, %v3795_v56 }
0x12ab   :  { %v7735_v4 = vmul.f32 %v7059_v2, %v3799_v7 }
0x12ad   :  { %v3778_v39 = vpop.xlane.xlu1 %3777 }
0x12ae   :  { %7068 = vrcp.f32 %v3778_v39 }
0x12b1   :  { %v3784_v41 = vpop.xlane.xlu1 %3783 }
0x12b2   :  { %7070 = vrcp.f32 %v3784_v41 }
0x12b5   :  { %v4636_v57 = vpop.permute.xlu1 %4635 }
0x12b6   :  { %4737 = vxpose.xlu1.b32.start.end [1/1] (short) (narrow) %v4636_v57, 8 }
0x12b8   :  { %v7069_v47 = vpop.eup %7068 }
0x12b9   :  { %v3790_v59 = vmul.f32 %v7069_v47, %v3778_v39 }
0x12bb   :  { %v3794_v52 = vsub.f32 2.0, %v3790_v59 }
0x12bd   :  { %v3798_v53 = vmul.f32 %v7069_v47, %v3794_v52 }
0x12bf   :  { %v7733_v58 = vmul.f32 %v7061_v19, %v3798_v53  ;;  %v7071_v19 = vpop.eup %7070 }
0x12c0   :  { %v3927_v12 = vpop.trf.xlu0  ;;  %v3792_v20 = vmul.f32 %v7071_v19, %v3784_v41 }
0x12c1   :  { %6817 = vmatmul.mubr.msk.f32.vlgmr.msra.gmra.mrb[22].mxu1 %vm292_vm2, %v3927_v12  ;;  %6820 = vmatpush3.xpose.msk.msra.mxu0 %vm292_vm2, %v7733_v58 }
0x12c2   :  { %6825 = vmatpush3.xpose.msk.msra.mxu1 %vm292_vm2, %v7735_v4  ;;  %6826 = vmatprep.mubr.msk.f32.mxu1 %vm7195_vm1, %v7194_v17  ;;  %v3796_v22 = vsub.f32 2.0, %v3792_v20 }
0x12c3   :  { %6834 = vmatprep.subr.mxu1 %v7194_v17  ;;  %6829 = vmatprep.subr.mxu0 %v7194_v17 }
0x12c4   :  { %v3991_v13 = vpop.trf.xlu0  ;;  %v3800_v23 = vmul.f32 %v7071_v19, %v3796_v22 }
0x12c5   :  { %6827 = vmatmul.mubr.msk.f32.vlgmr.msra.gmra.mrb[24].mxu1 %vm292_vm2, %v3991_v13 }
0x12c6   :  { %6836 = vmatprep.mubr.msk.f32.mxu1 %vm7195_vm1, %v7194_v17  ;;  %v7755_v24 = vmul.f32 %v7720_v21, %v3800_v23 }
0x12c8   :  { %v4023_v2 = vpop.trf.xlu0 }
0x12cc   :  { %v4657_v15 = vpop.trf.xlu0 }
0x12cd   :  { %6835 = vmatpush3.msra.mxu1 %v4657_v15 }
0x12ce   :  { %6837 = vmatmul.mubr.msk.f32.vlgmr.msra.gmra.mrb[26].mxu1 %vm292_vm2, %v7660_v5  ;;  %6844 = vmatprep.subr.mxu1 %v7194_v17 }
0x12cf   :  { %6846 = vmatprep.mubr.msk.f32.mxu1 %vm7195_vm1, %v7194_v17 }
0x12de   :  { %v3959_v25 = vpop.trf.xlu1 }
0x12df   :  { %6822 = vmatmul.mubr.msk.f32.vlgmr.msra.gmra.mrb[28].mxu0 %vm292_vm2, %v3959_v25 }
0x12e0   :  { %6830 = vmatpush3.xpose.msk.msra.mxu0 %vm292_vm2, %v7755_v24  ;;  %6831 = vmatprep.mubr.msk.f32.mxu0 %vm7195_vm1, %v7194_v17 }
0x12e1   :  { %6839 = vmatprep.subr.mxu0 %v7194_v17 }
0x12e3   :  { %6832 = vmatmul.mubr.msk.f32.vlgmr.msra.gmra.mrb[30].mxu0 %vm292_vm2, %v4023_v2 }
0x12e4   :  { %6841 = vmatprep.mubr.msk.f32.mxu0 %vm7195_vm1, %v7194_v17 }
0x12ef   :  { %v4689_v26 = vpop.trf.xlu1 }
0x12f0   :  { %6840 = vmatpush3.msra.mxu0 %v4689_v26 }
0x12f1   :  { %6842 = vmatmul.mubr.msk.f32.vlgmr.msra.gmra.mrb[32].mxu0 %vm292_vm2, %v7714_v61  ;;  %6849 = vmatprep.subr.mxu0 %v7194_v17 }
0x12f2   :  { %6851 = vmatprep.mubr.msk.f32.mxu0 %vm7195_vm1, %v7194_v17 }
0x131e   :  { %v4721_v21 = vpop.trf.xlu0 }
0x131f   :  { %6845 = vmatpush3.msra.mxu1 %v4721_v21 }
0x1320   :  { %6847 = vmatmul.mubr.msk.f32.vlgmr.msra.gmra.mrb[28].mxu1 %vm292_vm2, %v7710_v49  ;;  %6854 = vmatprep.subr.mxu1 %v7194_v17 }
0x1321   :  { %6856 = vmatprep.mubr.msk.f32.mxu1 %vm7195_vm1, %v7194_v17 }
0x1336   :  { %v4753_v27 = vpop.trf.xlu1 }
0x1337   :  { %6850 = vmatpush3.msra.mxu0 %v4753_v27 }
0x1338   :  { %6852 = vmatmul.mubr.msk.f32.vlgmr.msra.gmra.mrb[34].mxu0 %vm292_vm2, %v7712_v55  ;;  %6859 = vmatprep.subr.mxu0 %v7194_v17 }
0x1339   :  { %6861 = vmatprep.mubr.msk.f32.mxu0 %vm7195_vm1, %v7194_v17 }
0x1394   :  { %v7781_v28 = vpop.f32.mrb[22].mxu1 }
0x1395   :  { %v6818_v29 = vpop.f32.mrb[23].mxu1 }
0x1398   :  { %v7783_v30 = vpop.f32.mrb[24].mxu1 }
0x1399   :  { %v6828_v8 = vpop.f32.mrb[25].mxu1 }
0x13a1   :  { %v4837_v35 = vpop.f32.mrb[26].mxu1 }
0x13a2   :  { %v6838_v36 = vpop.f32.mrb[27].mxu1  ;;  %v5057_v37 = vsel %vm292_vm2, %v4837_v35, -inf }
0x13a3   :  { %5058 = vmax.xlane.f32.xlu0 %v5057_v37 }
0x13b2   :  { %v7786_v39 = vpop.f32.mrb[28].mxu0 }
0x13b3   :  { %v6823_v40 = vpop.f32.mrb[29].mxu0 }
0x13b6   :  { %v7788_v41 = vpop.f32.mrb[30].mxu0 }
0x13b7   :  { %v6833_v48 = vpop.f32.mrb[31].mxu0 }
0x13c4   :  { %v4909_v57 = vpop.f32.mrb[32].mxu0 }
0x13c5   :  { %v6843_v47 = vpop.f32.mrb[33].mxu0  ;;  %v5060_v56 = vsel %vm292_vm2, %v4909_v57, -inf }
0x13c6   :  { %5061 = vmax.xlane.f32.xlu1 %v5060_v56 }
0x13f3   :  { %v4981_v59 = vpop.f32.mrb[28].mxu1 }
0x13f4   :  { %v6848_v52 = vpop.f32.mrb[29].mxu1  ;;  %v5063_v7 = vsel %vm292_vm2, %v4981_v59, -inf }
0x13f5   :  { %5064 = vmax.xlane.f32.xlu1 %v5063_v7 }
0x1406   :  { %5207 = vrot.lane.b32.xlu1 %v7660_v5, %s7196_s22 }
0x140b   :  { %v5053_v53 = vpop.f32.mrb[34].mxu0 }
0x140c   :  { %v6853_v12 = vpop.f32.mrb[35].mxu0  ;;  %v5066_v13 = vsel %vm292_vm2, %v5053_v53, -inf }
0x140d   :  { %5067 = vmax.xlane.f32.xlu0 %v5066_v13 }
0x1423   :  { %5209 = vrot.lane.b32.xlu0 %v7714_v61, %s7196_s22 }
0x1430   :  { %v5059_v2 = vpop.xlane.xlu0 %5058 }
0x1431   :  { %v5069_v15 = vsub.f32 %v4837_v35, %v5059_v2 }
0x1433   :  { %v5073_v19 = vmul.f32 1.442695, %v5069_v15 }
0x1435   :  { %7072 = vpow2.f32 %v5073_v19 }
0x143f   :  { %v7073_v20 = vpop.eup %7072 }
0x1440   :  { %v5081_v22 = vsel %vm292_vm2, %v7073_v20, 0.0 }
0x1441   :  { %5082 = vadd.xlane.f32.xlu1 %v5081_v22 }
0x1453   :  { %v5062_v23 = vpop.xlane.xlu1 %5061 }
0x1454   :  { %v5070_v25 = vsub.f32 %v4909_v57, %v5062_v23 }
0x1456   :  { %v5075_v26 = vmul.f32 1.442695, %v5070_v25 }
0x1458   :  { %7074 = vpow2.f32 %v5075_v26 }
0x1462   :  { %v7075_v21 = vpop.eup %7074 }
0x1463   :  { %v5084_v27 = vsel %vm292_vm2, %v7075_v21, 0.0 }
0x1464   :  { %5085 = vadd.xlane.f32.xlu0 %v5084_v27 }
0x1482   :  { %v5065_v29 = vpop.xlane.xlu1 %5064 }
0x1483   :  { %v5071_v8 = vsub.f32 %v4981_v59, %v5065_v29 }
0x1485   :  { %v5077_v36 = vmul.f32 1.442695, %v5071_v8 }
0x1486   :  { %v5208_v56 = vpop.permute.xlu1 %5207 }
0x1487   :  { %7076 = vpow2.f32 %v5077_v36 }
0x1491   :  { %v7077_v61 = vpop.eup %7076 }
0x1492   :  { %v5087_v35 = vsel %vm292_vm2, %v7077_v61, 0.0 }
0x1493   :  { %5088 = vadd.xlane.f32.xlu1 %v5087_v35 }
0x149a   :  { %v5068_v37 = vpop.xlane.xlu0 %5067 }
0x149b   :  { %v5072_v40 = vsub.f32 %v5053_v53, %v5068_v37 }
0x149d   :  { %v5079_v48 = vmul.f32 1.442695, %v5072_v40 }
0x149e   :  { %v5210_v53 = vpop.permute.xlu0 %5209 }
0x149f   :  { %7078 = vpow2.f32 %v5079_v48 }
0x14a4   :  { %5211 = vrot.lane.b32.xlu1 %v7710_v49, %s7196_s22 }
0x14a9   :  { %v7079_v57 = vpop.eup %7078 }
0x14aa   :  { %v5090_v47 = vsel %vm292_vm2, %v7079_v57, 0.0 }
0x14ab   :  { %5091 = vadd.xlane.f32.xlu0 %v5090_v47 }
0x14c1   :  { %5213 = vrot.lane.b32.xlu0 %v7712_v55, %s7196_s22 }
0x14cd   :  { %5219 = vxpose.xlu1.b32.start.end [1/1] (short) (narrow) %v5208_v56, 8 }
0x14ce   :  { %v5083_v59 = vpop.xlane.xlu1 %5082 }
0x14cf   :  { %7080 = vrcp.f32 %v5083_v59 }
0x14d9   :  { %v7081_v52 = vpop.eup %7080 }
0x14da   :  { %v5097_v7 = vmul.f32 %v7081_v52, %v5083_v59 }
0x14dc   :  { %v5101_v12 = vsub.f32 2.0, %v5097_v7 }
0x14de   :  { %v5105_v13 = vmul.f32 %v7081_v52, %v5101_v12 }
0x14df   :  { %5251 = vxpose.xlu0.b32.start.end [1/1] (short) (narrow) %v5210_v53, 8 }
0x14e0   :  { %v7805_v2 = vmul.f32 %v7073_v20, %v5105_v13 }
0x14e2   :  { %6855 = vmatpush3.xpose.msk.msra.mxu1 %vm292_vm2, %v7805_v2 }
0x14e3   :  { %6864 = vmatprep.subr.mxu1 %v7194_v17 }
0x14f1   :  { %v5086_v49 = vpop.xlane.xlu0 %5085 }
0x14f2   :  { %7082 = vrcp.f32 %v5086_v49 }
0x14fc   :  { %v7083_v55 = vpop.eup %7082 }
0x14fd   :  { %v5098_v15 = vmul.f32 %v7083_v55, %v5086_v49 }
0x14ff   :  { %v5102_v19 = vsub.f32 2.0, %v5098_v15 }
0x1501   :  { %v5106_v22 = vmul.f32 %v7083_v55, %v5102_v19 }
0x1503   :  { %v7810_v23 = vmul.f32 %v7075_v21, %v5106_v22 }
0x1505   :  { %6860 = vmatpush3.xpose.msk.msra.mxu0 %vm292_vm2, %v7810_v23 }
0x1506   :  { %6869 = vmatprep.subr.mxu0 %v7194_v17 }
0x1520   :  { %v5089_v20 = vpop.xlane.xlu1 %5088 }
0x1521   :  { %7084 = vrcp.f32 %v5089_v20 }
0x1524   :  { %v5212_v25 = vpop.permute.xlu1 %5211 }
0x1525   :  { %5283 = vxpose.xlu0.b32.start.end [1/1] (short) (narrow) %v5212_v25, 8 }
0x1529   :  { %4343 = vxpose.xlu0.b32.start.end [1/1] (short) (narrow) %v7781_v28, 8 }
0x152b   :  { %v7085_v29 = vpop.eup %7084 }
0x152c   :  { %v5099_v8 = vmul.f32 %v7085_v29, %v5089_v20 }
0x152d   :  { %4407 = vxpose.xlu0.b32.start.end [1/1] (short) (narrow) %v7783_v30, 8 }
0x152e   :  { %v5103_v21 = vsub.f32 2.0, %v5099_v8 }
0x1530   :  { %v5107_v36 = vmul.f32 %v7085_v29, %v5103_v21 }
0x1532   :  { %v7819_v35 = vmul.f32 %v7077_v61, %v5107_v36 }
0x1538   :  { %v5092_v26 = vpop.xlane.xlu0 %5091 }
0x1539   :  { %7086 = vrcp.f32 %v5092_v26 }
0x153c   :  { %v5214_v27 = vpop.permute.xlu0 %5213 }
0x153d   :  { %5315 = vxpose.xlu1.b32.start.end [1/1] (short) (narrow) %v5214_v27, 8 }
0x1541   :  { %4375 = vxpose.xlu1.b32.start.end [1/1] (short) (narrow) %v7786_v39, 8 }
0x1543   :  { %v7087_v28 = vpop.eup %7086 }
0x1544   :  { %v5100_v30 = vmul.f32 %v7087_v28, %v5092_v26 }
0x1545   :  { %4439 = vxpose.xlu1.b32.start.end [1/1] (short) (narrow) %v7788_v41, 8 }
0x1546   :  { %v5104_v40 = vsub.f32 2.0, %v5100_v30 }
0x1548   :  { %v5108_v39 = vmul.f32 %v7087_v28, %v5104_v40 }
0x154a   :  { %v7826_v48 = vmul.f32 %v7079_v57, %v5108_v39 }
0x154d   :  { %v5235_v37 = vpop.trf.xlu1 }
0x154e   :  { %6857 = vmatmul.mubr.msk.f32.vlgmr.msra.gmra.mrb[30].mxu1 %vm292_vm2, %v5235_v37 }
0x154f   :  { %6865 = vmatpush3.xpose.msk.msra.mxu1 %vm292_vm2, %v7819_v35  ;;  %6866 = vmatprep.mubr.msk.f32.mxu1 %vm7195_vm1, %v7194_v17 }
0x155f   :  { %v5267_v41 = vpop.trf.xlu0 }
0x1560   :  { %6862 = vmatmul.mubr.msk.f32.vlgmr.msra.gmra.mrb[36].mxu0 %vm292_vm2, %v5267_v41 }
0x1561   :  { %6870 = vmatpush3.xpose.msk.msra.mxu0 %vm292_vm2, %v7826_v48  ;;  %6871 = vmatprep.mubr.msk.f32.mxu0 %vm7195_vm1, %v7194_v17  ;;  %vm2841_vm1 = vcmask 982016  }
0x15a5   :  { %v5299_v61 = vpop.trf.xlu0 }
0x15a6   :  { %6867 = vmatmul.mubr.msk.f32.vlgmr.msra.gmra.mrb[32].mxu1 %vm292_vm2, %v5299_v61 }
0x15a9   :  { %v4359_v12 = vpop.trf.xlu0 }
0x15ad   :  { %v4423_v55 = vpop.trf.xlu0 }
0x15ae   :  { %v4471_v19 = vcombine.low %v4359_v12, %v4423_v55  ;;  %v4472_v22 = vcombine.high %v4359_v12, %v4423_v55 }
0x15b0   :  { %v4479_v26 = vrot.slane %v4471_v19, %v7476_v50  ;;  %v4486_v27 = vrot.slane %v4472_v22, %v7476_v50 }
0x15bd   :  { %v5331_v47 = vpop.trf.xlu1 }
0x15be   :  { %6872 = vmatmul.mubr.msk.f32.vlgmr.msra.gmra.mrb[38].mxu0 %vm292_vm2, %v5331_v47 }
0x15c1   :  { %v4391_v7 = vpop.trf.xlu1 }
0x15c5   :  { %v4455_v49 = vpop.trf.xlu1 }
0x15c6   :  { %v4487_v17 = vcombine.low %v4391_v7, %v4455_v49  ;;  %v4488_v15 = vcombine.high %v4391_v7, %v4455_v49 }
0x15c8   :  { %v4495_v20 = vrot.slane %v4487_v17, %v7476_v50  ;;  %v4502_v25 = vrot.slane %v4488_v15, %v7476_v50 }
0x15ca   :  { %v4503_v29 = vcombine.low %v4479_v26, %v4495_v20  ;;  %v4504_v8 = vcombine.high %v4479_v26, %v4495_v20  ;;  %v4519_v21 = vcombine.low %v4486_v27, %v4502_v25  ;;  %v4520_v36 = vcombine.high %v4486_v27, %v4502_v25  ;;  %v6505_v25 = vld [vmem:[%s8217_s4 + $0x60] sm:$0xff]  ;;  %v6506_v26 = vld [vmem:[%s8217_s4 + $0x68] sm:$0xff] }
0x15cb   :  { %v6963_v27 = vpack.c.bf16 %v6506_v26, %v6505_v25 }
0x15cc   :  { %v4511_v37 = vrot.slane %v4503_v29, %v7483_v42  ;;  %v4518_v28 = vrot.slane %v4504_v8, %v7483_v42  ;;  %v4527_v30 = vrot.slane %v4519_v21, %v7483_v42  ;;  %v4534_v40 = vrot.slane %v4520_v36, %v7483_v42 }
0x15cd   :  { %6964 = vmatprep.subr.bf16.mxu1 %v6963_v27 }
0x15ce   :  { %v4539_v39 = vcombine.low %v4511_v37, %v4518_v28  ;;  %v6487_v41 = vcombine.high %v4511_v37, %v4518_v28  ;;  %v4555_v61 = vcombine.low %v4527_v30, %v4534_v40  ;;  %v6488_v47 = vcombine.high %v4527_v30, %v4534_v40  ;;  %6966 = vmatpush3.bf16.msra.mxu1 %v6963_v27 }
0x15d0   :  { %v4562_v7 = vrot.slane %v4555_v61, %v7476_v50  ;;  %v4570_v12 = vrot.slane %v6488_v47, %v7476_v50 }
0x15d2   :  { %v4588_v19 = vcombine.high %v4562_v7, %v4570_v12 }
0x15d4   :  { %v4602_v20 = vrot.slane %v4588_v19, %v7483_v42 }
0x1621   :  { %v5419_v56 = vpop.f32.mrb[30].mxu1 }
0x1622   :  { %5651 = vxpose.xlu0.b32.start.end [1/1] (short) (narrow) %v5419_v56, 8  ;;  %v6858_v59 = vpop.f32.mrb[31].mxu1 }
0x1633   :  { %v5495_v57 = vpop.f32.mrb[36].mxu0 }
0x1634   :  { %5683 = vxpose.xlu1.b32.start.end [1/1] (short) (narrow) %v5495_v57, 8  ;;  %v6863_v52 = vpop.f32.mrb[37].mxu0  ;;  %v4546_v57 = vrot.slane %v4539_v39, %v7476_v50 }
0x1635   :  { %v4554_v52 = vrot.slane %v6487_v41, %v7476_v50 }
0x1637   :  { %v4572_v15 = vcombine.high %v4546_v57, %v4554_v52 }
0x1639   :  { %v4586_v22 = vrot.slane %v4572_v15, %v7483_v42 }
0x163b   :  { %v4605_v29 = vcombine.low %v4586_v22, %v4602_v20  ;;  %v4606_v8 = vcombine.high %v4586_v22, %v4602_v20 }
0x1679   :  { %v5571_v53 = vpop.f32.mrb[32].mxu1 }
0x167a   :  { %5715 = vxpose.xlu0.b32.start.end [1/1] (short) (narrow) %v5571_v53, 8  ;;  %v6868_v13 = vpop.f32.mrb[33].mxu1  ;;  %v4571_v53 = vcombine.low %v4546_v57, %v4554_v52 }
0x167b   :  { %v4587_v13 = vcombine.low %v4562_v7, %v4570_v12 }
0x167c   :  { %v7848_v49 = vrot.slane %v4571_v53, %v7483_v42  ;;  %v6507_v53 = vld [vmem:[%s8217_s4 + $0x70] sm:$0xff] }
0x167d   :  { %v7851_v55 = vrot.slane %v4587_v13, %v7483_v42  ;;  %v6508_v13 = vld [vmem:[%s8217_s4 + $0x78] sm:$0xff] }
0x167f   :  { %v4604_v17 = vcombine.high %v7848_v49, %v7851_v55 }
0x1691   :  { %v5647_v56 = vpop.f32.mrb[38].mxu0 }
0x1692   :  { %5747 = vxpose.xlu1.b32.start.end [1/1] (short) (narrow) %v5647_v56, 8  ;;  %v6873_v59 = vpop.f32.mrb[39].mxu0 }
0x16a2   :  { %v5667_v21 = vpop.trf.xlu0 }
0x16a3   :  { %4608 = vrot.lane.b32.xlu0 %v4604_v17, %s7199_s27  ;;  %v6967_v17 = vpack.c.bf16 %v6508_v13, %v6507_v53 }
0x16a5   :  { %6968 = vmatprep.subr.bf16.mxu1 %v6967_v17 }
0x16a6   :  { %6970 = vmatpush3.bf16.msra.mxu1 %v6967_v17 }
0x16b0   :  { %4612 = vrot.lane.b32.xlu1 %v4605_v29, %s7200_s28 }
0x16b4   :  { %4616 = vrot.lane.b32.xlu1 %v4606_v8, %s7201_s29  ;;  %v5699_v36 = vpop.trf.xlu1 }
0x16fa   :  { %v5731_v37 = vpop.trf.xlu0 }
0x16fb   :  { %v5779_v28 = vcombine.low %v5667_v21, %v5731_v37  ;;  %v5780_v30 = vcombine.high %v5667_v21, %v5731_v37 }
0x16fd   :  { %v5787_v61 = vrot.slane %v5779_v28, %v7476_v50  ;;  %v5794_v47 = vrot.slane %v5780_v30, %v7476_v50 }
0x1712   :  { %v5763_v40 = vpop.trf.xlu1 }
0x1713   :  { %v5795_v39 = vcombine.low %v5699_v36, %v5763_v40  ;;  %v5796_v41 = vcombine.high %v5699_v36, %v5763_v40 }
0x1715   :  { %v5803_v56 = vrot.slane %v5795_v39, %v7476_v50  ;;  %v5810_v59 = vrot.slane %v5796_v41, %v7476_v50  ;;  %v4603_v41 = vcombine.low %v7848_v49, %v7851_v55 }
0x1717   :  { %v5811_v57 = vcombine.low %v5787_v61, %v5803_v56  ;;  %v5812_v52 = vcombine.high %v5787_v61, %v5803_v56  ;;  %v5827_v7 = vcombine.low %v5794_v47, %v5810_v59  ;;  %v5828_v12 = vcombine.high %v5794_v47, %v5810_v59 }
0x1719   :  { %v5819_v15 = vrot.slane %v5811_v57, %v7483_v42  ;;  %v5826_v19 = vrot.slane %v5812_v52, %v7483_v42  ;;  %v5835_v22 = vrot.slane %v5827_v7, %v7483_v42  ;;  %v5842_v20 = vrot.slane %v5828_v12, %v7483_v42  ;;  %v4609_v57 = vpop.permute.xlu0 %4608 }
0x171a   :  { %v4619_v53 = vsel %vm292_vm2, %v4603_v41, %v4609_v57 }
0x171b   :  { %v5847_v25 = vcombine.low %v5819_v15, %v5826_v19  ;;  %v6502_v26 = vcombine.high %v5819_v15, %v5826_v19  ;;  %v5863_v27 = vcombine.low %v5835_v22, %v5842_v20  ;;  %v6503_v29 = vcombine.high %v5835_v22, %v5842_v20 }
0x171d   :  { %v5854_v8 = vrot.slane %v5847_v25, %v7476_v50  ;;  %v5862_v21 = vrot.slane %v6502_v26, %v7476_v50  ;;  %v5870_v36 = vrot.slane %v5863_v27, %v7476_v50  ;;  %v5878_v37 = vrot.slane %v6503_v29, %v7476_v50 }
0x171e   :  { %v6424_v26 = vmul.f32 -5.0, %v7296_v16 }
0x171f   :  { %v5880_v28 = vcombine.high %v5854_v8, %v5862_v21  ;;  %v5896_v30 = vcombine.high %v5870_v36, %v5878_v37  ;;  %v5879_v40 = vcombine.low %v5854_v8, %v5862_v21  ;;  %v5895_v39 = vcombine.low %v5870_v36, %v5878_v37 }
0x1720   :  { %v125_v27 = vmul.f32 1.442695, %v6424_v26  ;;  %v6008_v37 = vrot.slane %v7656_v1, %v7548_v38 }
0x1721   :  { %v5894_v61 = vrot.slane %v5880_v28, %v7483_v42  ;;  %v5910_v47 = vrot.slane %v5896_v30, %v7483_v42  ;;  %v5887_v56 = vrot.slane %v5879_v40, %v7483_v42  ;;  %v5903_v59 = vrot.slane %v5895_v39, %v7483_v42 }
0x1722   :  { %v4613_v52 = vpop.permute.xlu1 %4612  ;;  %7088 = vpow2.f32 %v125_v27 }
0x1723   :  { %v5913_v7 = vcombine.low %v5894_v61, %v5910_v47  ;;  %v5912_v12 = vcombine.high %v5887_v56, %v5903_v59  ;;  %v5911_v50 = vcombine.low %v5887_v56, %v5903_v59  ;;  %v4620_v49 = vsel %vm1452_vm3, %v4619_v53, %v4613_v52 }
0x1724   :  { %v5914_v17 = vcombine.high %v5894_v61, %v5910_v47 }
0x1725   :  { %5920 = vrot.lane.b32.xlu0 %v5913_v7, %s7200_s28  ;;  %5916 = vrot.lane.b32.xlu1 %v5912_v12, %s7199_s27 }
0x1726   :  { %v4617_v55 = vpop.permute.xlu1 %4616 }
0x1727   :  { %v4621_v13 = vsel %vm1454_vm4, %v4620_v49, %v4617_v55 }
0x1728   :  { %6882 = vmatprep.mubr.msk.f32.mxu1 %vm39_vm0, %v4621_v13 }
0x1729   :  { %5924 = vrot.lane.b32.xlu1 %v5914_v17, %s7201_s29 }
0x172c   :  { %v7089_v29 = vpop.eup %7088 }
0x172d   :  { %v129_v8 = vadd.f32 1.0, %v7089_v29 }
0x172f   :  { %7090 = vrcp.f32 %v129_v8 }
0x1739   :  { %v7091_v21 = vpop.eup %7090 }
0x173a   :  { %v135_v36 = vadd.f32 1e-05, %v7091_v21 }
0x173c   :  { %v137_v30 = vmul.f32 1.0986123, %v135_v36 }
0x173e   :  { %v139_v16 = vmul.f32 1.442695, %v137_v30  ;;  %v6517_v30 = vld [vmem:[%s8217_s4 + $0x80] sm:$0xff] }
0x1740   :  { %7092 = vpow2.f32 %v139_v16  ;;  %v6521_v16 = vld [vmem:[%s8217_s4 + $0xa0] sm:$0xff] }
0x174a   :  { %v7093_v57 = vpop.eup %7092 }
0x174b   :  { %v6426_v52 = vadd.f32 -1.0, %v7093_v57 }
0x1797   :  { %v5917_v42 = vpop.permute.xlu1 %5916  ;;  %v5921_v15 = vpop.permute.xlu0 %5920 }
0x1798   :  { %v5927_v19 = vsel %vm292_vm2, %v5911_v50, %v5917_v42  ;;  %v6470_v42 = vmul.f32 -5.0, %v7662_v51  ;;  %v6514_v51 = vld [vmem:[%s8216_s3 + $0x38] sm:$0xff] }
0x1799   :  { %v5928_v22 = vsel %vm1452_vm3, %v5927_v19, %v5921_v15  ;;  %v6511_v19 = vld [vmem:[%s8216_s3 + $0x20] sm:$0xff] }
0x179a   :  { %v3294_v15 = vmul.f32 1.442695, %v6470_v42 }
0x179b   :  { %v5925_v20 = vpop.permute.xlu1 %5924 }
0x179c   :  { %v5929_v25 = vsel %vm1454_vm4, %v5928_v22, %v5925_v20  ;;  %v6512_v22 = vld [vmem:[%s8216_s3 + $0x28] sm:$0xff]  ;;  %7094 = vpow2.f32 %v3294_v15  ;;  %v6127_v15 = vrot.slane %v7656_v1, %v7592_v6 }
0x179d   :  { %6883 = vmatmul.mubr.msk.f32.vlgmr.msra.gmra.mrb[34].mxu1 %vm39_vm0, %v5929_v25  ;;  %v6971_v20 = vpack.c.bf16 %v6512_v22, %v6511_v19  ;;  %v6513_v25 = vld [vmem:[%s8216_s3 + $0x30] sm:$0xff] }
0x179e   :  { %v6975_v26 = vpack.c.bf16 %v6514_v51, %v6513_v25 }
0x179f   :  { %6972 = vmatprep.subr.bf16.mxu0 %v6971_v20 }
0x17a0   :  { %6974 = vmatpush3.bf16.msra.mxu0 %v6971_v20 }
0x17a1   :  { %6976 = vmatprep.subr.bf16.mxu0 %v6975_v26 }
0x17a4   :  { %6978 = vmatpush3.bf16.msra.mxu0 %v6975_v26 }
0x17a6   :  { %v7095_v27 = vpop.eup %7094 }
0x17a7   :  { %v3298_v29 = vadd.f32 1.0, %v7095_v27 }
0x17a9   :  { %7096 = vrcp.f32 %v3298_v29  ;;  %v7967_v29 = vld [vmem:[%s8218_s5 + $0x8] sm:$0xff] }
0x17b3   :  { %v7097_v21 = vpop.eup %7096 }
0x17b4   :  { %v3304_v36 = vadd.f32 1e-05, %v7097_v21 }
0x1870   :  { %v6884_v28 = vpop.f32.mrb[34].mxu1 }
0x1871   :  { %v6087_v40 = vadd.f32 %v6884_v28, %v6008_v37  ;;  %v6081_v39 = vpop.f32.mrb[35].mxu1 }
0x1872   :  { %v6082_v41 = vadd.f32 %v6081_v39, %v6008_v37  ;;  %v3306_v37 = vmul.f32 1.0986123, %v3304_v36  ;;  %v6519_v39 = vld [vmem:[%s8217_s4 + $0x90] sm:$0xff] }
0x1873   :  { %v6091_v61 = vadd.f32 %v6087_v40, %v7645_v63  ;;  %v6518_v40 = vld [vmem:[%s8217_s4 + $0x88] sm:$0xff] }
0x1874   :  { %v6090_v47 = vadd.f32 %v6082_v41, %v7643_v62  ;;  %v3308_v28 = vmul.f32 1.442695, %v3306_v37  ;;  %v6979_v41 = vpack.c.bf16 %v6518_v40, %v6517_v30 }
0x1875   :  { %v6095_v56 = vsel %vm39_vm0, %v6091_v61, 0.0 }
0x1876   :  { %6096 = vadd.xlane.f32.xlu1 %v6095_v56  ;;  %v6092_v59 = vsel %vm39_vm0, %v6090_v47, 0.0  ;;  %7098 = vpow2.f32 %v3308_v28  ;;  %v6522_v56 = vld [vmem:[%s8217_s4 + $0xa8] sm:$0xff]  ;;  %6980 = vmatprep.subr.bf16.mxu1 %v6979_v41 }
0x1877   :  { %6093 = vadd.xlane.f32.xlu0 %v6092_v59  ;;  %6982 = vmatpush3.bf16.msra.mxu1 %v6979_v41  ;;  %v6987_v59 = vpack.c.bf16 %v6522_v56, %v6521_v16 }
0x1880   :  { %v7099_v57 = vpop.eup %7098 }
0x1887   :  { %638 = vrot.lane.b32.xlu1 %v6426_v52, %s7202_s10  ;;  %v6472_v52 = vadd.f32 -1.0, %v7099_v57 }
0x1903   :  { %v6097_v7 = vpop.xlane.xlu1 %6096 }
0x1904   :  { %v6099_v12 = vmul.f32 0.03125, %v6097_v7  ;;  %v6094_v50 = vpop.xlane.xlu0 %6093 }
0x1905   :  { %v6098_v53 = vmul.f32 0.03125, %v6094_v50 }
0x1906   :  { %v7909_v63 = vsub.f32 %v6091_v61, %v6099_v12  ;;  %v6520_v61 = vld [vmem:[%s8217_s4 + $0x98] sm:$0xff] }
0x1907   :  { %v6100_v62 = vsub.f32 %v6090_v47, %v6098_v53  ;;  %v639_v8 = vpop.permute.xlu1 %638  ;;  %v6983_v47 = vpack.c.bf16 %v6520_v61, %v6519_v39  ;;  %v6233_v39 = vrot.slane %v7967_v29, %v3075_v0 }
0x1908   :  { %v6103_v13 = vmul.f32 %v7909_v63, %v7909_v63 }
0x1909   :  { %v6102_v49 = vmul.f32 %v6100_v62, %v6100_v62  ;;  %6984 = vmatprep.subr.bf16.mxu1 %v6983_v47 }
0x190a   :  { %v6107_v17 = vsel %vm39_vm0, %v6103_v13, 0.0  ;;  %6986 = vmatpush3.bf16.msra.mxu1 %v6983_v47  ;;  %v6121_v13 = vrot.slane %v7656_v1, %v7589_v32  ;;  %v6523_v1 = vld [vmem:[%s8217_s4 + $0xb0] sm:$0xff] }
0x190b   :  { %v6104_v55 = vsel %vm39_vm0, %v6102_v49, 0.0  ;;  %6988 = vmatprep.subr.bf16.mxu1 %v6987_v59 }
0x190c   :  { %6105 = vadd.xlane.f32.xlu0 %v6104_v55 }
0x190e   :  { %6990 = vmatpush3.bf16.msra.mxu1 %v6987_v59 }
0x1910   :  { %6108 = vadd.xlane.f32.xlu0 %v6107_v17 }
0x193d   :  { %641 = vxpose.xlu0.b32.start.end [1/1] (short) (narrow) %v639_v8, 8  ;;  %v6138_v8 = vrot.slane %v7967_v29, %v2980_v11 }
0x1966   :  { %3806 = vrot.lane.b32.xlu0 %v6472_v52, %s7202_s10  ;;  %v6425_v52 = vmul.f32 -5.0, %v7294_v14 }
0x1999   :  { %v6106_v7 = vpop.xlane.xlu0 %6105 }
0x199a   :  { %v6110_v12 = vmul.f32 0.03125, %v6106_v7  ;;  %v127_v7 = vmul.f32 1.442695, %v6425_v52 }
0x199c   :  { %v6112_v50 = vadd.f32 1e-05, %v6110_v12  ;;  %v6471_v12 = vmul.f32 -5.0, %v7660_v5 }
0x199d   :  { %v6109_v53 = vpop.xlane.xlu0 %6108 }
0x199e   :  { %7100 = vrsqrt.f32 %v6112_v50  ;;  %v6111_v49 = vmul.f32 0.03125, %v6109_v53  ;;  %v3296_v0 = vmul.f32 1.442695, %v6471_v12 }
0x19a0   :  { %v6113_v55 = vadd.f32 1e-05, %v6111_v49 }
0x19a2   :  { %7102 = vrsqrt.f32 %v6113_v55 }
0x19a3   :  { %7104 = vpow2.f32 %v127_v7 }
0x19a4   :  { %7106 = vpow2.f32 %v3296_v0 }
0x19a8   :  { %v7101_v17 = vpop.eup %7100 }
0x19a9   :  { %v6116_v42 = vmul.f32 %v7101_v17, %v6100_v62 }
0x19ab   :  { %v6122_v19 = vmul.f32 %v6121_v13, %v6116_v42 }
0x19ac   :  { %v7103_v22 = vpop.eup %7102 }
0x19ad   :  { %v6117_v20 = vmul.f32 %v7103_v22, %v7909_v63  ;;  %v6128_v25 = vadd.f32 %v6127_v15, %v6122_v19  ;;  %v6524_v63 = vld [vmem:[%s8217_s4 + $0xb8] sm:$0xff]  ;;  %v7105_v50 = vpop.eup %7104 }
0x19ae   :  { %v6991_v62 = vpack.c.bf16 %v6524_v63, %v6523_v1  ;;  %v130_v53 = vadd.f32 1.0, %v7105_v50  ;;  %v7107_v49 = vpop.eup %7106 }
0x19af   :  { %v6123_v51 = vmul.f32 %v6121_v13, %v6117_v20  ;;  %6893 = vmatprep.mubr.msk.f32.mxu0 %vm39_vm0, %v6128_v25  ;;  %v3299_v55 = vadd.f32 1.0, %v7107_v49 }
0x19b0   :  { %6992 = vmatprep.subr.bf16.mxu1 %v6991_v62  ;;  %7108 = vrcp.f32 %v130_v53 }
0x19b1   :  { %v6129_v26 = vadd.f32 %v6127_v15, %v6123_v51  ;;  %6994 = vmatpush3.bf16.msra.mxu1 %v6991_v62  ;;  %7110 = vrcp.f32 %v3299_v55 }
0x19b3   :  { %6894 = vmatmul.mubr.msk.f32.vlgmr.msra.gmra.mrb[40].mxu0 %vm39_vm0, %v6129_v26 }
0x19ba   :  { %v7109_v17 = vpop.eup %7108 }
0x19bb   :  { %v136_v42 = vadd.f32 1e-05, %v7109_v17  ;;  %v7111_v15 = vpop.eup %7110 }
0x19bc   :  { %v3305_v22 = vadd.f32 1e-05, %v7111_v15 }
0x19bd   :  { %v657_v27 = vpop.trf.xlu0  ;;  %v138_v19 = vmul.f32 1.0986123, %v136_v42 }
0x19be   :  { %674 = vst.msk [vmem:[%s8221_s8] sm:$0xf] %vm673_vm6, %v657_v27  ;;  %7112 = vrcp.f32 %v657_v27  ;;  %v3307_v20 = vmul.f32 1.0986123, %v3305_v22 }
0x19bf   :  { %v141_v14 = vmul.f32 1.442695, %v138_v19 }
0x19c0   :  { %v3310_v5 = vmul.f32 1.442695, %v3307_v20 }
0x19c1   :  { %7114 = vpow2.f32 %v141_v14 }
0x19c2   :  { %7116 = vpow2.f32 %v3310_v5 }
0x19d8   :  { %v3807_v13 = vpop.permute.xlu0 %3806 }
0x1a86   :  { %v6895_v21 = vpop.f32.mrb[40].mxu0 }
0x1a87   :  { %v6217_v36 = vadd.f32 %v6895_v21, %v6138_v8  ;;  %v6211_v37 = vpop.f32.mrb[41].mxu0 }
0x1a88   :  { %v6212_v28 = vadd.f32 %v6211_v37, %v6138_v8 }
0x1a89   :  { %v6221_v40 = vmax.f32 %v6217_v36, 0.0 }
0x1a8a   :  { %v6220_v30 = vmax.f32 %v6212_v28, 0.0 }
0x1a8c   :  { %6912 = vmatprep.mubr.msk.f32.mxu1 %vm2827_vm5, %v6220_v30 }
0x1a8d   :  { %6913 = vmatmul.mubr.msk.f32.vlgmr.msra.gmra.mrb[36].mxu1 %vm2827_vm5, %v6221_v40 }
0x1b60   :  { %v6914_v41 = vpop.f32.mrb[36].mxu1 }
0x1b61   :  { %v6312_v61 = vadd.f32 %v6914_v41, %v6233_v39  ;;  %v6306_v47 = vpop.f32.mrb[37].mxu1 }
0x1b62   :  { %v6307_v16 = vadd.f32 %v6306_v47, %v6233_v39 }
0x1b63   :  { %v7977_v56 = vadd.f32 %v6312_v61, %v6129_v26 }
0x1b64   :  { %v6315_v11 = vadd.f32 %v6307_v16, %v6128_v25  ;;  %v7113_v25 = vpop.eup %7112 }
0x1b65   :  { %v6320_v59 = vsel %vm39_vm0, %v7977_v56, 0.0  ;;  %v676_v51 = vmul.f32 %v7113_v25, %v657_v27  ;;  %v7115_v26 = vpop.eup %7114 }
0x1b66   :  { %6321 = vadd.xlane.f32.xlu0 %v6320_v59  ;;  %v6317_v57 = vsel %vm39_vm0, %v6315_v11, 0.0  ;;  %v6427_v63 = vadd.f32 -1.0, %v7115_v26  ;;  %v7117_v62 = vpop.eup %7116 }
0x1b67   :  { %6318 = vadd.xlane.f32.xlu1 %v6317_v57  ;;  %v677_v1 = vsub.f32 2.0, %v676_v51  ;;  %v6473_v21 = vadd.f32 -1.0, %v7117_v62 }
0x1b69   :  { %v678_v8 = vmul.f32 %v7113_v25, %v677_v1 }
0x1b6b   :  { %v682_v36 = vrot.slane %v678_v8, %v7285_v10  ;;  %v689_v37 = vrot.slane %v678_v8, %v7548_v38  ;;  %v696_v17 = vrot.slane %v678_v8, %v7589_v32  ;;  %v703_v42 = vrot.slane %v678_v8, %v7592_v6 }
0x1b9a   :  { %3809 = vxpose.xlu1.b32.start.end [1/1] (short) (narrow) %v3807_v13, 8 }
0x1bb8   :  { %1948 = vrot.lane.b32.xlu1 %v6427_v63, %s7202_s10 }
0x1bbc   :  { %5114 = vrot.lane.b32.xlu1 %v6473_v21, %s7202_s10 }
0x1bc0   :  { %684 = vbcast.lane.b32.xlu1 %v682_v36, 256 }
0x1bc4   :  { %691 = vbcast.lane.b32.xlu1 %v689_v37, 256 }
0x1bf3   :  { %v6322_v53 = vpop.xlane.xlu0 %6321 }
0x1bf4   :  { %v6319_v28 = vpop.xlane.xlu1 %6318  ;;  %v6324_v49 = vmul.f32 0.03125, %v6322_v53 }
0x1bf5   :  { %v6323_v57 = vmul.f32 0.03125, %v6319_v28 }
0x1bf6   :  { %v8002_v55 = vsub.f32 %v7977_v56, %v6324_v49 }
0x1bf7   :  { %v7994_v52 = vsub.f32 %v6315_v11, %v6323_v57 }
0x1bf8   :  { %v6328_v11 = vmul.f32 %v8002_v55, %v8002_v55 }
0x1bf9   :  { %v6327_v7 = vmul.f32 %v7994_v52, %v7994_v52 }
0x1bfa   :  { %v6332_v13 = vsel %vm39_vm0, %v6328_v11, 0.0 }
0x1bfb   :  { %v6329_v12 = vsel %vm39_vm0, %v6327_v7, 0.0 }
0x1c1a   :  { %v3825_v30 = vpop.trf.xlu1 }
0x1c1b   :  { %6478 = vst.msk [vmem:[%s8221_s8 + $0x8] sm:$0xf] %vm673_vm6, %v3825_v30  ;;  %7118 = vrcp.f32 %v3825_v30 }
0x1c25   :  { %v7119_v27 = vpop.eup %7118 }
0x1c26   :  { %v3844_v40 = vmul.f32 %v7119_v27, %v3825_v30 }
0x1c28   :  { %v3845_v39 = vsub.f32 2.0, %v3844_v40 }
0x1c2a   :  { %v3846_v41 = vmul.f32 %v7119_v27, %v3845_v39  ;;  %v1949_v61 = vpop.permute.xlu1 %1948 }
0x1c2b   :  { %1951 = vxpose.xlu0.b32.start.end [1/1] (short) (narrow) %v1949_v61, 8 }
0x1c2c   :  { %v3857_v47 = vrot.slane %v3846_v41, %v7548_v38  ;;  %v3864_v59 = vrot.slane %v3846_v41, %v7589_v32  ;;  %v3850_v0 = vrot.slane %v3846_v41, %v7285_v10  ;;  %v3871_v50 = vrot.slane %v3846_v41, %v7592_v6 }
0x1c2e   :  { %3859 = vbcast.lane.b32.xlu1 %v3857_v47, 256  ;;  %v5115_v16 = vpop.permute.xlu1 %5114 }
0x1c2f   :  { %5117 = vxpose.xlu0.b32.start.end [1/1] (short) (narrow) %v5115_v16, 8 }
0x1c32   :  { %3866 = vbcast.lane.b32.xlu1 %v3864_v59, 256  ;;  %v685_v30 = vpop.permute.xlu1 %684 }
0x1c33   :  { %v711_v27 = vmul.f32 %v685_v30, %v685_v30 }
0x1c56   :  { %6330 = vadd.xlane.f32.xlu1 %v6329_v12 }
0x1c58   :  { %3852 = vbcast.lane.b32.xlu0 %v3850_v0, 256 }
0x1c67   :  { %3873 = vbcast.lane.b32.xlu1 %v3871_v50, 256 }
0x1c77   :  { %6333 = vadd.xlane.f32.xlu0 %v6332_v13 }
0x1c8d   :  { %698 = vbcast.lane.b32.xlu0 %v696_v17, 256  ;;  %v707_v17 = vmul.f32 0.3989423, %v685_v30 }
0x1c91   :  { %705 = vbcast.lane.b32.xlu0 %v703_v42, 256 }
0x1cab   :  { %v1967_v15 = vpop.trf.xlu0 }
0x1cac   :  { %6446 = vst.msk [vmem:[%s8221_s8 + $0x4] sm:$0xf] %vm673_vm6, %v1967_v15  ;;  %7120 = vrcp.f32 %v1967_v15 }
0x1caf   :  { %v5133_v56 = vpop.trf.xlu0 }
0x1cb0   :  { %6493 = vst.msk [vmem:[%s8221_s8 + $0xc] sm:$0xf] %vm673_vm6, %v5133_v56  ;;  %7122 = vrcp.f32 %v5133_v56  ;;  %s7203_s8 = smov 40  }
0x1cb6   :  { %v7121_v19 = vpop.eup %7120 }
0x1cb7   :  { %v1986_v22 = vmul.f32 %v7121_v19, %v1967_v15 }
0x1cb9   :  { %v1987_v14 = vsub.f32 2.0, %v1986_v22 }
0x1cba   :  { %v7123_v20 = vpop.eup %7122 }
0x1cbb   :  { %v1988_v5 = vmul.f32 %v7121_v19, %v1987_v14  ;;  %v5152_v25 = vmul.f32 %v7123_v20, %v5133_v56 }
0x1cbd   :  { %v5153_v51 = vsub.f32 2.0, %v5152_v25  ;;  %v1992_v26 = vrot.slane %v1988_v5, %v7285_v10  ;;  %v1999_v63 = vrot.slane %v1988_v5, %v7548_v38  ;;  %v2006_v8 = vrot.slane %v1988_v5, %v7589_v32 }
0x1cbe   :  { %v2013_v37 = vrot.slane %v1988_v5, %v7592_v6 }
0x1cbf   :  { %v5154_v1 = vmul.f32 %v7123_v20, %v5153_v51  ;;  %1994 = vbcast.lane.b32.xlu0 %v1992_v26, 256 }
0x1cc1   :  { %v5158_v62 = vrot.slane %v5154_v1, %v7285_v10  ;;  %v5165_v21 = vrot.slane %v5154_v1, %v7548_v38  ;;  %v5172_v36 = vrot.slane %v5154_v1, %v7589_v32  ;;  %v5179_v28 = vrot.slane %v5154_v1, %v7592_v6  ;;  %v692_v10 = vpop.permute.xlu1 %691 }
0x1cc2   :  { %v712_v9 = vmul.f32 %v692_v10, %v692_v10  ;;  %v708_v19 = vmul.f32 0.3989423, %v692_v10 }
0x1cc3   :  { %2001 = vbcast.lane.b32.xlu0 %v1999_v63, 256  ;;  %5160 = vbcast.lane.b32.xlu1 %v5158_v62, 256 }
0x1cc5   :  { %v8035_v38 = vpop.permute.xlu1 %3859 }
0x1cc6   :  { %v3880_v22 = vmul.f32 %v8035_v38, %v8035_v38 }
0x1cc7   :  { %2008 = vbcast.lane.b32.xlu0 %v2006_v8, 256  ;;  %5167 = vbcast.lane.b32.xlu1 %v5165_v21, 256 }
0x1ccb   :  { %2015 = vbcast.lane.b32.xlu0 %v2013_v37, 256  ;;  %5174 = vbcast.lane.b32.xlu1 %v5172_v36, 256 }
0x1ccf   :  { %2764 = vrot.lane.b32.xlu0 %v7373_v31, %s7199_s27  ;;  %5181 = vbcast.lane.b32.xlu1 %v5179_v28, 256  ;;  %v8041_v31 = vpop.permute.xlu1 %3866 }
0x1cd0   :  { %v3881_v51 = vmul.f32 %v8041_v31, %v8041_v31 }
0x1cd3   :  { %2767 = vrot.lane.b32.xlu0 %v7378_v34, %s7200_s28  ;;  %5930 = vrot.lane.b32.xlu1 %v7733_v58, %s7199_s27 }
0x1cd7   :  { %2770 = vrot.lane.b32.xlu0 %v7395_v43, %s7201_s29  ;;  %5933 = vrot.lane.b32.xlu1 %v7735_v4, %s7200_s28 }
0x1cdb   :  { %2773 = vrot.lane.b32.xlu0 %v7445_v45, %s7202_s10  ;;  %5936 = vrot.lane.b32.xlu1 %v7755_v24, %s7201_s29  ;;  %v6346_v45 = vrot.slane %v7967_v29, %v3188_v44  ;;  %v8063_v44 = vld [vmem:[%s8214_s1] sm:$0xff]  ;;  %s7204_s1 = smov 48  }
0x1cdc   :  { %v715_v39 = vmul.f32 %v711_v27, %v8063_v44  ;;  %v716_v47 = vmul.f32 %v712_v9, %v8063_v44  ;;  %v3884_v25 = vmul.f32 %v3880_v22, %v8063_v44  ;;  %v3885_v36 = vmul.f32 %v3881_v51, %v8063_v44 }
0x1cde   :  { %v719_v61 = vmul.f32 1.442695, %v715_v39  ;;  %v721_v57 = vmul.f32 1.442695, %v716_v47  ;;  %v3889_v21 = vmul.f32 1.442695, %v3884_v25 }
0x1cdf   :  { %2776 = vrot.lane.b32.xlu0 %v7450_v54, %s7203_s8  ;;  %5939 = vrot.lane.b32.xlu1 %v7805_v2, %s7202_s10  ;;  %v6352_v54 = vrot.slane %v7967_v29, %v3194_v46  ;;  %s7205_s10 = smov 56   ;;  %v3891_v30 = vmul.f32 1.442695, %v3885_v36 }
0x1ce3   :  { %v6331_v34 = vpop.xlane.xlu1 %6330  ;;  %5942 = vrot.lane.b32.xlu1 %v7810_v23, %s7203_s8  ;;  %v8058_v23 = vpop.permute.xlu0 %3852 }
0x1ce4   :  { %v6335_v43 = vmul.f32 0.03125, %v6331_v34  ;;  %v3879_v15 = vmul.f32 %v8058_v23, %v8058_v23 }
0x1ce6   :  { %v6337_v32 = vadd.f32 1e-05, %v6335_v43 }
0x1ce7   :  { %v3874_v1 = vpop.permute.xlu1 %3873 }
0x1ce8   :  { %7124 = vrsqrt.f32 %v6337_v32  ;;  %v3882_v37 = vmul.f32 %v3874_v1, %v3874_v1  ;;  %v3875_v32 = vmul.f32 0.3989423, %v8058_v23 }
0x1cea   :  { %v3886_v10 = vmul.f32 %v3882_v37, %v8063_v44 }
0x1cec   :  { %v3893_v34 = vmul.f32 1.442695, %v3886_v10 }
0x1cf2   :  { %v7125_v6 = vpop.eup %7124 }
0x1cf3   :  { %v6341_v58 = vmul.f32 %v7125_v6, %v7994_v52 }
0x1cf5   :  { %v6347_v4 = vmul.f32 %v6346_v45, %v6341_v58 }
0x1cf7   :  { %v8054_v24 = vadd.f32 %v6352_v54, %v6347_v4 }
0x1cf9   :  { %v6358_v2 = vsel %vm39_vm0, %v8054_v24, 0.0 }
0x1cfe   :  { %6359 = vadd.xlane.f32.xlu0 %v6358_v2 }
0x1d04   :  { %v6334_v40 = vpop.xlane.xlu0 %6333 }
0x1d05   :  { %v6336_v41 = vmul.f32 0.03125, %v6334_v40 }
0x1d07   :  { %v6338_v46 = vadd.f32 1e-05, %v6336_v41 }
0x1d08   :  { %v699_v29 = vpop.permute.xlu0 %698 }
0x1d09   :  { %7126 = vrsqrt.f32 %v6338_v46  ;;  %v713_v16 = vmul.f32 %v699_v29, %v699_v29  ;;  %v709_v5 = vmul.f32 0.3989423, %v699_v29 }
0x1d0a   :  { %7128 = vpow2.f32 %v719_v61 }
0x1d0b   :  { %v717_v52 = vmul.f32 %v713_v16, %v8063_v44  ;;  %7130 = vpow2.f32 %v721_v57 }
0x1d0c   :  { %v706_v59 = vpop.permute.xlu0 %705 }
0x1d0d   :  { %v714_v7 = vmul.f32 %v706_v59, %v706_v59  ;;  %v723_v12 = vmul.f32 1.442695, %v717_v52  ;;  %v710_v8 = vmul.f32 0.3989423, %v706_v59 }
0x1d0f   :  { %v718_v0 = vmul.f32 %v714_v7, %v8063_v44  ;;  %7132 = vpow2.f32 %v723_v12  ;;  %v3878_v7 = vmul.f32 0.3989423, %v3874_v1 }
0x1d11   :  { %v725_v49 = vmul.f32 1.442695, %v718_v0 }
0x1d13   :  { %v7127_v50 = vpop.eup %7126  ;;  %7134 = vpow2.f32 %v725_v49 }
0x1d14   :  { %2779 = vrot.lane.b32.xlu0 %v7459_v3, %s7204_s1  ;;  %v6342_v53 = vmul.f32 %v7127_v50, %v8002_v55  ;;  %v7129_v13 = vpop.eup %7128 }
0x1d15   :  { %v727_v56 = vmul.f32 %v7129_v13, %v707_v17  ;;  %v7131_v55 = vpop.eup %7130 }
0x1d16   :  { %v6348_v11 = vmul.f32 %v6346_v45, %v6342_v53  ;;  %v728_v14 = vmul.f32 %v7131_v55, %v708_v19 }
0x1d18   :  { %2782 = vrot.lane.b32.xlu0 %v7466_v60, %s7205_s10  ;;  %v8074_v42 = vadd.f32 %v6352_v54, %v6348_v11  ;;  %v3883_v60 = vmul.f32 %v3879_v15, %v8063_v44  ;;  %v3876_v54 = vmul.f32 0.3989423, %v8035_v38 }
0x1d19   :  { %v7133_v20 = vpop.eup %7132 }
0x1d1a   :  { %v6361_v3 = vsel %vm39_vm0, %v8074_v42, 0.0  ;;  %v3887_v26 = vmul.f32 1.442695, %v3883_v60  ;;  %v729_v63 = vmul.f32 %v7133_v20, %v709_v5 }
0x1d1b   :  { %6362 = vadd.xlane.f32.xlu1 %v6361_v3 }
0x1d1c   :  { %2786 = vrot.lane.b32.xlu0 %v727_v56, %s7196_s22  ;;  %7136 = vpow2.f32 %v3887_v26 }
0x1d1d   :  { %v7135_v62 = vpop.eup %7134  ;;  %7138 = vpow2.f32 %v3889_v21 }
0x1d1e   :  { %v730_v28 = vmul.f32 %v7135_v62, %v710_v8  ;;  %7140 = vpow2.f32 %v3891_v30 }
0x1d1f   :  { %7142 = vpow2.f32 %v3893_v34 }
0x1d20   :  { %2790 = vrot.lane.b32.xlu0 %v728_v14, %s7206_s12 }
0x1d24   :  { %2794 = vrot.lane.b32.xlu0 %v729_v63, %s7207_s13 }
0x1d26   :  { %v7137_v43 = vpop.eup %7136 }
0x1d27   :  { %v3895_v6 = vmul.f32 %v7137_v43, %v3875_v32  ;;  %v7139_v4 = vpop.eup %7138 }
0x1d28   :  { %2798 = vrot.lane.b32.xlu0 %v730_v28, %s7208_s14  ;;  %v3896_v40 = vmul.f32 %v7139_v4, %v3876_v54  ;;  %v7141_v23 = vpop.eup %7140 }
0x1d29   :  { %v7143_v57 = vpop.eup %7142 }
0x1d2a   :  { %v3898_v50 = vmul.f32 %v7143_v57, %v3878_v7 }
0x1d2c   :  { %5945 = vrot.lane.b32.xlu1 %v7819_v35, %s7204_s1 }
0x1d30   :  { %5948 = vrot.lane.b32.xlu1 %v7826_v48, %s7205_s10  ;;  %v3877_v48 = vmul.f32 0.3989423, %v8041_v31 }
0x1d31   :  { %v1995_v45 = vpop.permute.xlu0 %1994 }
0x1d32   :  { %v2021_v58 = vmul.f32 %v1995_v45, %v1995_v45  ;;  %v3897_v47 = vmul.f32 %v7141_v23, %v3877_v48  ;;  %v2017_v49 = vmul.f32 0.3989423, %v1995_v45 }
0x1d34   :  { %v2025_v2 = vmul.f32 %v2021_v58, %v8063_v44  ;;  %5952 = vrot.lane.b32.xlu1 %v3895_v6, %s7196_s22 }
0x1d35   :  { %v5161_v35 = vpop.permute.xlu1 %5160  ;;  %v2002_v27 = vpop.permute.xlu0 %2001 }
0x1d36   :  { %v2029_v39 = vmul.f32 1.442695, %v2025_v2  ;;  %v5187_v9 = vmul.f32 %v5161_v35, %v5161_v35  ;;  %v2022_v41 = vmul.f32 %v2002_v27, %v2002_v27  ;;  %v5183_v56 = vmul.f32 0.3989423, %v5161_v35 }
0x1d37   :  { %v2018_v60 = vmul.f32 0.3989423, %v2002_v27 }
0x1d38   :  { %7144 = vpow2.f32 %v2029_v39  ;;  %v5191_v46 = vmul.f32 %v5187_v9, %v8063_v44  ;;  %5956 = vrot.lane.b32.xlu1 %v3896_v40, %s7206_s12  ;;  %v2026_v38 = vmul.f32 %v2022_v41, %v8063_v44 }
0x1d39   :  { %v5168_v29 = vpop.permute.xlu1 %5167  ;;  %v8104_v61 = vpop.permute.xlu0 %2008 }
0x1d3a   :  { %v5195_v16 = vmul.f32 1.442695, %v5191_v46  ;;  %v5188_v59 = vmul.f32 %v5168_v29, %v5168_v29  ;;  %v2031_v52 = vmul.f32 1.442695, %v2026_v38  ;;  %v5184_v51 = vmul.f32 0.3989423, %v5168_v29 }
0x1d3b   :  { %v2023_v6 = vmul.f32 %v8104_v61, %v8104_v61 }
0x1d3c   :  { %7146 = vpow2.f32 %v5195_v16  ;;  %v5192_v12 = vmul.f32 %v5188_v59, %v8063_v44  ;;  %5960 = vrot.lane.b32.xlu1 %v3897_v47, %s7207_s13 }
0x1d3d   :  { %7148 = vpow2.f32 %v2031_v52  ;;  %v8108_v31 = vpop.permute.xlu1 %5174  ;;  %v2016_v0 = vpop.permute.xlu0 %2015  ;;  %v2027_v54 = vmul.f32 %v2023_v6, %v8063_v44  ;;  %v6529_v6 = vld [vmem:[%s8218_s5 + $0x10] ss:$0 sm:$0xff] }
0x1d3e   :  { %v5197_v53 = vmul.f32 1.442695, %v5192_v12  ;;  %v2024_v2 = vmul.f32 %v2016_v0, %v2016_v0  ;;  %v5189_v41 = vmul.f32 %v8108_v31, %v8108_v31  ;;  %v2020_v29 = vmul.f32 0.3989423, %v2016_v0 }
0x1d3f   :  { %v2033_v27 = vmul.f32 1.442695, %v2027_v54  ;;  %v6530_v54 = vld [vmem:[%s8218_s5 + $0x11] ss:$0 sm:$0xff] }
0x1d40   :  { %7150 = vpow2.f32 %v5197_v53  ;;  %5964 = vrot.lane.b32.xlu1 %v3898_v50, %s7208_s14  ;;  %v2028_v40 = vmul.f32 %v2024_v2, %v8063_v44  ;;  %v5193_v16 = vmul.f32 %v5189_v41, %v8063_v44 }
0x1d41   :  { %v8111_v11 = vpop.permute.xlu1 %5181  ;;  %v2765_v13 = vpop.permute.xlu0 %2764  ;;  %7152 = vpow2.f32 %v2033_v27 }
0x1d42   :  { %v7145_v17 = vpop.eup %7144  ;;  %v2817_v3 = vsel %vm292_vm2, %v7368_v18, %v2765_v13  ;;  %v2035_v39 = vmul.f32 1.442695, %v2028_v40  ;;  %v5190_v59 = vmul.f32 %v8111_v11, %v8111_v11  ;;  %v5199_v7 = vmul.f32 1.442695, %v5193_v16 }
0x1d43   :  { %v2037_v15 = vmul.f32 %v7145_v17, %v2017_v49  ;;  %v5185_v49 = vmul.f32 0.3989423, %v8108_v31  ;;  %v5186_v17 = vmul.f32 0.3989423, %v8111_v11 }
0x1d44   :  { %7154 = vpow2.f32 %v2035_v39  ;;  %v5194_v12 = vmul.f32 %v5190_v59, %v8063_v44 }
0x1d45   :  { %v5931_v55 = vpop.permute.xlu1 %5930  ;;  %2802 = vrot.lane.b32.xlu0 %v2037_v15, %s7192_s20  ;;  %v2768_v19 = vpop.permute.xlu0 %2767  ;;  %7156 = vpow2.f32 %v5199_v7 }
0x1d46   :  { %v7147_v22 = vpop.eup %7146  ;;  %v2818_v14 = vsel %vm1452_vm3, %v2817_v3, %v2768_v19  ;;  %v5983_v26 = vsel %vm292_vm2, %v7728_v33, %v5931_v55  ;;  %v5201_v50 = vmul.f32 1.442695, %v5194_v12 }
0x1d47   :  { %v7149_v20 = vpop.eup %7148  ;;  %v5203_v5 = vmul.f32 %v7147_v22, %v5183_v56 }
0x1d48   :  { %v2038_v25 = vmul.f32 %v7149_v20, %v2018_v60  ;;  %7158 = vpow2.f32 %v5201_v50 }
0x1d49   :  { %v5934_v1 = vpop.permute.xlu1 %5933  ;;  %5968 = vrot.lane.b32.xlu1 %v5203_v5, %s7192_s20  ;;  %v2771_v63 = vpop.permute.xlu0 %2770 }
0x1d4a   :  { %v7151_v18 = vpop.eup %7150  ;;  %v5984_v62 = vsel %vm1452_vm3, %v5983_v26, %v5934_v1  ;;  %2806 = vrot.lane.b32.xlu0 %v2038_v25, %s7190_s0  ;;  %v2819_v8 = vsel %vm1454_vm4, %v2818_v14, %v2771_v63 }
0x1d4b   :  { %v5204_v21 = vmul.f32 %v7151_v18, %v5184_v51  ;;  %v7153_v9 = vpop.eup %7152 }
0x1d4d   :  { %v5937_v36 = vpop.permute.xlu1 %5936  ;;  %5972 = vrot.lane.b32.xlu1 %v5204_v21, %s7190_s0  ;;  %v2774_v37 = vpop.permute.xlu0 %2773 }
0x1d4e   :  { %v5985_v28 = vsel %vm1454_vm4, %v5984_v62, %v5937_v36  ;;  %v2820_v33 = vsel %vm39_vm0, %v2819_v8, %v2774_v37  ;;  %v7155_v46 = vpop.eup %7154 }
0x1d4f   :  { %v2040_v57 = vmul.f32 %v7155_v46, %v2020_v29  ;;  %v7157_v53 = vpop.eup %7156 }
0x1d50   :  { %v5205_v13 = vmul.f32 %v7157_v53, %v5185_v49 }
0x1d51   :  { %v5940_v30 = vpop.permute.xlu1 %5939  ;;  %v2777_v10 = vpop.permute.xlu0 %2776 }
0x1d52   :  { %v8127_v34 = vsel %vm39_vm0, %v5985_v28, %v5940_v30  ;;  %v2822_v43 = vsel %vm2821_vm7, %v2820_v33, %v2777_v10 }
0x1d55   :  { %v8140_v23 = vpop.permute.xlu1 %5942 }
0x1d56   :  { %v5987_v39 = vsel %vm2821_vm7, %v8127_v34, %v8140_v23 }
0x1d8b   :  { %v6360_v32 = vpop.xlane.xlu0 %6359 }
0x1d8c   :  { %v6364_v45 = vmul.f32 0.03125, %v6360_v32 }
0x1d8e   :  { %v8133_v58 = vsub.f32 %v8054_v24, %v6364_v45  ;;  %v2019_v24 = vmul.f32 0.3989423, %v8104_v61 }
0x1d8f   :  { %v2780_v56 = vpop.permute.xlu0 %2779 }
0x1d90   :  { %v6368_v4 = vmul.f32 %v8133_v58, %v8133_v58  ;;  %v2039_v48 = vmul.f32 %v7153_v9, %v2019_v24  ;;  %v2824_v11 = vsel %vm2823_vm8, %v2822_v43, %v2780_v56 }
0x1d92   :  { %v6370_v35 = vsel %vm39_vm0, %v6368_v4, 0.0 }
0x1d93   :  { %6371 = vadd.xlane.f32.xlu0 %v6370_v35  ;;  %v2783_v44 = vpop.permute.xlu0 %2782 }
0x1d94   :  { %v2826_v51 = vsel %vm2825_vm9, %v2824_v11, %v2783_v44 }
0x1d97   :  { %v2787_v3 = vpop.permute.xlu0 %2786 }
0x1d98   :  { %v2828_v63 = vsel %vm2827_vm5, %v2826_v51, %v2787_v3 }
0x1d9b   :  { %v2791_v55 = vpop.permute.xlu0 %2790 }
0x1d9c   :  { %v2830_v18 = vsel %vm2829_vm10, %v2828_v63, %v2791_v55 }
0x1d9f   :  { %v2795_v19 = vpop.permute.xlu0 %2794 }
0x1da0   :  { %v2832_v8 = vsel %vm2831_vm11, %v2830_v18, %v2795_v19 }
0x1da3   :  { %v2799_v60 = vpop.permute.xlu0 %2798 }
0x1da4   :  { %v2834_v36 = vsel %vm2833_vm12, %v2832_v8, %v2799_v60 }
0x1da8   :  { %v6363_v38 = vpop.xlane.xlu1 %6362 }
0x1da9   :  { %v6365_v47 = vmul.f32 0.03125, %v6363_v38  ;;  %2810 = vrot.lane.b32.xlu0 %v2039_v48, %s7193_s21 }
0x1dab   :  { %v8150_v52 = vsub.f32 %v8074_v42, %v6365_v47  ;;  %v7159_v42 = vpop.eup %7158 }
0x1dac   :  { %v5206_v15 = vmul.f32 %v7159_v42, %v5186_v17  ;;  %v5946_v22 = vpop.permute.xlu1 %5945 }
0x1dad   :  { %2814 = vrot.lane.b32.xlu0 %v2040_v57, %s7191_s19  ;;  %v6369_v61 = vmul.f32 %v8150_v52, %v8150_v52  ;;  %v5988_v9 = vsel %vm2823_vm8, %v5987_v39, %v5946_v22 }
0x1daf   :  { %v6373_v0 = vsel %vm39_vm0, %v6369_v61, 0.0 }
0x1db0   :  { %6374 = vadd.xlane.f32.xlu1 %v6373_v0  ;;  %v5949_v14 = vpop.permute.xlu1 %5948 }
0x1db1   :  { %v5989_v41 = vsel %vm2825_vm9, %v5988_v9, %v5949_v14 }
0x1db4   :  { %v5953_v5 = vpop.permute.xlu1 %5952 }
0x1db5   :  { %v5990_v48 = vsel %vm2827_vm5, %v5989_v41, %v5953_v5 }
0x1db7   :  { %v2803_v20 = vpop.permute.xlu0 %2802 }
0x1db8   :  { %v5957_v26 = vpop.permute.xlu1 %5956  ;;  %v2836_v37 = vsel %vm2835_vm13, %v2834_v36, %v2803_v20 }
0x1db9   :  { %v5991_v46 = vsel %vm2829_vm10, %v5990_v48, %v5957_v26 }
0x1dbc   :  { %v2807_v31 = vpop.permute.xlu0 %2806  ;;  %v5961_v33 = vpop.permute.xlu1 %5960 }
0x1dbd   :  { %v2838_v28 = vsel %vm2837_vm14, %v2836_v37, %v2807_v31  ;;  %v5992_v29 = vsel %vm2831_vm11, %v5991_v46, %v5961_v33 }
0x1dc0   :  { %v5965_v32 = vpop.permute.xlu1 %5964 }
0x1dc1   :  { %5976 = vrot.lane.b32.xlu1 %v5205_v13, %s7193_s21  ;;  %v5993_v16 = vsel %vm2833_vm12, %v5992_v29, %v5965_v32 }
0x1dc4   :  { %v5969_v35 = vpop.permute.xlu1 %5968 }
0x1dc5   :  { %5980 = vrot.lane.b32.xlu1 %v5206_v15, %s7191_s19  ;;  %v5994_v59 = vsel %vm2835_vm13, %v5993_v16, %v5969_v35 }
0x1dc8   :  { %v5973_v40 = vpop.permute.xlu1 %5972 }
0x1dc9   :  { %v5995_v34 = vsel %vm2837_vm14, %v5994_v59, %v5973_v40 }
0x1e20   :  { %v6372_v25 = vpop.xlane.xlu0 %6371 }
0x1e21   :  { %v6376_v1 = vmul.f32 0.03125, %v6372_v25 }
0x1e23   :  { %v6378_v62 = vadd.f32 1e-05, %v6376_v1 }
0x1e24   :  { %v2811_v21 = vpop.permute.xlu0 %2810 }
0x1e25   :  { %7160 = vrsqrt.f32 %v6378_v62  ;;  %v2840_v30 = vsel %vm2839_vm15, %v2838_v28, %v2811_v21 }
0x1e28   :  { %v2815_v10 = vpop.permute.xlu0 %2814 }
0x1e29   :  { %v2842_v43 = vsel %vm2841_vm1, %v2840_v30, %v2815_v10 }
0x1e2a   :  { %2843 = vst [vmem:[%s8220_s7] sm:$0xff] %v2842_v43 }
0x1e2f   :  { %v7161_v45 = vpop.eup %7160 }
0x1e30   :  { %v6382_v4 = vmul.f32 %v7161_v45, %v8133_v58 }
0x1e32   :  { %v6388_v2 = vmul.f32 %v6529_v6, %v6382_v4 }
0x1e34   :  { %v6394_v27 = vadd.f32 %v6530_v54, %v6388_v2 }
0x1e36   :  { %6396 = vst.msk [vmem:[#allocation2] sm:$0xff] %vm39_vm0, %v6394_v27 }
0x1e3d   :  { %v6375_v24 = vpop.xlane.xlu1 %6374 }
0x1e3e   :  { %v6377_v58 = vmul.f32 0.03125, %v6375_v24 }
0x1e40   :  { %v6379_v38 = vadd.f32 1e-05, %v6377_v58 }
0x1e41   :  { %v5977_v47 = vpop.permute.xlu1 %5976 }
0x1e42   :  { %7162 = vrsqrt.f32 %v6379_v38  ;;  %v5996_v23 = vsel %vm2839_vm15, %v5995_v34, %v5977_v47 }
0x1e45   :  { %v5981_v57 = vpop.permute.xlu1 %5980 }
0x1e46   :  { %v5997_v61 = vsel %vm2841_vm1, %v5996_v23, %v5981_v57 }
0x1e47   :  { %6504 = vst [vmem:[%s8220_s7 + $0x8] sm:$0xff] %v5997_v61 }
0x1e4c   :  { %v7163_v7 = vpop.eup %7162 }
0x1e4d   :  { %v6383_v12 = vmul.f32 %v7163_v7, %v8150_v52 }
0x1e4f   :  { %v6389_v0 = vmul.f32 %v6529_v6, %v6383_v12 }
0x1e51   :  { %v6395_v50 = vadd.f32 %v6530_v54, %v6389_v0 }
0x1e53   :  { %6397 = vst.msk [vmem:[#allocation2 + $0x8] sm:$0xff] %vm39_vm0, %v6395_v50 }
0x1e54   :  { %7177 = shalt.err (!%p7174_p4)
}
0x1e55   :  { %s7178_s7 = scalar_lea.hbm %s8219_s6, 256 }
0x1e56   :  { %p7179_p5 = scmp.ne.s32.totalorder %s8219_s6, %s7178_s7  ;;  %p7182_p6 = scmp.lt.u32.totalorder %s7178_s7, %s8219_s6 }
0x1e58   :  { %p7184_p7 = pnand %p7182_p6, %p7179_p5 }
0x1e5a   :  { %7187 = shalt.err (!%p7184_p7)
}
0x1e5b   :  { %s7210_s30 = smov 128  }
0x1e5c   :  { %6409 = dma.vmem_to_hbm [thread:$0]  %s6404_s17, 256, %s8219_s6, [#allocation3], %s7210_s30, %s7210_s30, %s7199_s27  }
0x1e5d   :  { %7188 = dma.done.wait [#allocation3], 256  }
0x1e5e   :  { %7189 = vsyncadd [#allocation3], 4294967040 }
0x1e5f   :  { %6421 = vsyncpa [#allocation3], 1 }

</bundles_post_ra>
